<compile_context>
chip_gen: v7x
topology: tpu7x:2x2x1
jax: 0.10.0
libtpu: 0.0.40
codegen_flags: <defaults>
</compile_context>

<pallas_src>
import functools

import jax
import jax.numpy as jnp
from jax.experimental import pallas as pl
from jax.experimental.pallas import tpu as pltpu


def _round_up(x, m):
    return ((x + m - 1) // m) * m


def _conv_tap_kernel(xa_ref, xb_ref, w_ref, mask_ref, y_ref, s1_ref, s2_ref,
                     win_ref, *, tap_offsets, halo, tile):
    # xa_ref / xb_ref: (Cin, TM)  -> flat blocks i and i+1 of the padded activation
    # w_ref          : (27, Cout, Cin) per-tap filters (resident)
    # mask_ref       : (1, TM) 1.0 on real (interior) output voxels, 0.0 elsewhere
    # y_ref          : (Cout, TM) conv output tile (lane-dense)
    # s1_ref/s2_ref  : (Cout, 1) masked per-tile sum / sum-of-squares (BN stats)
    # win_ref        : (Cin, 2*TM) VMEM window scratch
    win_ref[:, :tile] = xa_ref[...]
    win_ref[:, tile:] = xb_ref[...]

    cout = w_ref.shape[1]
    acc = jnp.zeros((cout, tile), dtype=jnp.float32)
    for t, off in enumerate(tap_offsets):
        start = halo + off                              # static python int in [0, 2*halo]
        src = win_ref[:, start:start + tile]            # (Cin, TM) shifted window
        acc = acc + jnp.dot(w_ref[t], src, preferred_element_type=jnp.float32)

    y_ref[...] = acc
    m = mask_ref[...]                                   # (1, TM)
    s1_ref[...] = jnp.sum(acc * m, axis=1, keepdims=True)
    s2_ref[...] = jnp.sum(acc * acc * m, axis=1, keepdims=True)


def _bn_relu_kernel(y_ref, scale_ref, shift_ref, o_ref):
    # y_ref: (Cout, TM) lane-dense; scale/shift: (Cout, 1) folded BN affine
    o_ref[...] = jnp.maximum(y_ref[...] * scale_ref[...] + shift_ref[...], 0.0)


@functools.partial(jax.jit, static_argnames=("eps",))
def upconv_forward(x, w, b, gamma, beta, eps=1e-5):
    """x: (N, Cin, D, H, W) f32.  w: (Cout, Cin, 3, 3, 3).  Returns (N, Cout, 2D, 2H, 2W)."""
    N, Cin, D, H, W = x.shape
    Cout = w.shape[0]
    del b  # conv bias cancels exactly under train-mode BatchNorm (mean-subtracted)

    Du, Hu, Wu = 2 * D, 2 * H, 2 * W
    Dp, Hp, Wp = Du + 2, Hu + 2, Wu + 2                 # zero-padded (by 1) upsampled dims
    P = Dp * Hp * Wp                                    # flat padded volume
    G = Hp * Wp + Wp + 1                                # max |flat offset| of a 3x3x3 tap

    TM = max(1024, _round_up(2 * G, 128))               # lane-dense tile; halo fits 2 blocks
    assert TM % 128 == 0 and TM >= 2 * G
    Pq = _round_up(P, TM)                               # tiled flat extent (tail is masked)
    n_tiles = Pq // TM
    L = Pq + TM                                         # stored flat length (front pad G)

    # --- glue: nearest-neighbor x2 upsample, pad by 1, flatten (single XLA copies) ---
    xu = jnp.repeat(jnp.repeat(jnp.repeat(x, 2, axis=2), 2, axis=3), 2, axis=4)
    xp = jnp.pad(xu, ((0, 0), (0, 0), (1, 1), (1, 1), (1, 1)))
    x_flat = xp.reshape(N, Cin, P).astype(jnp.float32)
    x_flat = jnp.pad(x_flat, ((0, 0), (0, 0), (G, L - P - G)))   # (N, Cin, L)

    # per-tap (Cout, Cin) weights + their static flat offsets
    w_taps = jnp.transpose(w, (2, 3, 4, 0, 1)).reshape(27, Cout, Cin).astype(jnp.float32)
    tap_offsets = tuple(
        (kd - 1) * Hp * Wp + (kh - 1) * Wp + (kw - 1)
        for kd in range(3) for kh in range(3) for kw in range(3))

    # validity mask over flat padded positions (1 = real output voxel)
    m3 = jnp.zeros((Dp, Hp, Wp), jnp.float32).at[1:-1, 1:-1, 1:-1].set(1.0)
    mask = jnp.pad(m3.reshape(1, P), ((0, 0), (0, Pq - P)))      # (1, Pq)

    grid = (N, n_tiles)

    # --- Pallas kernel 1: fused shift-and-add conv (27 taps) + masked BN partial stats ---
    kernel1 = functools.partial(_conv_tap_kernel, tap_offsets=tap_offsets,
                                halo=G, tile=TM)
    y_full, s1, s2 = pl.pallas_call(
        kernel1,
        out_shape=(
            jax.ShapeDtypeStruct((N, Cout, Pq), jnp.float32),
            jax.ShapeDtypeStruct((N, n_tiles, Cout, 1), jnp.float32),
            jax.ShapeDtypeStruct((N, n_tiles, Cout, 1), jnp.float32),
        ),
        grid_spec=pltpu.PrefetchScalarGridSpec(
            num_scalar_prefetch=0,
            grid=grid,
            in_specs=[
                pl.BlockSpec((None, Cin, TM), lambda n, i: (n, 0, i)),      # flat block i
                pl.BlockSpec((None, Cin, TM), lambda n, i: (n, 0, i + 1)),  # flat block i+1
                pl.BlockSpec((27, Cout, Cin), lambda n, i: (0, 0, 0)),      # weights, resident
                pl.BlockSpec((1, TM), lambda n, i: (0, i)),                 # interior mask
            ],
            out_specs=[
                pl.BlockSpec((None, Cout, TM), lambda n, i: (n, 0, i)),
                pl.BlockSpec((None, None, Cout, 1), lambda n, i: (n, i, 0, 0)),
                pl.BlockSpec((None, None, Cout, 1), lambda n, i: (n, i, 0, 0)),
            ],
            scratch_shapes=[pltpu.VMEM((Cin, 2 * TM), jnp.float32)],
        ),
        compiler_params=pltpu.CompilerParams(
            dimension_semantics=("parallel", "parallel")),
    )(x_flat, x_flat, w_taps, mask)

    # --- glue: reduce the tiny partial stats, fold BN into per-channel scale/shift ---
    count = float(N * Du * Hu * Wu)
    s1t = jnp.sum(s1, axis=(0, 1))[:, 0]                 # (Cout,)
    s2t = jnp.sum(s2, axis=(0, 1))[:, 0]
    mean = s1t / count
    var = jnp.maximum(s2t / count - mean * mean, 0.0)    # biased var, as PyTorch normalizes
    inv_std = gamma.astype(jnp.float32) / jnp.sqrt(var + eps)
    scale = inv_std.reshape(Cout, 1)
    shift = (beta.astype(jnp.float32) - mean * inv_std).reshape(Cout, 1)

    # --- Pallas kernel 2: fused BN (affine) + ReLU, lane-dense tiles ---
    act = pl.pallas_call(
        _bn_relu_kernel,
        out_shape=jax.ShapeDtypeStruct((N, Cout, Pq), jnp.float32),
        grid_spec=pltpu.PrefetchScalarGridSpec(
            num_scalar_prefetch=0,
            grid=grid,
            in_specs=[
                pl.BlockSpec((None, Cout, TM), lambda n, i: (n, 0, i)),
                pl.BlockSpec((Cout, 1), lambda n, i: (0, 0)),
                pl.BlockSpec((Cout, 1), lambda n, i: (0, 0)),
            ],
            out_specs=pl.BlockSpec((None, Cout, TM), lambda n, i: (n, 0, i)),
        ),
        compiler_params=pltpu.CompilerParams(
            dimension_semantics=("parallel", "parallel")),
    )(y_full, scale, shift)

    # --- glue: crop the interior of the padded flat volume -> NCDHW output ---
    out = act[:, :, :P].reshape(N, Cout, Dp, Hp, Wp)
    out = out[:, :, 1:Du + 1, 1:Hu + 1, 1:Wu + 1]
    return out


def _reference(x, w, b, gamma, beta, eps=1e-5):
    """Pure-JAX reference mirroring the PyTorch module forward (train-mode BN)."""
    xu = jnp.repeat(jnp.repeat(jnp.repeat(x, 2, axis=2), 2, axis=3), 2, axis=4)
    y = jax.lax.conv_general_dilated(
        xu, w, window_strides=(1, 1, 1),
        padding=((1, 1), (1, 1), (1, 1)),
        dimension_numbers=("NCDHW", "OIDHW", "NCDHW"))
    y = y + b.reshape(1, -1, 1, 1, 1)
    mean = jnp.mean(y, axis=(0, 2, 3, 4), keepdims=True)
    var = jnp.mean(jnp.square(y - mean), axis=(0, 2, 3, 4), keepdims=True)
    yn = (y - mean) / jnp.sqrt(var + eps)
    yn = yn * gamma.reshape(1, -1, 1, 1, 1) + beta.reshape(1, -1, 1, 1, 1)
    return jnp.maximum(yn, 0.0)


if __name__ == "__main__":
    key = jax.random.PRNGKey(0)
    k_x, k_w, k_b = jax.random.split(key, 3)

    N, CH_IN, CH_OUT = 2, 4, 8
    D = H = W = 8  # upsampled to 16^3 inside the module

    x = jax.random.normal(k_x, (N, CH_IN, D, H, W), dtype=jnp.float32)
    w = 0.1 * jax.random.normal(k_w, (CH_OUT, CH_IN, 3, 3, 3), dtype=jnp.float32)
    b = 0.1 * jax.random.normal(k_b, (CH_OUT,), dtype=jnp.float32)
    gamma = jnp.ones((CH_OUT,), dtype=jnp.float32)   # BatchNorm3d default init
    beta = jnp.zeros((CH_OUT,), dtype=jnp.float32)

    out = upconv_forward(x, w, b, gamma, beta)
    out = jax.block_until_ready(out)

    ref = _reference(x, w, b, gamma, beta)
    assert out.shape == (N, CH_OUT, 2 * D, 2 * H, 2 * W), out.shape
    assert jnp.allclose(out, ref, atol=2e-3, rtol=2e-3), float(jnp.max(jnp.abs(out - ref)))

    print("KERNEL_OK")
</pallas_src>

<mosaic_0001>
module attributes {stable_mosaic.version = 11 : i64} {
  func.func @_conv_tap_kernel(%arg0: i32, %arg1: i32, %arg2: memref<1x4x1024xf32, #tpu.memory_space<vmem>>, %arg3: memref<1x4x1024xf32, #tpu.memory_space<vmem>>, %arg4: memref<27x8x4xf32, #tpu.memory_space<vmem>>, %arg5: memref<1x1024xf32, #tpu.memory_space<vmem>>, %arg6: memref<1x8x1024xf32, #tpu.memory_space<vmem>>, %arg7: memref<1x1x8x1xf32, #tpu.memory_space<vmem>>, %arg8: memref<1x1x8x1xf32, #tpu.memory_space<vmem>>, %arg9: memref<4x2048xf32, #tpu.memory_space<vmem>>) attributes {dimension_semantics = [#tpu.dimension_semantics<parallel>, #tpu.dimension_semantics<parallel>], iteration_bounds = array<i64: 2, 6>, scalar_prefetch = 0 : i64, scratch_operands = 1 : i64, tpu.core_type = #tpu.core_type<tc>, window_params = [{transform_indices = @transform_0, window_bounds = array<i64: 1, 4, 1024>}, {transform_indices = @transform_1, window_bounds = array<i64: 1, 4, 1024>}, {pipeline_mode = #tpu.pipeline_mode<synchronous>, transform_indices = @transform_2, window_bounds = array<i64: 27, 8, 4>}, {transform_indices = @transform_3, window_bounds = array<i64: 1, 1024>}, {transform_indices = @transform_4, window_bounds = array<i64: 1, 8, 1024>}, {transform_indices = @transform_5, window_bounds = array<i64: 1, 1, 8, 1>}, {transform_indices = @transform_6, window_bounds = array<i64: 1, 1, 8, 1>}]} {
    %c0 = arith.constant 0 : index
    %c0_0 = arith.constant 0 : index
    %c0_1 = arith.constant 0 : index
    %0 = vector.load %arg2[%c0, %c0_0, %c0_1] : memref<1x4x1024xf32, #tpu.memory_space<vmem>>, vector<1x4x1024xf32>
    %1 = vector.shape_cast %0 : vector<1x4x1024xf32> to vector<4x1024xf32>
    %c0_2 = arith.constant 0 : index
    %c0_3 = arith.constant 0 : index
    %2 = vector.load %arg9[%c0_2, %c0_3] : memref<4x2048xf32, #tpu.memory_space<vmem>>, vector<4x1024xf32>
    tpu.vector_store %arg9[%c0_2, %c0_3], %1 {strides = array<i32>} : memref<4x2048xf32, #tpu.memory_space<vmem>>, vector<4x1024xf32>,
    %c0_4 = arith.constant 0 : index
    %c0_5 = arith.constant 0 : index
    %c0_6 = arith.constant 0 : index
    %3 = vector.load %arg3[%c0_4, %c0_5, %c0_6] : memref<1x4x1024xf32, #tpu.memory_space<vmem>>, vector<1x4x1024xf32>
    %4 = vector.shape_cast %3 : vector<1x4x1024xf32> to vector<4x1024xf32>
    %c0_7 = arith.constant 0 : index
    %c1024 = arith.constant 1024 : index
    %5 = vector.load %arg9[%c0_7, %c1024] : memref<4x2048xf32, #tpu.memory_space<vmem>>, vector<4x1024xf32>
    tpu.vector_store %arg9[%c0_7, %c1024], %4 {strides = array<i32>} : memref<4x2048xf32, #tpu.memory_space<vmem>>, vector<4x1024xf32>,
    %cst = arith.constant 0.000000e+00 : f32
    %6 = vector.broadcast %cst : f32 to vector<8x1024xf32>
    %c0_8 = arith.constant 0 : index
    %c0_9 = arith.constant 0 : index
    %7 = vector.load %arg9[%c0_8, %c0_9] : memref<4x2048xf32, #tpu.memory_space<vmem>>, vector<4x1024xf32>
    %c0_10 = arith.constant 0 : index
    %c0_11 = arith.constant 0 : index
    %c0_12 = arith.constant 0 : index
    %8 = vector.load %arg4[%c0_10, %c0_11, %c0_12] : memref<27x8x4xf32, #tpu.memory_space<vmem>>, vector<1x8x4xf32>
    %9 = vector.shape_cast %8 : vector<1x8x4xf32> to vector<8x4xf32>
    %cst_13 = arith.constant dense<0.000000e+00> : vector<8x1024xf32>
    %10 = tpu.matmul %9, %7, %cst_13 {dimension_numbers = #tpu.dot_dimension_numbers<[1], [0], [0], [1], [0, 0, 1, 1], [], []>} : vector<8x4xf32>, vector<4x1024xf32>, vector<8x1024xf32> -> vector<8x1024xf32>
    %11 = arith.addf %6, %10 : vector<8x1024xf32>
    %c0_14 = arith.constant 0 : index
    %c1 = arith.constant 1 : index
    %12 = vector.load %arg9[%c0_14, %c1] : memref<4x2048xf32, #tpu.memory_space<vmem>>, vector<4x1024xf32>
    %c1_15 = arith.constant 1 : index
    %c0_16 = arith.constant 0 : index
    %c0_17 = arith.constant 0 : index
    %13 = vector.load %arg4[%c1_15, %c0_16, %c0_17] : memref<27x8x4xf32, #tpu.memory_space<vmem>>, vector<1x8x4xf32>
    %14 = vector.shape_cast %13 : vector<1x8x4xf32> to vector<8x4xf32>
    %cst_18 = arith.constant dense<0.000000e+00> : vector<8x1024xf32>
    %15 = tpu.matmul %14, %12, %cst_18 {dimension_numbers = #tpu.dot_dimension_numbers<[1], [0], [0], [1], [0, 0, 1, 1], [], []>} : vector<8x4xf32>, vector<4x1024xf32>, vector<8x1024xf32> -> vector<8x1024xf32>
    %16 = arith.addf %11, %15 : vector<8x1024xf32>
    %c0_19 = arith.constant 0 : index
    %c2 = arith.constant 2 : index
    %17 = vector.load %arg9[%c0_19, %c2] : memref<4x2048xf32, #tpu.memory_space<vmem>>, vector<4x1024xf32>
    %c2_20 = arith.constant 2 : index
    %c0_21 = arith.constant 0 : index
    %c0_22 = arith.constant 0 : index
    %18 = vector.load %arg4[%c2_20, %c0_21, %c0_22] : memref<27x8x4xf32, #tpu.memory_space<vmem>>, vector<1x8x4xf32>
    %19 = vector.shape_cast %18 : vector<1x8x4xf32> to vector<8x4xf32>
    %cst_23 = arith.constant dense<0.000000e+00> : vector<8x1024xf32>
    %20 = tpu.matmul %19, %17, %cst_23 {dimension_numbers = #tpu.dot_dimension_numbers<[1], [0], [0], [1], [0, 0, 1, 1], [], []>} : vector<8x4xf32>, vector<4x1024xf32>, vector<8x1024xf32> -> vector<8x1024xf32>
    %21 = arith.addf %16, %20 : vector<8x1024xf32>
    %c0_24 = arith.constant 0 : index
    %c18 = arith.constant 18 : index
    %22 = vector.load %arg9[%c0_24, %c18] : memref<4x2048xf32, #tpu.memory_space<vmem>>, vector<4x1024xf32>
    %c3 = arith.constant 3 : index
    %c0_25 = arith.constant 0 : index
    %c0_26 = arith.constant 0 : index
    %23 = vector.load %arg4[%c3, %c0_25, %c0_26] : memref<27x8x4xf32, #tpu.memory_space<vmem>>, vector<1x8x4xf32>
    %24 = vector.shape_cast %23 : vector<1x8x4xf32> to vector<8x4xf32>
    %cst_27 = arith.constant dense<0.000000e+00> : vector<8x1024xf32>
    %25 = tpu.matmul %24, %22, %cst_27 {dimension_numbers = #tpu.dot_dimension_numbers<[1], [0], [0], [1], [0, 0, 1, 1], [], []>} : vector<8x4xf32>, vector<4x1024xf32>, vector<8x1024xf32> -> vector<8x1024xf32>
    %26 = arith.addf %21, %25 : vector<8x1024xf32>
    %c0_28 = arith.constant 0 : index
    %c19 = arith.constant 19 : index
    %27 = vector.load %arg9[%c0_28, %c19] : memref<4x2048xf32, #tpu.memory_space<vmem>>, vector<4x1024xf32>
    %c4 = arith.constant 4 : index
    %c0_29 = arith.constant 0 : index
    %c0_30 = arith.constant 0 : index
    %28 = vector.load %arg4[%c4, %c0_29, %c0_30] : memref<27x8x4xf32, #tpu.memory_space<vmem>>, vector<1x8x4xf32>
    %29 = vector.shape_cast %28 : vector<1x8x4xf32> to vector<8x4xf32>
    %cst_31 = arith.constant dense<0.000000e+00> : vector<8x1024xf32>
    %30 = tpu.matmul %29, %27, %cst_31 {dimension_numbers = #tpu.dot_dimension_numbers<[1], [0], [0], [1], [0, 0, 1, 1], [], []>} : vector<8x4xf32>, vector<4x1024xf32>, vector<8x1024xf32> -> vector<8x1024xf32>
    %31 = arith.addf %26, %30 : vector<8x1024xf32>
    %c0_32 = arith.constant 0 : index
    %c20 = arith.constant 20 : index
    %32 = vector.load %arg9[%c0_32, %c20] : memref<4x2048xf32, #tpu.memory_space<vmem>>, vector<4x1024xf32>
    %c5 = arith.constant 5 : index
    %c0_33 = arith.constant 0 : index
    %c0_34 = arith.constant 0 : index
    %33 = vector.load %arg4[%c5, %c0_33, %c0_34] : memref<27x8x4xf32, #tpu.memory_space<vmem>>, vector<1x8x4xf32>
    %34 = vector.shape_cast %33 : vector<1x8x4xf32> to vector<8x4xf32>
    %cst_35 = arith.constant dense<0.000000e+00> : vector<8x1024xf32>
    %35 = tpu.matmul %34, %32, %cst_35 {dimension_numbers = #tpu.dot_dimension_numbers<[1], [0], [0], [1], [0, 0, 1, 1], [], []>} : vector<8x4xf32>, vector<4x1024xf32>, vector<8x1024xf32> -> vector<8x1024xf32>
    %36 = arith.addf %31, %35 : vector<8x1024xf32>
    %c0_36 = arith.constant 0 : index
    %c36 = arith.constant 36 : index
    %37 = vector.load %arg9[%c0_36, %c36] : memref<4x2048xf32, #tpu.memory_space<vmem>>, vector<4x1024xf32>
    %c6 = arith.constant 6 : index
    %c0_37 = arith.constant 0 : index
    %c0_38 = arith.constant 0 : index
    %38 = vector.load %arg4[%c6, %c0_37, %c0_38] : memref<27x8x4xf32, #tpu.memory_space<vmem>>, vector<1x8x4xf32>
    %39 = vector.shape_cast %38 : vector<1x8x4xf32> to vector<8x4xf32>
    %cst_39 = arith.constant dense<0.000000e+00> : vector<8x1024xf32>
    %40 = tpu.matmul %39, %37, %cst_39 {dimension_numbers = #tpu.dot_dimension_numbers<[1], [0], [0], [1], [0, 0, 1, 1], [], []>} : vector<8x4xf32>, vector<4x1024xf32>, vector<8x1024xf32> -> vector<8x1024xf32>
    %41 = arith.addf %36, %40 : vector<8x1024xf32>
    %c0_40 = arith.constant 0 : index
    %c37 = arith.constant 37 : index
    %42 = vector.load %arg9[%c0_40, %c37] : memref<4x2048xf32, #tpu.memory_space<vmem>>, vector<4x1024xf32>
    %c7 = arith.constant 7 : index
    %c0_41 = arith.constant 0 : index
    %c0_42 = arith.constant 0 : index
    %43 = vector.load %arg4[%c7, %c0_41, %c0_42] : memref<27x8x4xf32, #tpu.memory_space<vmem>>, vector<1x8x4xf32>
    %44 = vector.shape_cast %43 : vector<1x8x4xf32> to vector<8x4xf32>
    %cst_43 = arith.constant dense<0.000000e+00> : vector<8x1024xf32>
    %45 = tpu.matmul %44, %42, %cst_43 {dimension_numbers = #tpu.dot_dimension_numbers<[1], [0], [0], [1], [0, 0, 1, 1], [], []>} : vector<8x4xf32>, vector<4x1024xf32>, vector<8x1024xf32> -> vector<8x1024xf32>
    %46 = arith.addf %41, %45 : vector<8x1024xf32>
    %c0_44 = arith.constant 0 : index
    %c38 = arith.constant 38 : index
    %47 = vector.load %arg9[%c0_44, %c38] : memref<4x2048xf32, #tpu.memory_space<vmem>>, vector<4x1024xf32>
    %c8 = arith.constant 8 : index
    %c0_45 = arith.constant 0 : index
    %c0_46 = arith.constant 0 : index
    %48 = vector.load %arg4[%c8, %c0_45, %c0_46] : memref<27x8x4xf32, #tpu.memory_space<vmem>>, vector<1x8x4xf32>
    %49 = vector.shape_cast %48 : vector<1x8x4xf32> to vector<8x4xf32>
    %cst_47 = arith.constant dense<0.000000e+00> : vector<8x1024xf32>
    %50 = tpu.matmul %49, %47, %cst_47 {dimension_numbers = #tpu.dot_dimension_numbers<[1], [0], [0], [1], [0, 0, 1, 1], [], []>} : vector<8x4xf32>, vector<4x1024xf32>, vector<8x1024xf32> -> vector<8x1024xf32>
    %51 = arith.addf %46, %50 : vector<8x1024xf32>
    %c0_48 = arith.constant 0 : index
    %c324 = arith.constant 324 : index
    %52 = vector.load %arg9[%c0_48, %c324] : memref<4x2048xf32, #tpu.memory_space<vmem>>, vector<4x1024xf32>
    %c9 = arith.constant 9 : index
    %c0_49 = arith.constant 0 : index
    %c0_50 = arith.constant 0 : index
    %53 = vector.load %arg4[%c9, %c0_49, %c0_50] : memref<27x8x4xf32, #tpu.memory_space<vmem>>, vector<1x8x4xf32>
    %54 = vector.shape_cast %53 : vector<1x8x4xf32> to vector<8x4xf32>
    %cst_51 = arith.constant dense<0.000000e+00> : vector<8x1024xf32>
    %55 = tpu.matmul %54, %52, %cst_51 {dimension_numbers = #tpu.dot_dimension_numbers<[1], [0], [0], [1], [0, 0, 1, 1], [], []>} : vector<8x4xf32>, vector<4x1024xf32>, vector<8x1024xf32> -> vector<8x1024xf32>
    %56 = arith.addf %51, %55 : vector<8x1024xf32>
    %c0_52 = arith.constant 0 : index
    %c325 = arith.constant 325 : index
    %57 = vector.load %arg9[%c0_52, %c325] : memref<4x2048xf32, #tpu.memory_space<vmem>>, vector<4x1024xf32>
    %c10 = arith.constant 10 : index
    %c0_53 = arith.constant 0 : index
    %c0_54 = arith.constant 0 : index
    %58 = vector.load %arg4[%c10, %c0_53, %c0_54] : memref<27x8x4xf32, #tpu.memory_space<vmem>>, vector<1x8x4xf32>
    %59 = vector.shape_cast %58 : vector<1x8x4xf32> to vector<8x4xf32>
    %cst_55 = arith.constant dense<0.000000e+00> : vector<8x1024xf32>
    %60 = tpu.matmul %59, %57, %cst_55 {dimension_numbers = #tpu.dot_dimension_numbers<[1], [0], [0], [1], [0, 0, 1, 1], [], []>} : vector<8x4xf32>, vector<4x1024xf32>, vector<8x1024xf32> -> vector<8x1024xf32>
    %61 = arith.addf %56, %60 : vector<8x1024xf32>
    %c0_56 = arith.constant 0 : index
    %c326 = arith.constant 326 : index
    %62 = vector.load %arg9[%c0_56, %c326] : memref<4x2048xf32, #tpu.memory_space<vmem>>, vector<4x1024xf32>
    %c11 = arith.constant 11 : index
    %c0_57 = arith.constant 0 : index
    %c0_58 = arith.constant 0 : index
    %63 = vector.load %arg4[%c11, %c0_57, %c0_58] : memref<27x8x4xf32, #tpu.memory_space<vmem>>, vector<1x8x4xf32>
    %64 = vector.shape_cast %63 : vector<1x8x4xf32> to vector<8x4xf32>
    %cst_59 = arith.constant dense<0.000000e+00> : vector<8x1024xf32>
    %65 = tpu.matmul %64, %62, %cst_59 {dimension_numbers = #tpu.dot_dimension_numbers<[1], [0], [0], [1], [0, 0, 1, 1], [], []>} : vector<8x4xf32>, vector<4x1024xf32>, vector<8x1024xf32> -> vector<8x1024xf32>
    %66 = arith.addf %61, %65 : vector<8x1024xf32>
    %c0_60 = arith.constant 0 : index
    %c342 = arith.constant 342 : index
    %67 = vector.load %arg9[%c0_60, %c342] : memref<4x2048xf32, #tpu.memory_space<vmem>>, vector<4x1024xf32>
    %c12 = arith.constant 12 : index
    %c0_61 = arith.constant 0 : index
    %c0_62 = arith.constant 0 : index
    %68 = vector.load %arg4[%c12, %c0_61, %c0_62] : memref<27x8x4xf32, #tpu.memory_space<vmem>>, vector<1x8x4xf32>
    %69 = vector.shape_cast %68 : vector<1x8x4xf32> to vector<8x4xf32>
    %cst_63 = arith.constant dense<0.000000e+00> : vector<8x1024xf32>
    %70 = tpu.matmul %69, %67, %cst_63 {dimension_numbers = #tpu.dot_dimension_numbers<[1], [0], [0], [1], [0, 0, 1, 1], [], []>} : vector<8x4xf32>, vector<4x1024xf32>, vector<8x1024xf32> -> vector<8x1024xf32>
    %71 = arith.addf %66, %70 : vector<8x1024xf32>
    %c0_64 = arith.constant 0 : index
    %c343 = arith.constant 343 : index
    %72 = vector.load %arg9[%c0_64, %c343] : memref<4x2048xf32, #tpu.memory_space<vmem>>, vector<4x1024xf32>
    %c13 = arith.constant 13 : index
    %c0_65 = arith.constant 0 : index
    %c0_66 = arith.constant 0 : index
    %73 = vector.load %arg4[%c13, %c0_65, %c0_66] : memref<27x8x4xf32, #tpu.memory_space<vmem>>, vector<1x8x4xf32>
    %74 = vector.shape_cast %73 : vector<1x8x4xf32> to vector<8x4xf32>
    %cst_67 = arith.constant dense<0.000000e+00> : vector<8x1024xf32>
    %75 = tpu.matmul %74, %72, %cst_67 {dimension_numbers = #tpu.dot_dimension_numbers<[1], [0], [0], [1], [0, 0, 1, 1], [], []>} : vector<8x4xf32>, vector<4x1024xf32>, vector<8x1024xf32> -> vector<8x1024xf32>
    %76 = arith.addf %71, %75 : vector<8x1024xf32>
    %c0_68 = arith.constant 0 : index
    %c344 = arith.constant 344 : index
    %77 = vector.load %arg9[%c0_68, %c344] : memref<4x2048xf32, #tpu.memory_space<vmem>>, vector<4x1024xf32>
    %c14 = arith.constant 14 : index
    %c0_69 = arith.constant 0 : index
    %c0_70 = arith.constant 0 : index
    %78 = vector.load %arg4[%c14, %c0_69, %c0_70] : memref<27x8x4xf32, #tpu.memory_space<vmem>>, vector<1x8x4xf32>
    %79 = vector.shape_cast %78 : vector<1x8x4xf32> to vector<8x4xf32>
    %cst_71 = arith.constant dense<0.000000e+00> : vector<8x1024xf32>
    %80 = tpu.matmul %79, %77, %cst_71 {dimension_numbers = #tpu.dot_dimension_numbers<[1], [0], [0], [1], [0, 0, 1, 1], [], []>} : vector<8x4xf32>, vector<4x1024xf32>, vector<8x1024xf32> -> vector<8x1024xf32>
    %81 = arith.addf %76, %80 : vector<8x1024xf32>
    %c0_72 = arith.constant 0 : index
    %c360 = arith.constant 360 : index
    %82 = vector.load %arg9[%c0_72, %c360] : memref<4x2048xf32, #tpu.memory_space<vmem>>, vector<4x1024xf32>
    %c15 = arith.constant 15 : index
    %c0_73 = arith.constant 0 : index
    %c0_74 = arith.constant 0 : index
    %83 = vector.load %arg4[%c15, %c0_73, %c0_74] : memref<27x8x4xf32, #tpu.memory_space<vmem>>, vector<1x8x4xf32>
    %84 = vector.shape_cast %83 : vector<1x8x4xf32> to vector<8x4xf32>
    %cst_75 = arith.constant dense<0.000000e+00> : vector<8x1024xf32>
    %85 = tpu.matmul %84, %82, %cst_75 {dimension_numbers = #tpu.dot_dimension_numbers<[1], [0], [0], [1], [0, 0, 1, 1], [], []>} : vector<8x4xf32>, vector<4x1024xf32>, vector<8x1024xf32> -> vector<8x1024xf32>
    %86 = arith.addf %81, %85 : vector<8x1024xf32>
    %c0_76 = arith.constant 0 : index
    %c361 = arith.constant 361 : index
    %87 = vector.load %arg9[%c0_76, %c361] : memref<4x2048xf32, #tpu.memory_space<vmem>>, vector<4x1024xf32>
    %c16 = arith.constant 16 : index
    %c0_77 = arith.constant 0 : index
    %c0_78 = arith.constant 0 : index
    %88 = vector.load %arg4[%c16, %c0_77, %c0_78] : memref<27x8x4xf32, #tpu.memory_space<vmem>>, vector<1x8x4xf32>
    %89 = vector.shape_cast %88 : vector<1x8x4xf32> to vector<8x4xf32>
    %cst_79 = arith.constant dense<0.000000e+00> : vector<8x1024xf32>
    %90 = tpu.matmul %89, %87, %cst_79 {dimension_numbers = #tpu.dot_dimension_numbers<[1], [0], [0], [1], [0, 0, 1, 1], [], []>} : vector<8x4xf32>, vector<4x1024xf32>, vector<8x1024xf32> -> vector<8x1024xf32>
    %91 = arith.addf %86, %90 : vector<8x1024xf32>
    %c0_80 = arith.constant 0 : index
    %c362 = arith.constant 362 : index
    %92 = vector.load %arg9[%c0_80, %c362] : memref<4x2048xf32, #tpu.memory_space<vmem>>, vector<4x1024xf32>
    %c17 = arith.constant 17 : index
    %c0_81 = arith.constant 0 : index
    %c0_82 = arith.constant 0 : index
    %93 = vector.load %arg4[%c17, %c0_81, %c0_82] : memref<27x8x4xf32, #tpu.memory_space<vmem>>, vector<1x8x4xf32>
    %94 = vector.shape_cast %93 : vector<1x8x4xf32> to vector<8x4xf32>
    %cst_83 = arith.constant dense<0.000000e+00> : vector<8x1024xf32>
    %95 = tpu.matmul %94, %92, %cst_83 {dimension_numbers = #tpu.dot_dimension_numbers<[1], [0], [0], [1], [0, 0, 1, 1], [], []>} : vector<8x4xf32>, vector<4x1024xf32>, vector<8x1024xf32> -> vector<8x1024xf32>
    %96 = arith.addf %91, %95 : vector<8x1024xf32>
    %c0_84 = arith.constant 0 : index
    %c648 = arith.constant 648 : index
    %97 = vector.load %arg9[%c0_84, %c648] : memref<4x2048xf32, #tpu.memory_space<vmem>>, vector<4x1024xf32>
    %c18_85 = arith.constant 18 : index
    %c0_86 = arith.constant 0 : index
    %c0_87 = arith.constant 0 : index
    %98 = vector.load %arg4[%c18_85, %c0_86, %c0_87] : memref<27x8x4xf32, #tpu.memory_space<vmem>>, vector<1x8x4xf32>
    %99 = vector.shape_cast %98 : vector<1x8x4xf32> to vector<8x4xf32>
    %cst_88 = arith.constant dense<0.000000e+00> : vector<8x1024xf32>
    %100 = tpu.matmul %99, %97, %cst_88 {dimension_numbers = #tpu.dot_dimension_numbers<[1], [0], [0], [1], [0, 0, 1, 1], [], []>} : vector<8x4xf32>, vector<4x1024xf32>, vector<8x1024xf32> -> vector<8x1024xf32>
    %101 = arith.addf %96, %100 : vector<8x1024xf32>
    %c0_89 = arith.constant 0 : index
    %c649 = arith.constant 649 : index
    %102 = vector.load %arg9[%c0_89, %c649] : memref<4x2048xf32, #tpu.memory_space<vmem>>, vector<4x1024xf32>
    %c19_90 = arith.constant 19 : index
    %c0_91 = arith.constant 0 : index
    %c0_92 = arith.constant 0 : index
    %103 = vector.load %arg4[%c19_90, %c0_91, %c0_92] : memref<27x8x4xf32, #tpu.memory_space<vmem>>, vector<1x8x4xf32>
    %104 = vector.shape_cast %103 : vector<1x8x4xf32> to vector<8x4xf32>
    %cst_93 = arith.constant dense<0.000000e+00> : vector<8x1024xf32>
    %105 = tpu.matmul %104, %102, %cst_93 {dimension_numbers = #tpu.dot_dimension_numbers<[1], [0], [0], [1], [0, 0, 1, 1], [], []>} : vector<8x4xf32>, vector<4x1024xf32>, vector<8x1024xf32> -> vector<8x1024xf32>
    %106 = arith.addf %101, %105 : vector<8x1024xf32>
    %c0_94 = arith.constant 0 : index
    %c650 = arith.constant 650 : index
    %107 = vector.load %arg9[%c0_94, %c650] : memref<4x2048xf32, #tpu.memory_space<vmem>>, vector<4x1024xf32>
    %c20_95 = arith.constant 20 : index
    %c0_96 = arith.constant 0 : index
    %c0_97 = arith.constant 0 : index
    %108 = vector.load %arg4[%c20_95, %c0_96, %c0_97] : memref<27x8x4xf32, #tpu.memory_space<vmem>>, vector<1x8x4xf32>
    %109 = vector.shape_cast %108 : vector<1x8x4xf32> to vector<8x4xf32>
    %cst_98 = arith.constant dense<0.000000e+00> : vector<8x1024xf32>
    %110 = tpu.matmul %109, %107, %cst_98 {dimension_numbers = #tpu.dot_dimension_numbers<[1], [0], [0], [1], [0, 0, 1, 1], [], []>} : vector<8x4xf32>, vector<4x1024xf32>, vector<8x1024xf32> -> vector<8x1024xf32>
    %111 = arith.addf %106, %110 : vector<8x1024xf32>
    %c0_99 = arith.constant 0 : index
    %c666 = arith.constant 666 : index
    %112 = vector.load %arg9[%c0_99, %c666] : memref<4x2048xf32, #tpu.memory_space<vmem>>, vector<4x1024xf32>
    %c21 = arith.constant 21 : index
    %c0_100 = arith.constant 0 : index
    %c0_101 = arith.constant 0 : index
    %113 = vector.load %arg4[%c21, %c0_100, %c0_101] : memref<27x8x4xf32, #tpu.memory_space<vmem>>, vector<1x8x4xf32>
    %114 = vector.shape_cast %113 : vector<1x8x4xf32> to vector<8x4xf32>
    %cst_102 = arith.constant dense<0.000000e+00> : vector<8x1024xf32>
    %115 = tpu.matmul %114, %112, %cst_102 {dimension_numbers = #tpu.dot_dimension_numbers<[1], [0], [0], [1], [0, 0, 1, 1], [], []>} : vector<8x4xf32>, vector<4x1024xf32>, vector<8x1024xf32> -> vector<8x1024xf32>
    %116 = arith.addf %111, %115 : vector<8x1024xf32>
    %c0_103 = arith.constant 0 : index
    %c667 = arith.constant 667 : index
    %117 = vector.load %arg9[%c0_103, %c667] : memref<4x2048xf32, #tpu.memory_space<vmem>>, vector<4x1024xf32>
    %c22 = arith.constant 22 : index
    %c0_104 = arith.constant 0 : index
    %c0_105 = arith.constant 0 : index
    %118 = vector.load %arg4[%c22, %c0_104, %c0_105] : memref<27x8x4xf32, #tpu.memory_space<vmem>>, vector<1x8x4xf32>
    %119 = vector.shape_cast %118 : vector<1x8x4xf32> to vector<8x4xf32>
    %cst_106 = arith.constant dense<0.000000e+00> : vector<8x1024xf32>
    %120 = tpu.matmul %119, %117, %cst_106 {dimension_numbers = #tpu.dot_dimension_numbers<[1], [0], [0], [1], [0, 0, 1, 1], [], []>} : vector<8x4xf32>, vector<4x1024xf32>, vector<8x1024xf32> -> vector<8x1024xf32>
    %121 = arith.addf %116, %120 : vector<8x1024xf32>
    %c0_107 = arith.constant 0 : index
    %c668 = arith.constant 668 : index
    %122 = vector.load %arg9[%c0_107, %c668] : memref<4x2048xf32, #tpu.memory_space<vmem>>, vector<4x1024xf32>
    %c23 = arith.constant 23 : index
    %c0_108 = arith.constant 0 : index
    %c0_109 = arith.constant 0 : index
    %123 = vector.load %arg4[%c23, %c0_108, %c0_109] : memref<27x8x4xf32, #tpu.memory_space<vmem>>, vector<1x8x4xf32>
    %124 = vector.shape_cast %123 : vector<1x8x4xf32> to vector<8x4xf32>
    %cst_110 = arith.constant dense<0.000000e+00> : vector<8x1024xf32>
    %125 = tpu.matmul %124, %122, %cst_110 {dimension_numbers = #tpu.dot_dimension_numbers<[1], [0], [0], [1], [0, 0, 1, 1], [], []>} : vector<8x4xf32>, vector<4x1024xf32>, vector<8x1024xf32> -> vector<8x1024xf32>
    %126 = arith.addf %121, %125 : vector<8x1024xf32>
    %c0_111 = arith.constant 0 : index
    %c684 = arith.constant 684 : index
    %127 = vector.load %arg9[%c0_111, %c684] : memref<4x2048xf32, #tpu.memory_space<vmem>>, vector<4x1024xf32>
    %c24 = arith.constant 24 : index
    %c0_112 = arith.constant 0 : index
    %c0_113 = arith.constant 0 : index
    %128 = vector.load %arg4[%c24, %c0_112, %c0_113] : memref<27x8x4xf32, #tpu.memory_space<vmem>>, vector<1x8x4xf32>
    %129 = vector.shape_cast %128 : vector<1x8x4xf32> to vector<8x4xf32>
    %cst_114 = arith.constant dense<0.000000e+00> : vector<8x1024xf32>
    %130 = tpu.matmul %129, %127, %cst_114 {dimension_numbers = #tpu.dot_dimension_numbers<[1], [0], [0], [1], [0, 0, 1, 1], [], []>} : vector<8x4xf32>, vector<4x1024xf32>, vector<8x1024xf32> -> vector<8x1024xf32>
    %131 = arith.addf %126, %130 : vector<8x1024xf32>
    %c0_115 = arith.constant 0 : index
    %c685 = arith.constant 685 : index
    %132 = vector.load %arg9[%c0_115, %c685] : memref<4x2048xf32, #tpu.memory_space<vmem>>, vector<4x1024xf32>
    %c25 = arith.constant 25 : index
    %c0_116 = arith.constant 0 : index
    %c0_117 = arith.constant 0 : index
    %133 = vector.load %arg4[%c25, %c0_116, %c0_117] : memref<27x8x4xf32, #tpu.memory_space<vmem>>, vector<1x8x4xf32>
    %134 = vector.shape_cast %133 : vector<1x8x4xf32> to vector<8x4xf32>
    %cst_118 = arith.constant dense<0.000000e+00> : vector<8x1024xf32>
    %135 = tpu.matmul %134, %132, %cst_118 {dimension_numbers = #tpu.dot_dimension_numbers<[1], [0], [0], [1], [0, 0, 1, 1], [], []>} : vector<8x4xf32>, vector<4x1024xf32>, vector<8x1024xf32> -> vector<8x1024xf32>
    %136 = arith.addf %131, %135 : vector<8x1024xf32>
    %c0_119 = arith.constant 0 : index
    %c686 = arith.constant 686 : index
    %137 = vector.load %arg9[%c0_119, %c686] : memref<4x2048xf32, #tpu.memory_space<vmem>>, vector<4x1024xf32>
    %c26 = arith.constant 26 : index
    %c0_120 = arith.constant 0 : index
    %c0_121 = arith.constant 0 : index
    %138 = vector.load %arg4[%c26, %c0_120, %c0_121] : memref<27x8x4xf32, #tpu.memory_space<vmem>>, vector<1x8x4xf32>
    %139 = vector.shape_cast %138 : vector<1x8x4xf32> to vector<8x4xf32>
    %cst_122 = arith.constant dense<0.000000e+00> : vector<8x1024xf32>
    %140 = tpu.matmul %139, %137, %cst_122 {dimension_numbers = #tpu.dot_dimension_numbers<[1], [0], [0], [1], [0, 0, 1, 1], [], []>} : vector<8x4xf32>, vector<4x1024xf32>, vector<8x1024xf32> -> vector<8x1024xf32>
    %141 = arith.addf %136, %140 : vector<8x1024xf32>
    %c0_123 = arith.constant 0 : index
    %c0_124 = arith.constant 0 : index
    %c0_125 = arith.constant 0 : index
    %142 = vector.load %arg6[%c0_123, %c0_124, %c0_125] : memref<1x8x1024xf32, #tpu.memory_space<vmem>>, vector<1x8x1024xf32>
    %143 = vector.shape_cast %142 : vector<1x8x1024xf32> to vector<8x1024xf32>
    %144 = vector.shape_cast %141 : vector<8x1024xf32> to vector<1x8x1024xf32>
    tpu.vector_store %arg6[%c0_123, %c0_124, %c0_125], %144 {strides = array<i32>} : memref<1x8x1024xf32, #tpu.memory_space<vmem>>, vector<1x8x1024xf32>,
    %c0_126 = arith.constant 0 : index
    %c0_127 = arith.constant 0 : index
    %145 = vector.load %arg5[%c0_126, %c0_127] : memref<1x1024xf32, #tpu.memory_space<vmem>>, vector<1x1024xf32>
    %146 = vector.broadcast %145 : vector<1x1024xf32> to vector<8x1024xf32>
    %147 = arith.mulf %141, %146 : vector<8x1024xf32>
    %cst_128 = arith.constant dense<0.000000e+00> : vector<8xf32>
    %148 = vector.multi_reduction <add>, %147, %cst_128 [1] : vector<8x1024xf32> to vector<8xf32>
    %149 = vector.shape_cast %148 : vector<8xf32> to vector<8x1xf32>
    %c0_129 = arith.constant 0 : index
    %c0_130 = arith.constant 0 : index
    %c0_131 = arith.constant 0 : index
    %c0_132 = arith.constant 0 : index
    %150 = vector.load %arg7[%c0_129, %c0_130, %c0_131, %c0_132] : memref<1x1x8x1xf32, #tpu.memory_space<vmem>>, vector<1x1x8x1xf32>
    %151 = vector.shape_cast %150 : vector<1x1x8x1xf32> to vector<8x1xf32>
    %152 = vector.shape_cast %149 : vector<8x1xf32> to vector<1x1x8x1xf32>
    tpu.vector_store %arg7[%c0_129, %c0_130, %c0_131, %c0_132], %152 {strides = array<i32>} : memref<1x1x8x1xf32, #tpu.memory_space<vmem>>, vector<1x1x8x1xf32>,
    %153 = arith.mulf %141, %141 : vector<8x1024xf32>
    %154 = vector.broadcast %145 : vector<1x1024xf32> to vector<8x1024xf32>
    %155 = arith.mulf %153, %154 : vector<8x1024xf32>
    %cst_133 = arith.constant dense<0.000000e+00> : vector<8xf32>
    %156 = vector.multi_reduction <add>, %155, %cst_133 [1] : vector<8x1024xf32> to vector<8xf32>
    %157 = vector.shape_cast %156 : vector<8xf32> to vector<8x1xf32>
    %c0_134 = arith.constant 0 : index
    %c0_135 = arith.constant 0 : index
    %c0_136 = arith.constant 0 : index
    %c0_137 = arith.constant 0 : index
    %158 = vector.load %arg8[%c0_134, %c0_135, %c0_136, %c0_137] : memref<1x1x8x1xf32, #tpu.memory_space<vmem>>, vector<1x1x8x1xf32>
    %159 = vector.shape_cast %158 : vector<1x1x8x1xf32> to vector<8x1xf32>
    %160 = vector.shape_cast %157 : vector<8x1xf32> to vector<1x1x8x1xf32>
    tpu.vector_store %arg8[%c0_134, %c0_135, %c0_136, %c0_137], %160 {strides = array<i32>} : memref<1x1x8x1xf32, #tpu.memory_space<vmem>>, vector<1x1x8x1xf32>,
    return
  }
  func.func @transform_0(%arg0: i32, %arg1: i32) -> (i32, i32, i32) {
    %c0_i32 = arith.constant 0 : i32
    %c0_i32_0 = arith.constant 0 : i32
    return %arg0, %c0_i32, %arg1 : i32, i32, i32
  }
  func.func @transform_1(%arg0: i32, %arg1: i32) -> (i32, i32, i32) {
    %c1_i32 = arith.constant 1 : i32
    %0 = arith.addi %arg1, %c1_i32 : i32
    %c0_i32 = arith.constant 0 : i32
    %c0_i32_0 = arith.constant 0 : i32
    return %arg0, %c0_i32, %0 : i32, i32, i32
  }
  func.func @transform_2(%arg0: i32, %arg1: i32) -> (i32, i32, i32) {
    %c0_i32 = arith.constant 0 : i32
    %c0_i32_0 = arith.constant 0 : i32
    %c0_i32_1 = arith.constant 0 : i32
    %c0_i32_2 = arith.constant 0 : i32
    return %c0_i32, %c0_i32_0, %c0_i32_1 : i32, i32, i32
  }
  func.func @transform_3(%arg0: i32, %arg1: i32) -> (i32, i32) {
    %c0_i32 = arith.constant 0 : i32
    %c0_i32_0 = arith.constant 0 : i32
    return %c0_i32, %arg1 : i32, i32
  }
  func.func @transform_4(%arg0: i32, %arg1: i32) -> (i32, i32, i32) {
    %c0_i32 = arith.constant 0 : i32
    %c0_i32_0 = arith.constant 0 : i32
    return %arg0, %c0_i32, %arg1 : i32, i32, i32
  }
  func.func @transform_5(%arg0: i32, %arg1: i32) -> (i32, i32, i32, i32) {
    %c0_i32 = arith.constant 0 : i32
    %c0_i32_0 = arith.constant 0 : i32
    %c0_i32_1 = arith.constant 0 : i32
    return %arg0, %arg1, %c0_i32, %c0_i32_0 : i32, i32, i32, i32
  }
  func.func @transform_6(%arg0: i32, %arg1: i32) -> (i32, i32, i32, i32) {
    %c0_i32 = arith.constant 0 : i32
    %c0_i32_0 = arith.constant 0 : i32
    %c0_i32_1 = arith.constant 0 : i32
    return %arg0, %arg1, %c0_i32, %c0_i32_0 : i32, i32, i32, i32
  }
}

module attributes {stable_mosaic.version = 11 : i64} {
  func.func @_bn_relu_kernel(%arg0: i32, %arg1: i32, %arg2: memref<1x8x1024xf32, #tpu.memory_space<vmem>>, %arg3: memref<8x1xf32, #tpu.memory_space<vmem>>, %arg4: memref<8x1xf32, #tpu.memory_space<vmem>>, %arg5: memref<1x8x1024xf32, #tpu.memory_space<vmem>>) attributes {dimension_semantics = [#tpu.dimension_semantics<parallel>, #tpu.dimension_semantics<parallel>], iteration_bounds = array<i64: 2, 6>, scalar_prefetch = 0 : i64, scratch_operands = 0 : i64, tpu.core_type = #tpu.core_type<tc>, window_params = [{transform_indices = @transform_0, window_bounds = array<i64: 1, 8, 1024>}, {pipeline_mode = #tpu.pipeline_mode<synchronous>, transform_indices = @transform_1, window_bounds = array<i64: 8, 1>}, {pipeline_mode = #tpu.pipeline_mode<synchronous>, transform_indices = @transform_2, window_bounds = array<i64: 8, 1>}, {transform_indices = @transform_3, window_bounds = array<i64: 1, 8, 1024>}]} {
    %c0 = arith.constant 0 : index
    %c0_0 = arith.constant 0 : index
    %c0_1 = arith.constant 0 : index
    %0 = vector.load %arg2[%c0, %c0_0, %c0_1] : memref<1x8x1024xf32, #tpu.memory_space<vmem>>, vector<1x8x1024xf32>
    %1 = vector.shape_cast %0 : vector<1x8x1024xf32> to vector<8x1024xf32>
    %c0_2 = arith.constant 0 : index
    %c0_3 = arith.constant 0 : index
    %2 = vector.load %arg3[%c0_2, %c0_3] : memref<8x1xf32, #tpu.memory_space<vmem>>, vector<8x1xf32>
    %3 = vector.broadcast %2 : vector<8x1xf32> to vector<8x1024xf32>
    %4 = arith.mulf %1, %3 : vector<8x1024xf32>
    %c0_4 = arith.constant 0 : index
    %c0_5 = arith.constant 0 : index
    %5 = vector.load %arg4[%c0_4, %c0_5] : memref<8x1xf32, #tpu.memory_space<vmem>>, vector<8x1xf32>
    %6 = vector.broadcast %5 : vector<8x1xf32> to vector<8x1024xf32>
    %7 = arith.addf %4, %6 : vector<8x1024xf32>
    %cst = arith.constant 0.000000e+00 : f32
    %8 = vector.broadcast %cst : f32 to vector<8x1024xf32>
    %9 = arith.maximumf %7, %8 : vector<8x1024xf32>
    %c0_6 = arith.constant 0 : index
    %c0_7 = arith.constant 0 : index
    %c0_8 = arith.constant 0 : index
    %10 = vector.load %arg5[%c0_6, %c0_7, %c0_8] : memref<1x8x1024xf32, #tpu.memory_space<vmem>>, vector<1x8x1024xf32>
    %11 = vector.shape_cast %10 : vector<1x8x1024xf32> to vector<8x1024xf32>
    %12 = vector.shape_cast %9 : vector<8x1024xf32> to vector<1x8x1024xf32>
    tpu.vector_store %arg5[%c0_6, %c0_7, %c0_8], %12 {strides = array<i32>} : memref<1x8x1024xf32, #tpu.memory_space<vmem>>, vector<1x8x1024xf32>,
    return
  }
  func.func @transform_0(%arg0: i32, %arg1: i32) -> (i32, i32, i32) {
    %c0_i32 = arith.constant 0 : i32
    %c0_i32_0 = arith.constant 0 : i32
    return %arg0, %c0_i32, %arg1 : i32, i32, i32
  }
  func.func @transform_1(%arg0: i32, %arg1: i32) -> (i32, i32) {
    %c0_i32 = arith.constant 0 : i32
    %c0_i32_0 = arith.constant 0 : i32
    %c0_i32_1 = arith.constant 0 : i32
    return %c0_i32, %c0_i32_0 : i32, i32
  }
  func.func @transform_2(%arg0: i32, %arg1: i32) -> (i32, i32) {
    %c0_i32 = arith.constant 0 : i32
    %c0_i32_0 = arith.constant 0 : i32
    %c0_i32_1 = arith.constant 0 : i32
    return %c0_i32, %c0_i32_0 : i32, i32
  }
  func.func @transform_3(%arg0: i32, %arg1: i32) -> (i32, i32, i32) {
    %c0_i32 = arith.constant 0 : i32
    %c0_i32_0 = arith.constant 0 : i32
    return %arg0, %c0_i32, %arg1 : i32, i32, i32
  }
}

</mosaic_0001>

<bundles_post_ra>
// kernel: upconv_forward.3
= control target key start
LH: loop header
LB: loop body
LE: loop exit
PB: predicated region body
PF: predicated region fallthrough
CT: control target
= control target key end

     0   :  { %s467_s12 = smov 0   ;;  %s469_s13 = smov 0   ;;  %s524_s0 = inlined_call_operand.vmem [shape: f32[2,8,6144], index: 0, kind: input, shape index: {}]   ;;  %s525_s1 = inlined_call_operand.vmem [shape: f32[8,1], index: 1, kind: input, shape index: {}]   ;;  %s526_s2 = inlined_call_operand.vmem [shape: f32[8,1], index: 2, kind: input, shape index: {}]   ;;  %s527_s3 = inlined_call_operand.vmem [shape: f32[2,8,6144], index: 3, kind: output, shape index: {}]  }
   0x1   :  { %s471_s14 = smov 0   ;;  %s473_s15 = smov 0  }
   0x2   :  { %s475_s16 = smov 0  }
   0x3 LB: > { %s22_s17 = sadd.s32 1, %s436_s14  ;;  %s25_s18 = sadd.s32 1, %s440_s15  ;;  %s444_s16 = sphi %s475_s16, %s13_s16   ;;  %s440_s15 = sphi %s473_s15, %s531_s15   ;;  %s436_s14 = sphi %s471_s14, %s530_s14   ;;  %s432_s13 = sphi %s469_s13, %s529_s13   ;;  %s428_s12 = sphi %s467_s12, %s528_s12  }
   0x4   : > { %p23_p0 = scmp.ge.s32.totalorder %s22_s17, 6  ;;  %p356_p1 = scmp.ge.s32.totalorder %s444_s16, 1 }
   0x5   : > { %p158_p2 = scmp.lt.s32.totalorder %s444_s16, 13 }
   0x6   : > { %s533_s17 = smov (%p23_p0, %s22_s17), 0  ;;  %s535_s18 = smov (!%p23_p0, %s25_s18), %s440_s15 }
   0x7   : > { %p159_p3 = pnand %p356_p1, %p158_p2  ;;  %p27_p4 = scmp.ge.s32.totalorder %s535_s18, 2 }
   0x8   : > { %v218_v0 = vld [vmem:[%s525_s1] sm:$0xff] (!%p159_p3)  ;;  %v446_v1 = vmov (!%p159_p3), 0   ;;  %s357_s23 = sshll.u32 (!%p159_p3), %s428_s12, 3  ;;  %p191_p5 = scmp.lt.s32.totalorder (!%p159_p3), %s432_s13, 1 }
   0x9   : > { %s537_s18 = smov (%p27_p4, %s535_s18), 0  ;;  %162 = sbr.rel (%p159_p3) target bundleno = 151 (0x97), region = 32 }
   0xa   : > { %405 = vset.pattern.permute.xlu0 (!%p159_p3), %v446_v1  ;;  %v232_v2 = vld [vmem:[%s526_s2] sm:$0xff] (!%p159_p3)  ;;  %p193_p6 = scmp.lt.s32.totalorder (!%p159_p3), %s357_s23, 47 }
   0xb   : > { %221 = vperm.xlu0 (!%p159_p3), %405, %v218_v0  }
   0xf   : > { %235 = vperm.xlu0 (!%p159_p3), %405, %v232_v2  }
  0x10   : > { %s539_s13 = smov (!%p191_p5, %s432_s13), 1  ;;  %s541_s23 = smov (!%p193_p6, %s357_s23), 47 }
  0x11   : > { %s363_s24 = smul.u32 48, %s539_s13 }
  0x13   : > { %s196_s25 = sadd.s32 %s363_s24, %s541_s23 }
  0x14   : > { %s358_s26 = sshll.u32 %s196_s25, 3 }
  0x15   : > { %s198_s29 = scalar_lea.vmem %s524_s0, %s358_s26  ;;  %s208_s5 = scalar_lea.vmem %s527_s3, %s358_s26 }
  0x16   : > { %v210_v3 = vld [vmem:[%s198_s29] sm:$0xff]  ;;  %v211_v4 = vld [vmem:[%s198_s29 + $0x8] sm:$0xff]  ;;  %v212_v6 = vld [vmem:[%s198_s29 + $0x10] sm:$0xff] }
  0x17   : > { %v213_v7 = vld [vmem:[%s198_s29 + $0x18] sm:$0xff]  ;;  %v214_v8 = vld [vmem:[%s198_s29 + $0x20] sm:$0xff]  ;;  %v215_v9 = vld [vmem:[%s198_s29 + $0x28] sm:$0xff] }
  0x18   : > { %v216_v10 = vld [vmem:[%s198_s29 + $0x30] sm:$0xff]  ;;  %v217_v11 = vld [vmem:[%s198_s29 + $0x38] sm:$0xff] }
  0x8a   : > { %v222_v5 = vpop.permute.xlu0 %221 }
  0x8b   : > { %v224_v12 = vmul.f32 %v222_v5, %v210_v3  ;;  %v225_v13 = vmul.f32 %v222_v5, %v211_v4  ;;  %v226_v14 = vmul.f32 %v222_v5, %v212_v6  ;;  %v227_v15 = vmul.f32 %v222_v5, %v213_v7 }
  0x8c   : > { %v228_v17 = vmul.f32 %v222_v5, %v214_v8  ;;  %v229_v18 = vmul.f32 %v222_v5, %v215_v9  ;;  %v230_v19 = vmul.f32 %v222_v5, %v216_v10  ;;  %v231_v20 = vmul.f32 %v222_v5, %v217_v11 }
  0x8e   : > { %v236_v16 = vpop.permute.xlu0 %235 }
  0x8f   : > { %v238_v21 = vadd.f32 %v236_v16, %v224_v12  ;;  %v239_v22 = vadd.f32 %v236_v16, %v225_v13  ;;  %v240_v23 = vadd.f32 %v236_v16, %v226_v14  ;;  %v241_v24 = vadd.f32 %v236_v16, %v227_v15 }
  0x90   : > { %v242_v25 = vadd.f32 %v236_v16, %v228_v17  ;;  %v243_v26 = vadd.f32 %v236_v16, %v229_v18  ;;  %v244_v27 = vadd.f32 %v236_v16, %v230_v19  ;;  %v245_v28 = vadd.f32 %v236_v16, %v231_v20 }
  0x91   : > { %v246_v29 = vmax.f32 %v238_v21, 0.0  ;;  %v247_v30 = vmax.f32 %v239_v22, 0.0  ;;  %v248_v31 = vmax.f32 %v240_v23, 0.0  ;;  %v249_v32 = vmax.f32 %v241_v24, 0.0 }
  0x92   : > { %v250_v33 = vmax.f32 %v242_v25, 0.0  ;;  %v251_v34 = vmax.f32 %v243_v26, 0.0  ;;  %v252_v35 = vmax.f32 %v244_v27, 0.0  ;;  %v253_v36 = vmax.f32 %v245_v28, 0.0 }
  0x93   : > { %254 = vst [vmem:[%s208_s5] sm:$0xff] %v246_v29  ;;  %255 = vst [vmem:[%s208_s5 + $0x8] sm:$0xff] %v247_v30 }
  0x94   : > { %256 = vst [vmem:[%s208_s5 + $0x10] sm:$0xff] %v248_v31  ;;  %257 = vst [vmem:[%s208_s5 + $0x18] sm:$0xff] %v249_v32 }
  0x95   : > { %258 = vst [vmem:[%s208_s5 + $0x20] sm:$0xff] %v250_v33  ;;  %259 = vst [vmem:[%s208_s5 + $0x28] sm:$0xff] %v251_v34 }
  0x96   : > { %260 = vst [vmem:[%s208_s5 + $0x30] sm:$0xff] %v252_v35  ;;  %261 = vst [vmem:[%s208_s5 + $0x38] sm:$0xff] %v253_v36 }
  0x97 PF: > { %s13_s16 = sadd.s32 1, %s444_s16   ;;  %s528_s12 = smov %s436_s14 }
  0x98   : > { %p10_p7 = scmp.ge.s32.totalorder %s13_s16, 14   ;;  %s529_s13 = smov %s440_s15 }
  0x99   : > { %s530_s14 = smov %s533_s17  ;;  %s531_s15 = smov %s537_s18 }
  0x9a   :  { %12 = sbr.rel (!%p10_p7) target bundleno = 3 (0x3), region = 62 }

// kernel: upconv_forward.2
= control target key start
LH: loop header
LB: loop body
LE: loop exit
PB: predicated region body
PF: predicated region fallthrough
CT: control target
= control target key end

     0   :  { %s10979_s21 = smov 0   ;;  %s10981_s22 = smov 0   ;;  %s12267_s0 = inlined_call_operand.vmem [shape: f32[2,4,7168], index: 0, kind: input, shape index: {}, may-alias: {0,1}]   ;;  %s12268_s1 = inlined_call_operand.vmem [shape: f32[2,4,7168], index: 1, kind: input, shape index: {}, may-alias: {0,1}]   ;;  %s12269_s2 = inlined_call_operand.vmem [shape: f32[27,8,4], index: 2, kind: input, shape index: {}]   ;;  %s12270_s3 = inlined_call_operand.vmem [shape: f32[1,6144], index: 3, kind: input, shape index: {}]   ;;  %s12271_s4 = inlined_call_operand.vmem [shape: f32[2,8,6144], index: 4, kind: output, shape index: {0}]   ;;  %s12272_s5 = inlined_call_operand.vmem [shape: f32[2,6,8,1], index: 5, kind: output, shape index: {1}]   ;;  %s12273_s6 = inlined_call_operand.vmem [shape: f32[2,6,8,1], index: 6, kind: output, shape index: {2}]  }
   0x1   :  { %s10983_s23 = smov 0   ;;  %s10985_s24 = smov 0  }
   0x2   :  { %s10987_s25 = smov 0  }
   0x3 LB: > { %s26_s26 = sadd.s32 1, %s10907_s23  ;;  %s29_s27 = sadd.s32 1, %s10911_s24  ;;  %s10915_s25 = sphi %s10987_s25, %s17_s25   ;;  %s10911_s24 = sphi %s10985_s24, %s12277_s24   ;;  %s10907_s23 = sphi %s10983_s23, %s12276_s23   ;;  %s10903_s22 = sphi %s10981_s22, %s12275_s22   ;;  %s10899_s21 = sphi %s10979_s21, %s12274_s21  }
   0x4   : > { %p27_p0 = scmp.ge.s32.totalorder %s26_s26, 6  ;;  %p10222_p1 = scmp.ge.s32.totalorder %s10915_s25, 1 }
   0x5   : > { %p273_p2 = scmp.lt.s32.totalorder %s10915_s25, 13 }
   0x6   : > { %s12279_s26 = smov (%p27_p0, %s26_s26), 0  ;;  %s12281_s27 = smov (!%p27_p0, %s29_s27), %s10911_s24 }
   0x7   : > { %p274_p3 = pnand %p10222_p1, %p273_p2  ;;  %p31_p4 = scmp.ge.s32.totalorder %s12281_s27, 2 }
   0x8   : > { %s11012_s28 = sshll.u32 (!%p274_p3), %s10899_s21, 3  ;;  %p342_p5 = scmp.lt.s32.totalorder (!%p274_p3), %s10903_s22, 1  ;;  %v10918_v4 = vmov (!%p274_p3), 0.0   ;;  %vm445_vm0 = vcmask (!%p274_p3), 1039360   ;;  %vm458_vm1 = vcmask (!%p274_p3), 1043456   ;;  %v10232_v26 = vld [vmem:[%s12269_s2 + $0x8] sm:$0xff] (!%p274_p3) }
   0x9   : > { %s12283_s27 = smov (%p31_p4, %s12281_s27), 0  ;;  %277 = sbr.rel (%p274_p3) target bundleno = 972 (0x3cc), region = 36 }
   0xa   : > { %p344_p6 = scmp.lt.s32.totalorder (!%p274_p3), %s11012_s28, 55  ;;  %s10585_s7 = sadd.s32 (!%p274_p3), 8, %s11012_s28  ;;  %610 = vmatprep.mubr.f32.mxu1 (!%p274_p3), %v10918_v4  ;;  %539 = vmatprep.mubr.f32.mxu0 (!%p274_p3), %v10918_v4  ;;  %vm454_vm2 = vcmask (!%p274_p3), 31744   ;;  %v414_v35 = vld [vmem:[%s12269_s2] sm:$0xff] (!%p274_p3)  ;;  %vm1096_vm3 = vcmask (!%p274_p3), 1031168   ;;  %v10257_v51 = vld [vmem:[%s12269_s2 + $0x10] sm:$0xff] (!%p274_p3) }
   0xb   : > { %p355_p7 = scmp.lt.s32.totalorder (!%p274_p3), %s10585_s7, 55  ;;  %s10917_s13 = smov (!%p274_p3), 127   ;;  %vm1450_vm4 = vcmask (!%p274_p3), 900096   ;;  %vm1804_vm5 = vcmask (!%p274_p3), 891904   ;;  %vm2158_vm6 = vcmask (!%p274_p3), 883712   ;;  %vm2512_vm7 = vcmask (!%p274_p3), 752640  }
   0xc   : > { %s10919_s19 = smov (!%p274_p3), 126   ;;  %s10920_s20 = smov (!%p274_p3), 110   ;;  %vm2866_vm8 = vcmask (!%p274_p3), 744448   ;;  %vm3220_vm9 = vcmask (!%p274_p3), 736256   ;;  %vm3574_vm10 = vcmask (!%p274_p3), 490496   ;;  %vm3928_vm11 = vcmask (!%p274_p3), 482304  }
   0xd   : > { %s10925_s11 = smov (!%p274_p3), 90   ;;  %vm4282_vm12 = vcmask (!%p274_p3), 474112   ;;  %vm4636_vm13 = vcmask (!%p274_p3), 343040   ;;  %vm4990_vm14 = vcmask (!%p274_p3), 334848   ;;  %s10937_s17 = smov (!%p274_p3), 118   ;;  %vm5344_vm15 = vcmask (!%p274_p3), 326656  }
   0xe   : > { %s10940_s10 = smov (!%p274_p3), 100   ;;  %s10942_s16 = smov (!%p274_p3), 83  }
   0xf   : > { %p364_p8 = scmp.lt.s32.totalorder (!%p274_p3), %s11012_s28, 47  ;;  %p380_p9 = scmp.lt.s32.totalorder (!%p274_p3), %s10899_s21, 5 }
  0x10   : > { %s12285_s22 = smov (!%p342_p5, %s10903_s22), 1  ;;  %s12287_s7 = smov (!%p355_p7, %s10585_s7), 55 }
  0x11   : > { %s345_s29 = scalar_select %p344_p6, %s11012_s28, 55 }
  0x12   : > { %s10794_s30 = smul.u32 56, %s12285_s22  ;;  %s12289_s28 = smov (!%p364_p8, %s11012_s28), 47 }
  0x13   : > { %s12291_s21 = smov (!%p380_p9, %s10899_s21), 5 }
  0x14   : > { %s347_s8 = sadd.s32 %s10794_s30, %s345_s29  ;;  %s358_s14 = sadd.s32 %s10794_s30, %s12287_s7 }
  0x15   : > { %s10224_s9 = sshll.u32 %s347_s8, 2  ;;  %s10226_s15 = sshll.u32 %s358_s14, 2 }
  0x16   : > { %s349_s12 = scalar_lea.vmem %s12267_s0, %s10224_s9  ;;  %s11041_s18 = scalar_lea.vmem %s12268_s1, %s10226_s15 }
  0x17   : > { %v11023_v0 = vld [vmem:[%s349_s12 + $0x8] sm:$0xff]  ;;  %v11025_v1 = vld [vmem:[%s349_s12] sm:$0xff]  ;;  %v11027_v2 = vld [vmem:[%s349_s12 + $0x10] sm:$0xff]  ;;  %s10921_s29 = smov 109   ;;  %s10922_s30 = smov 108  }
  0x18   : > { %399 = vst [vmem:[#allocation2 + $0x8] sm:$0xff] %v11023_v0  ;;  %431 = vrot.lane.b32.xlu0 %v11023_v0, %s10917_s13  ;;  %427 = vrot.lane.b32.xlu1 %v11025_v1, %s10917_s13  ;;  %400 = vst [vmem:[#allocation2 + $0x10] sm:$0xff] %v11027_v2  ;;  %v11033_v3 = vld [vmem:[%s349_s12 + $0x18] sm:$0xff]  ;;  %v11047_v5 = vcombine.high %v11023_v0, %v11023_v0  ;;  %v11050_v6 = vld [vmem:[%s11041_s18] sm:$0xff]  ;;  %v11057_v7 = vcombine.high %v11027_v2, %v11027_v2  ;;  %s10923_s7 = smov 92   ;;  %s10924_s8 = smov 91  }
  0x19   : > { %401 = vst [vmem:[#allocation2 + $0x18] sm:$0xff] %v11033_v3  ;;  %406 = vst [vmem:[#allocation2 + $0x20] sm:$0xff] %v11050_v6  ;;  %v11062_v9 = vcombine.high %v11033_v3, %v11033_v3  ;;  %v11066_v10 = vcombine.high %v11025_v1, %v11025_v1  ;;  %v403_v11 = vld [vmem:[%s11041_s18 + $0x8] sm:$0xff]  ;;  %s10926_s14 = smov 60   ;;  %v11221_v58 = vcombine.high %v11050_v6, %v11050_v6  ;;  %s10929_s9 = smov 42  }
  0x1a   : > { %407 = vst [vmem:[#allocation2 + $0x28] sm:$0xff] %v403_v11  ;;  %s10930_s12 = smov 41   ;;  %s10931_s15 = smov 40  }
  0x1c   : > { %435 = vrot.lane.b32.xlu0 %v11027_v2, %s10917_s13  ;;  %1078 = vrot.lane.b32.xlu1 %v11025_v1, %s10919_s19 }
  0x20   : > { %439 = vrot.lane.b32.xlu0 %v11033_v3, %s10917_s13  ;;  %433 = vrot.lane.b32.xlu1 %v11047_v5, %s10917_s13  ;;  %v415_v8 = vld [vmem:[#allocation2 + $0x20] sm:$0xf] }
  0x21   : > { %v1066_v12 = vld [vmem:[#allocation2 + $0x20] sm:$0xf] }
  0x22   : > { %v1420_v13 = vld [vmem:[#allocation2 + $0x20] sm:$0xf] }
  0x23   : > { %v1774_v14 = vld [vmem:[#allocation2 + $0x20] sm:$0xf] }
  0x24   : > { %437 = vrot.lane.b32.xlu1 %v11057_v7, %s10917_s13  ;;  %443 = vrot.lane.b32.xlu0 %v415_v8, %s10917_s13  ;;  %v2128_v15 = vld [vmem:[#allocation2 + $0x20] sm:$0xf]  ;;  %v3544_v8 = vld [vmem:[#allocation2 + $0x28] sm:$0xf] }
  0x25   : > { %v2482_v16 = vld [vmem:[#allocation2 + $0x20] sm:$0xf] }
  0x26   : > { %v2836_v23 = vld [vmem:[#allocation2 + $0x20] sm:$0xf] }
  0x27   : > { %v3190_v40 = vld [vmem:[#allocation2 + $0x20] sm:$0xf] }
  0x28   : > { %441 = vrot.lane.b32.xlu1 %v11062_v9, %s10917_s13  ;;  %1082 = vrot.lane.b32.xlu0 %v11023_v0, %s10919_s19 }
  0x2c   : > { %1080 = vrot.lane.b32.xlu1 %v11066_v10, %s10919_s19  ;;  %429 = vrot.lane.b32.xlu0 %v11066_v10, %s10917_s13  ;;  %s10941_s13 = smov 84  }
  0x30   : > { %1086 = vrot.lane.b32.xlu1 %v11027_v2, %s10919_s19  ;;  %1084 = vrot.lane.b32.xlu0 %v11047_v5, %s10919_s19 }
  0x34   : > { %1090 = vrot.lane.b32.xlu1 %v11033_v3, %s10919_s19  ;;  %1088 = vrot.lane.b32.xlu0 %v11057_v7, %s10919_s19 }
  0x38   : > { %1094 = vrot.lane.b32.xlu1 %v1066_v12, %s10919_s19  ;;  %1092 = vrot.lane.b32.xlu0 %v11062_v9, %s10919_s19  ;;  %v10270_v12 = vld [vmem:[%s12269_s2 + $0x18] sm:$0xff]  ;;  %s10932_s19 = smov 24  }
  0x3c   : > { %1436 = vrot.lane.b32.xlu1 %v11023_v0, %s10920_s20  ;;  %1434 = vrot.lane.b32.xlu0 %v11066_v10, %s10920_s20 }
  0x40   : > { %1438 = vrot.lane.b32.xlu1 %v11047_v5, %s10920_s20  ;;  %1432 = vrot.lane.b32.xlu0 %v11025_v1, %s10920_s20 }
  0x44   : > { %1442 = vrot.lane.b32.xlu1 %v11057_v7, %s10920_s20  ;;  %1440 = vrot.lane.b32.xlu0 %v11027_v2, %s10920_s20 }
  0x48   : > { %1446 = vrot.lane.b32.xlu1 %v11062_v9, %s10920_s20  ;;  %1444 = vrot.lane.b32.xlu0 %v11033_v3, %s10920_s20 }
  0x4c   : > { %1788 = vrot.lane.b32.xlu1 %v11066_v10, %s10921_s29  ;;  %1448 = vrot.lane.b32.xlu0 %v1420_v13, %s10920_s20  ;;  %s10927_s20 = smov 59  }
  0x50   : > { %1786 = vrot.lane.b32.xlu1 %v11025_v1, %s10921_s29  ;;  %1790 = vrot.lane.b32.xlu0 %v11023_v0, %s10921_s29 }
  0x54   : > { %1794 = vrot.lane.b32.xlu1 %v11027_v2, %s10921_s29  ;;  %1792 = vrot.lane.b32.xlu0 %v11047_v5, %s10921_s29 }
  0x58   : > { %1798 = vrot.lane.b32.xlu1 %v11033_v3, %s10921_s29  ;;  %1796 = vrot.lane.b32.xlu0 %v11057_v7, %s10921_s29 }
  0x5c   : > { %1802 = vrot.lane.b32.xlu1 %v1774_v14, %s10921_s29  ;;  %1800 = vrot.lane.b32.xlu0 %v11062_v9, %s10921_s29  ;;  %s10938_s29 = smov 102  }
  0x60   : > { %2144 = vrot.lane.b32.xlu1 %v11023_v0, %s10922_s30  ;;  %2142 = vrot.lane.b32.xlu0 %v11066_v10, %s10922_s30 }
  0x64   : > { %2146 = vrot.lane.b32.xlu1 %v11047_v5, %s10922_s30  ;;  %2140 = vrot.lane.b32.xlu0 %v11025_v1, %s10922_s30 }
  0x68   : > { %2150 = vrot.lane.b32.xlu1 %v11057_v7, %s10922_s30  ;;  %2148 = vrot.lane.b32.xlu0 %v11027_v2, %s10922_s30 }
  0x6c   : > { %2154 = vrot.lane.b32.xlu1 %v11062_v9, %s10922_s30  ;;  %2152 = vrot.lane.b32.xlu0 %v11033_v3, %s10922_s30 }
  0x70   : > { %2496 = vrot.lane.b32.xlu1 %v11066_v10, %s10923_s7  ;;  %2156 = vrot.lane.b32.xlu0 %v2128_v15, %s10922_s30  ;;  %s10933_s30 = smov 23  }
  0x74   : > { %2494 = vrot.lane.b32.xlu1 %v11025_v1, %s10923_s7  ;;  %2498 = vrot.lane.b32.xlu0 %v11023_v0, %s10923_s7 }
  0x78   : > { %2502 = vrot.lane.b32.xlu1 %v11027_v2, %s10923_s7  ;;  %2500 = vrot.lane.b32.xlu0 %v11047_v5, %s10923_s7 }
  0x7c   : > { %2506 = vrot.lane.b32.xlu1 %v11033_v3, %s10923_s7  ;;  %2504 = vrot.lane.b32.xlu0 %v11057_v7, %s10923_s7 }
  0x80   : > { %2510 = vrot.lane.b32.xlu1 %v2482_v16, %s10923_s7  ;;  %2508 = vrot.lane.b32.xlu0 %v11062_v9, %s10923_s7  ;;  %s10928_s7 = smov 58  }
  0x84   : > { %2852 = vrot.lane.b32.xlu1 %v11023_v0, %s10924_s8  ;;  %2850 = vrot.lane.b32.xlu0 %v11066_v10, %s10924_s8 }
  0x88   : > { %2854 = vrot.lane.b32.xlu1 %v11047_v5, %s10924_s8  ;;  %2848 = vrot.lane.b32.xlu0 %v11025_v1, %s10924_s8 }
  0x8a   : > { %v432_v17 = vpop.permute.xlu0 %431  ;;  %v428_v18 = vpop.permute.xlu1 %427 }
  0x8c   : > { %2858 = vrot.lane.b32.xlu1 %v11057_v7, %s10924_s8  ;;  %2856 = vrot.lane.b32.xlu0 %v11027_v2, %s10924_s8 }
  0x8e   : > { %v436_v19 = vpop.permute.xlu0 %435  ;;  %v11116_v20 = vpop.permute.xlu1 %1078 }
  0x90   : > { %2862 = vrot.lane.b32.xlu1 %v11062_v9, %s10924_s8  ;;  %2860 = vrot.lane.b32.xlu0 %v11033_v3, %s10924_s8 }
  0x92   : > { %v440_v21 = vpop.permute.xlu0 %439  ;;  %v434_v22 = vpop.permute.xlu1 %433 }
  0x93   : > { %v449_v24 = vsel %vm445_vm0, %v434_v22, %v436_v19  ;;  %v448_v25 = vsel %vm445_vm0, %v432_v17, %v434_v22 }
  0x94   : > { %3204 = vrot.lane.b32.xlu1 %v11066_v10, %s10925_s11  ;;  %10236 = vmatprep.subr.msk.mxu1 %vm458_vm1, %v449_v24 }
  0x95   : > { %2864 = vrot.lane.b32.xlu0 %v2836_v23, %s10924_s8  ;;  %10237 = vmatpush1.msk.msra.mxu1 %vm458_vm1, %v448_v25  ;;  %v10283_v25 = vld [vmem:[%s12269_s2 + $0x20] sm:$0xff]  ;;  %s10934_s8 = smov 22  }
  0x96   : > { %v438_v27 = vpop.permute.xlu1 %437  ;;  %10238 = vmatmul.mubr.msk.f32.vlgmr.msra.gmra.mrb[0].mxu1 %vm454_vm2, %v10232_v26  ;;  %v444_v28 = vpop.permute.xlu0 %443 }
  0x97   : > { %752 = vmatprep.mubr.f32.mxu1 %v10918_v4  ;;  %v451_v39 = vsel %vm445_vm0, %v438_v27, %v440_v21  ;;  %v450_v41 = vsel %vm445_vm0, %v436_v19, %v438_v27 }
  0x98   : > { %3202 = vrot.lane.b32.xlu1 %v11025_v1, %s10925_s11 }
  0x99   : > { %3206 = vrot.lane.b32.xlu0 %v11023_v0, %s10925_s11 }
  0x9a   : > { %v442_v29 = vpop.permute.xlu1 %441  ;;  %v1083_v30 = vpop.permute.xlu0 %1082 }
  0x9b   : > { %v452_v31 = vsel %vm445_vm0, %v440_v21, %v442_v29  ;;  %v453_v32 = vsel %vm445_vm0, %v442_v29, %v444_v28  ;;  %v3898_v28 = vld [vmem:[#allocation2 + $0x28] sm:$0xf] }
  0x9c   : > { %3210 = vrot.lane.b32.xlu1 %v11027_v2, %s10925_s11  ;;  %10242 = vmatprep.subr.msk.mxu1 %vm458_vm1, %v453_v32 }
  0x9d   : > { %3208 = vrot.lane.b32.xlu0 %v11047_v5, %s10925_s11  ;;  %10243 = vmatpush1.msk.msra.mxu1 %vm458_vm1, %v452_v31 }
  0x9e   : > { %10244 = vmatmul.mubr.msk.f32.vlgmr.msra.gmra.mrb[2].mxu1 %vm454_vm2, %v10232_v26  ;;  %v1081_v33 = vpop.permute.xlu1 %1080  ;;  %10248 = vmatprep.subr.msk.mxu1 %vm458_vm1, %v11047_v5  ;;  %v430_v34 = vpop.permute.xlu0 %429 }
  0x9f   : > { %10249 = vmatpush1.msk.msra.mxu1 %vm458_vm1, %v11023_v0  ;;  %913 = vmatprep.mubr.f32.mxu1 %v10918_v4  ;;  %v447_v36 = vsel %vm445_vm0, %v430_v34, %v432_v17  ;;  %v446_v37 = vsel %vm445_vm0, %v428_v18, %v430_v34  ;;  %v1098_v50 = vsel %vm1096_vm3, %v1081_v33, %v1083_v30  ;;  %vm5698_vm0 = vcmask 195584  }
  0xa0   : > { %3214 = vrot.lane.b32.xlu1 %v11033_v3, %s10925_s11  ;;  %10254 = vmatprep.subr.msk.mxu1 %vm458_vm1, %v11062_v9  ;;  %v1097_v55 = vsel %vm1096_vm3, %v11116_v20, %v1081_v33 }
  0xa1   : > { %3212 = vrot.lane.b32.xlu0 %v11057_v7, %s10925_s11  ;;  %10233 = vmatprep.subr.msk.mxu0 %vm458_vm1, %v447_v36 }
  0xa2   : > { %10234 = vmatpush1.msk.msra.mxu0 %vm458_vm1, %v446_v37  ;;  %10250 = vmatmul.mubr.msk.f32.vlgmr.msra.gmra.mrb[0].mxu1 %vm454_vm2, %v414_v35  ;;  %v1087_v38 = vpop.permute.xlu1 %1086  ;;  %v1085_v42 = vpop.permute.xlu0 %1084  ;;  %v404_v37 = vld [vmem:[%s11041_s18 + $0x10] sm:$0xff]  ;;  %s10939_s18 = smov 101  }
  0xa3   : > { %10235 = vmatmul.mubr.msk.f32.vlgmr.msra.gmra.mrb[0].mxu0 %vm454_vm2, %v10232_v26  ;;  %10239 = vmatprep.subr.msk.mxu0 %vm458_vm1, %v451_v39  ;;  %v1100_v43 = vsel %vm1096_vm3, %v1085_v42, %v1087_v38  ;;  %v1099_v46 = vsel %vm1096_vm3, %v1083_v30, %v1085_v42  ;;  %408 = vst [vmem:[#allocation2 + $0x30] sm:$0xff] %v404_v37 }
  0xa4   : > { %10240 = vmatpush1.msk.msra.mxu0 %vm458_vm1, %v450_v41  ;;  %10255 = vmatpush1.msk.msra.mxu1 %vm458_vm1, %v11033_v3 }
  0xa5   : > { %3218 = vrot.lane.b32.xlu1 %v3190_v40, %s10925_s11  ;;  %3216 = vrot.lane.b32.xlu0 %v11062_v9, %s10925_s11  ;;  %s10935_s11 = smov 120  }
  0xa6   : > { %10261 = vmatprep.subr.msk.mxu1 %vm458_vm1, %v1100_v43  ;;  %681 = vmatprep.mubr.f32.mxu0 %v10918_v4  ;;  %v1091_v44 = vpop.permute.xlu1 %1090  ;;  %v1089_v45 = vpop.permute.xlu0 %1088 }
  0xa7   : > { %1055 = vmatprep.mubr.f32.mxu1 %v10918_v4  ;;  %10241 = vmatmul.mubr.msk.f32.vlgmr.msra.gmra.mrb[2].mxu0 %vm454_vm2, %v10232_v26  ;;  %v1102_v56 = vsel %vm1096_vm3, %v1089_v45, %v1091_v44  ;;  %v1101_v60 = vsel %vm1096_vm3, %v1087_v38, %v1089_v45  ;;  %v10296_v45 = vld [vmem:[%s12269_s2 + $0x28] sm:$0xff] }
  0xa8   : > { %10256 = vmatmul.mubr.msk.f32.vlgmr.msra.gmra.mrb[2].mxu1 %vm454_vm2, %v414_v35  ;;  %10245 = vmatprep.subr.msk.mxu0 %vm458_vm1, %v11066_v10 }
  0xa9   : > { %10262 = vmatpush1.msk.msra.mxu1 %vm458_vm1, %v1099_v46  ;;  %3560 = vrot.lane.b32.xlu1 %v11027_v2, %s10926_s14 }
  0xaa   : > { %3558 = vrot.lane.b32.xlu0 %v11047_v5, %s10926_s14  ;;  %10246 = vmatpush1.msk.msra.mxu0 %vm458_vm1, %v11025_v1  ;;  %v1095_v47 = vpop.permute.xlu1 %1094  ;;  %v1093_v48 = vpop.permute.xlu0 %1092 }
  0xab   : > { %842 = vmatprep.mubr.f32.mxu0 %v10918_v4  ;;  %10251 = vmatprep.subr.msk.mxu0 %vm458_vm1, %v11057_v7  ;;  %v1104_v49 = vsel %vm1096_vm3, %v1093_v48, %v1095_v47  ;;  %v1103_v52 = vsel %vm1096_vm3, %v1091_v44, %v1093_v48  ;;  %vm6052_vm3 = vcmask 187392  }
  0xac   : > { %10247 = vmatmul.mubr.msk.f32.vlgmr.msra.gmra.mrb[0].mxu0 %vm454_vm2, %v414_v35  ;;  %1259 = vmatprep.mubr.f32.mxu1 %v10918_v4 }
  0xad   : > { %10252 = vmatpush1.msk.msra.mxu0 %vm458_vm1, %v11027_v2  ;;  %3562 = vrot.lane.b32.xlu1 %v11057_v7, %s10926_s14 }
  0xae   : > { %10258 = vmatprep.subr.msk.mxu0 %vm458_vm1, %v1098_v50  ;;  %3556 = vrot.lane.b32.xlu0 %v11023_v0, %s10926_s14  ;;  %v1437_v53 = vpop.permute.xlu1 %1436  ;;  %v1435_v54 = vpop.permute.xlu0 %1434 }
  0xaf   : > { %10267 = vmatprep.subr.msk.mxu1 %vm458_vm1, %v1104_v49  ;;  %984 = vmatprep.mubr.f32.mxu0 %v10918_v4  ;;  %v1452_v61 = vsel %vm1450_vm4, %v1435_v54, %v1437_v53  ;;  %v4252_v49 = vld [vmem:[#allocation2 + $0x28] sm:$0xf] }
  0xb0   : > { %10263 = vmatmul.mubr.msk.f32.vlgmr.msra.gmra.mrb[0].mxu1 %vm454_vm2, %v10257_v51  ;;  %10253 = vmatmul.mubr.msk.f32.vlgmr.msra.gmra.mrb[2].mxu0 %vm454_vm2, %v414_v35 }
  0xb1   : > { %10268 = vmatpush1.msk.msra.mxu1 %vm458_vm1, %v1103_v52  ;;  %10259 = vmatpush1.msk.msra.mxu0 %vm458_vm1, %v1097_v55 }
  0xb2   : > { %10264 = vmatprep.subr.msk.mxu0 %vm458_vm1, %v1102_v56  ;;  %3566 = vrot.lane.b32.xlu1 %v11062_v9, %s10926_s14  ;;  %v1439_v57 = vpop.permute.xlu1 %1438  ;;  %v1433_v59 = vpop.permute.xlu0 %1432 }
  0xb3   : > { %3564 = vrot.lane.b32.xlu0 %v11033_v3, %s10926_s14  ;;  %1188 = vmatprep.mubr.f32.mxu0 %v10918_v4  ;;  %v1451_v1 = vsel %vm1450_vm4, %v1433_v59, %v1435_v54  ;;  %v1453_v11 = vsel %vm1450_vm4, %v1437_v53, %v1439_v57 }
  0xb4   : > { %10260 = vmatmul.mubr.msk.f32.vlgmr.msra.gmra.mrb[0].mxu0 %vm454_vm2, %v10257_v51  ;;  %1401 = vmatprep.mubr.f32.mxu1 %v10918_v4 }
  0xb5   : > { %10265 = vmatpush1.msk.msra.mxu0 %vm458_vm1, %v1101_v60  ;;  %1330 = vmatprep.mubr.f32.mxu0 %v10918_v4 }
  0xb6   : > { %10271 = vmatprep.subr.msk.mxu0 %vm458_vm1, %v1452_v61  ;;  %3570 = vrot.lane.b32.xlu1 %v11221_v58, %s10926_s14  ;;  %v1443_v62 = vpop.permute.xlu1 %1442  ;;  %v1441_v63 = vpop.permute.xlu0 %1440 }
  0xb7   : > { %3568 = vrot.lane.b32.xlu0 %v11050_v6, %s10926_s14  ;;  %10269 = vmatmul.mubr.msk.f32.vlgmr.msra.gmra.mrb[2].mxu1 %vm454_vm2, %v10257_v51  ;;  %v1454_v10 = vsel %vm1450_vm4, %v1439_v57, %v1441_v63  ;;  %v1455_v16 = vsel %vm1450_vm4, %v1441_v63, %v1443_v62 }
  0xb8   : > { %10266 = vmatmul.mubr.msk.f32.vlgmr.msra.gmra.mrb[2].mxu0 %vm454_vm2, %v10257_v51  ;;  %1613 = vmatprep.mubr.f32.mxu1 %v10918_v4 }
  0xb9   : > { %10272 = vmatpush1.msk.msra.mxu0 %vm458_vm1, %v1451_v1  ;;  %10274 = vmatprep.subr.msk.mxu1 %vm458_vm1, %v1454_v10 }
  0xba   : > { %3912 = vrot.lane.b32.xlu1 %v11047_v5, %s10927_s20  ;;  %10275 = vmatpush1.msk.msra.mxu1 %vm458_vm1, %v1453_v11  ;;  %v1447_v13 = vpop.permute.xlu1 %1446  ;;  %v1445_v14 = vpop.permute.xlu0 %1444 }
  0xbb   : > { %3572 = vrot.lane.b32.xlu0 %v3544_v8, %s10926_s14  ;;  %1542 = vmatprep.mubr.f32.mxu0 %v10918_v4  ;;  %v1456_v15 = vsel %vm1450_vm4, %v1443_v62, %v1445_v14  ;;  %v1457_v20 = vsel %vm1450_vm4, %v1445_v14, %v1447_v13  ;;  %v10309_v8 = vld [vmem:[%s12269_s2 + $0x30] sm:$0xff]  ;;  %s10936_s14 = smov 119  }
  0xbc   : > { %10273 = vmatmul.mubr.msk.f32.vlgmr.msra.gmra.mrb[0].mxu0 %vm454_vm2, %v10270_v12  ;;  %10276 = vmatmul.mubr.msk.f32.vlgmr.msra.gmra.mrb[0].mxu1 %vm454_vm2, %v10270_v12 }
  0xbd   : > { %10277 = vmatprep.subr.msk.mxu0 %vm458_vm1, %v1456_v15  ;;  %1684 = vmatprep.mubr.f32.mxu0 %v10918_v4 }
  0xbe   : > { %3910 = vrot.lane.b32.xlu1 %v11023_v0, %s10927_s20  ;;  %10278 = vmatpush1.msk.msra.mxu0 %vm458_vm1, %v1455_v16  ;;  %v1789_v17 = vpop.permute.xlu1 %1788  ;;  %v1449_v18 = vpop.permute.xlu0 %1448 }
  0xbf   : > { %3914 = vrot.lane.b32.xlu0 %v11027_v2, %s10927_s20  ;;  %1755 = vmatprep.mubr.f32.mxu1 %v10918_v4  ;;  %v1458_v19 = vsel %vm1450_vm4, %v1447_v13, %v1449_v18  ;;  %vm6406_vm4 = vcmask 179200  }
  0xc0   : > { %10279 = vmatmul.mubr.msk.f32.vlgmr.msra.gmra.mrb[2].mxu0 %vm454_vm2, %v10270_v12  ;;  %10280 = vmatprep.subr.msk.mxu1 %vm458_vm1, %v1458_v19 }
  0xc1   : > { %1896 = vmatprep.mubr.f32.mxu0 %v10918_v4  ;;  %10281 = vmatpush1.msk.msra.mxu1 %vm458_vm1, %v1457_v20 }
  0xc2   : > { %3918 = vrot.lane.b32.xlu1 %v11033_v3, %s10927_s20  ;;  %v1787_v21 = vpop.permute.xlu1 %1786  ;;  %v1791_v23 = vpop.permute.xlu0 %1790  ;;  %10282 = vmatmul.mubr.msk.f32.vlgmr.msra.gmra.mrb[2].mxu1 %vm454_vm2, %v10270_v12  ;;  %v4606_v12 = vld [vmem:[#allocation2 + $0x28] sm:$0xf] }
  0xc3   : > { %3916 = vrot.lane.b32.xlu0 %v11057_v7, %s10927_s20  ;;  %v1805_v22 = vsel %vm1804_vm5, %v1787_v21, %v1789_v17  ;;  %v1806_v24 = vsel %vm1804_vm5, %v1789_v17, %v1791_v23  ;;  %1967 = vmatprep.mubr.f32.mxu1 %v10918_v4 }
  0xc4   : > { %10284 = vmatprep.subr.msk.mxu0 %vm458_vm1, %v1806_v24 }
  0xc5   : > { %10285 = vmatpush1.msk.msra.mxu0 %vm458_vm1, %v1805_v22 }
  0xc6   : > { %3922 = vrot.lane.b32.xlu1 %v11050_v6, %s10927_s20  ;;  %v1795_v26 = vpop.permute.xlu1 %1794  ;;  %v1793_v27 = vpop.permute.xlu0 %1792  ;;  %10286 = vmatmul.mubr.msk.f32.vlgmr.msra.gmra.mrb[0].mxu0 %vm454_vm2, %v10283_v25 }
  0xc7   : > { %3920 = vrot.lane.b32.xlu0 %v11062_v9, %s10927_s20  ;;  %v1807_v29 = vsel %vm1804_vm5, %v1791_v23, %v1793_v27  ;;  %v1808_v30 = vsel %vm1804_vm5, %v1793_v27, %v1795_v26  ;;  %2038 = vmatprep.mubr.f32.mxu0 %v10918_v4 }
  0xc8   : > { %10287 = vmatprep.subr.msk.mxu1 %vm458_vm1, %v1808_v30 }
  0xc9   : > { %10288 = vmatpush1.msk.msra.mxu1 %vm458_vm1, %v1807_v29 }
  0xca   : > { %3926 = vrot.lane.b32.xlu1 %v3898_v28, %s10927_s20  ;;  %v1799_v31 = vpop.permute.xlu1 %1798  ;;  %v1797_v32 = vpop.permute.xlu0 %1796  ;;  %10289 = vmatmul.mubr.msk.f32.vlgmr.msra.gmra.mrb[0].mxu1 %vm454_vm2, %v10283_v25  ;;  %v10322_v28 = vld [vmem:[%s12269_s2 + $0x38] sm:$0xff] }
  0xcb   : > { %3924 = vrot.lane.b32.xlu0 %v11221_v58, %s10927_s20  ;;  %v1809_v33 = vsel %vm1804_vm5, %v1795_v26, %v1797_v32  ;;  %v1810_v34 = vsel %vm1804_vm5, %v1797_v32, %v1799_v31  ;;  %2109 = vmatprep.mubr.f32.mxu1 %v10918_v4  ;;  %s10943_s20 = smov 82  }
  0xcc   : > { %10290 = vmatprep.subr.msk.mxu0 %vm458_vm1, %v1810_v34 }
  0xcd   : > { %10291 = vmatpush1.msk.msra.mxu0 %vm458_vm1, %v1809_v33 }
  0xce   : > { %4268 = vrot.lane.b32.xlu1 %v11027_v2, %s10928_s7  ;;  %v1803_v35 = vpop.permute.xlu1 %1802  ;;  %v1801_v36 = vpop.permute.xlu0 %1800  ;;  %10292 = vmatmul.mubr.msk.f32.vlgmr.msra.gmra.mrb[2].mxu0 %vm454_vm2, %v10283_v25 }
  0xcf   : > { %4266 = vrot.lane.b32.xlu0 %v11047_v5, %s10928_s7  ;;  %v1811_v38 = vsel %vm1804_vm5, %v1799_v31, %v1801_v36  ;;  %v1812_v39 = vsel %vm1804_vm5, %v1801_v36, %v1803_v35  ;;  %2250 = vmatprep.mubr.f32.mxu0 %v10918_v4  ;;  %v11442_v36 = vld [vmem:[#allocation2 + $0x18] sm:$0xff]  ;;  %vm6760_vm5 = vcmask 982016  }
  0xd0   : > { %10293 = vmatprep.subr.msk.mxu1 %vm458_vm1, %v1812_v39 }
  0xd1   : > { %10294 = vmatpush1.msk.msra.mxu1 %vm458_vm1, %v1811_v38 }
  0xd2   : > { %4270 = vrot.lane.b32.xlu1 %v11057_v7, %s10928_s7  ;;  %v2145_v40 = vpop.permute.xlu1 %2144  ;;  %v2143_v41 = vpop.permute.xlu0 %2142  ;;  %10295 = vmatmul.mubr.msk.f32.vlgmr.msra.gmra.mrb[2].mxu1 %vm454_vm2, %v10283_v25 }
  0xd3   : > { %4264 = vrot.lane.b32.xlu0 %v11023_v0, %s10928_s7  ;;  %v2160_v42 = vsel %vm2158_vm6, %v2143_v41, %v2145_v40  ;;  %2321 = vmatprep.mubr.f32.mxu1 %v10918_v4 }
  0xd4   : > { %10297 = vmatprep.subr.msk.mxu0 %vm458_vm1, %v2160_v42 }
  0xd6   : > { %4274 = vrot.lane.b32.xlu1 %v11062_v9, %s10928_s7  ;;  %v2147_v43 = vpop.permute.xlu1 %2146  ;;  %v2141_v44 = vpop.permute.xlu0 %2140 }
  0xd7   : > { %4272 = vrot.lane.b32.xlu0 %v11033_v3, %s10928_s7  ;;  %v2159_v46 = vsel %vm2158_vm6, %v2141_v44, %v2143_v41  ;;  %v2161_v51 = vsel %vm2158_vm6, %v2145_v40, %v2147_v43  ;;  %v11459_v41 = vld [vmem:[#allocation2 + $0x20] sm:$0xff] }
  0xd8   : > { %10298 = vmatpush1.msk.msra.mxu0 %vm458_vm1, %v2159_v46  ;;  %v11473_v44 = vcombine.high %v11459_v41, %v11459_v41  ;;  %v5314_v46 = vld [vmem:[#allocation2 + $0x28] sm:$0xf] }
  0xd9   : > { %10299 = vmatmul.mubr.msk.f32.vlgmr.msra.gmra.mrb[0].mxu0 %vm454_vm2, %v10296_v45 }
  0xda   : > { %4278 = vrot.lane.b32.xlu1 %v11221_v58, %s10928_s7  ;;  %v2151_v47 = vpop.permute.xlu1 %2150  ;;  %v2149_v48 = vpop.permute.xlu0 %2148  ;;  %2392 = vmatprep.mubr.f32.mxu0 %v10918_v4 }
  0xdb   : > { %4276 = vrot.lane.b32.xlu0 %v11050_v6, %s10928_s7  ;;  %v2162_v50 = vsel %vm2158_vm6, %v2147_v43, %v2149_v48  ;;  %v2163_v55 = vsel %vm2158_vm6, %v2149_v48, %v2151_v47  ;;  %v10335_v43 = vld [vmem:[%s12269_s2 + $0x40] sm:$0xff] }
  0xdc   : > { %10300 = vmatprep.subr.msk.mxu1 %vm458_vm1, %v2162_v50 }
  0xdd   : > { %10301 = vmatpush1.msk.msra.mxu1 %vm458_vm1, %v2161_v51 }
  0xde   : > { %4620 = vrot.lane.b32.xlu1 %v11047_v5, %s10929_s9  ;;  %v2155_v52 = vpop.permute.xlu1 %2154  ;;  %v2153_v53 = vpop.permute.xlu0 %2152  ;;  %10302 = vmatmul.mubr.msk.f32.vlgmr.msra.gmra.mrb[0].mxu1 %vm454_vm2, %v10296_v45 }
  0xdf   : > { %4280 = vrot.lane.b32.xlu0 %v4252_v49, %s10928_s7  ;;  %v2164_v54 = vsel %vm2158_vm6, %v2151_v47, %v2153_v53  ;;  %2463 = vmatprep.mubr.f32.mxu1 %v10918_v4  ;;  %v2165_v60 = vsel %vm2158_vm6, %v2153_v53, %v2155_v52  ;;  %v11480_v49 = vld [vmem:[#allocation2 + $0x8] sm:$0xff] }
  0xe0   : > { %10303 = vmatprep.subr.msk.mxu0 %vm458_vm1, %v2164_v54  ;;  %v11492_v53 = vcombine.high %v11480_v49, %v11480_v49 }
  0xe1   : > { %10304 = vmatpush1.msk.msra.mxu0 %vm458_vm1, %v2163_v55 }
  0xe2   : > { %4618 = vrot.lane.b32.xlu1 %v11023_v0, %s10929_s9  ;;  %v2497_v56 = vpop.permute.xlu1 %2496  ;;  %v2157_v57 = vpop.permute.xlu0 %2156  ;;  %10305 = vmatmul.mubr.msk.f32.vlgmr.msra.gmra.mrb[2].mxu0 %vm454_vm2, %v10296_v45 }
  0xe3   : > { %4622 = vrot.lane.b32.xlu0 %v11027_v2, %s10929_s9  ;;  %v2166_v59 = vsel %vm2158_vm6, %v2155_v52, %v2157_v57  ;;  %2604 = vmatprep.mubr.f32.mxu0 %v10918_v4  ;;  %v11488_v52 = vld [vmem:[#allocation2 + $0x10] sm:$0xff]  ;;  %vm7114_vm6 = vcmask 973824  }
  0xe4   : > { %10306 = vmatprep.subr.msk.mxu1 %vm458_vm1, %v2166_v59 }
  0xe5   : > { %10307 = vmatpush1.msk.msra.mxu1 %vm458_vm1, %v2165_v60 }
  0xe6   : > { %4626 = vrot.lane.b32.xlu1 %v11033_v3, %s10929_s9  ;;  %v2495_v61 = vpop.permute.xlu1 %2494  ;;  %v2499_v63 = vpop.permute.xlu0 %2498  ;;  %10308 = vmatmul.mubr.msk.f32.vlgmr.msra.gmra.mrb[2].mxu1 %vm454_vm2, %v10296_v45 }
  0xe7   : > { %4624 = vrot.lane.b32.xlu0 %v11057_v7, %s10929_s9  ;;  %v2513_v62 = vsel %vm2512_vm7, %v2495_v61, %v2497_v56  ;;  %v2514_v1 = vsel %vm2512_vm7, %v2497_v56, %v2499_v63  ;;  %2675 = vmatprep.mubr.f32.mxu1 %v10918_v4  ;;  %v11501_v56 = vcombine.high %v11488_v52, %v11488_v52 }
  0xe8   : > { %10310 = vmatprep.subr.msk.mxu0 %vm458_vm1, %v2514_v1 }
  0xe9   : > { %10311 = vmatpush1.msk.msra.mxu0 %vm458_vm1, %v2513_v62 }
  0xea   : > { %4630 = vrot.lane.b32.xlu1 %v11050_v6, %s10929_s9  ;;  %v2503_v10 = vpop.permute.xlu1 %2502  ;;  %v2501_v11 = vpop.permute.xlu0 %2500  ;;  %10312 = vmatmul.mubr.msk.f32.vlgmr.msra.gmra.mrb[0].mxu0 %vm454_vm2, %v10309_v8 }
  0xeb   : > { %4628 = vrot.lane.b32.xlu0 %v11062_v9, %s10929_s9  ;;  %v2515_v13 = vsel %vm2512_vm7, %v2499_v63, %v2501_v11  ;;  %v2516_v14 = vsel %vm2512_vm7, %v2501_v11, %v2503_v10  ;;  %2746 = vmatprep.mubr.f32.mxu0 %v10918_v4  ;;  %v10348_v11 = vld [vmem:[%s12269_s2 + $0x48] sm:$0xff] }
  0xec   : > { %10313 = vmatprep.subr.msk.mxu1 %vm458_vm1, %v2516_v14  ;;  %v5668_v14 = vld [vmem:[#allocation2 + $0x28] sm:$0xf] }
  0xed   : > { %10314 = vmatpush1.msk.msra.mxu1 %vm458_vm1, %v2515_v13 }
  0xee   : > { %4634 = vrot.lane.b32.xlu1 %v4606_v12, %s10929_s9  ;;  %v2507_v15 = vpop.permute.xlu1 %2506  ;;  %v2505_v16 = vpop.permute.xlu0 %2504  ;;  %10315 = vmatmul.mubr.msk.f32.vlgmr.msra.gmra.mrb[0].mxu1 %vm454_vm2, %v10309_v8 }
  0xef   : > { %4632 = vrot.lane.b32.xlu0 %v11221_v58, %s10929_s9  ;;  %v2517_v17 = vsel %vm2512_vm7, %v2503_v10, %v2505_v16  ;;  %v2518_v18 = vsel %vm2512_vm7, %v2505_v16, %v2507_v15  ;;  %2817 = vmatprep.mubr.f32.mxu1 %v10918_v4 }
  0xf0   : > { %10316 = vmatprep.subr.msk.mxu0 %vm458_vm1, %v2518_v18 }
  0xf1   : > { %10317 = vmatpush1.msk.msra.mxu0 %vm458_vm1, %v2517_v17 }
  0xf2   : > { %4976 = vrot.lane.b32.xlu1 %v11027_v2, %s10930_s12  ;;  %v2511_v19 = vpop.permute.xlu1 %2510  ;;  %v2509_v20 = vpop.permute.xlu0 %2508  ;;  %10318 = vmatmul.mubr.msk.f32.vlgmr.msra.gmra.mrb[2].mxu0 %vm454_vm2, %v10309_v8 }
  0xf3   : > { %4974 = vrot.lane.b32.xlu0 %v11047_v5, %s10930_s12  ;;  %v2519_v21 = vsel %vm2512_vm7, %v2507_v15, %v2509_v20  ;;  %v2520_v22 = vsel %vm2512_vm7, %v2509_v20, %v2511_v19  ;;  %2958 = vmatprep.mubr.f32.mxu0 %v10918_v4  ;;  %vm7468_vm7 = vcmask 965632  }
  0xf4   : > { %10319 = vmatprep.subr.msk.mxu1 %vm458_vm1, %v2520_v22 }
  0xf5   : > { %10320 = vmatpush1.msk.msra.mxu1 %vm458_vm1, %v2519_v21 }
  0xf6   : > { %4978 = vrot.lane.b32.xlu1 %v11057_v7, %s10930_s12  ;;  %v2853_v23 = vpop.permute.xlu1 %2852  ;;  %v2851_v24 = vpop.permute.xlu0 %2850  ;;  %10321 = vmatmul.mubr.msk.f32.vlgmr.msra.gmra.mrb[2].mxu1 %vm454_vm2, %v10309_v8 }
  0xf7   : > { %4972 = vrot.lane.b32.xlu0 %v11023_v0, %s10930_s12  ;;  %v2868_v25 = vsel %vm2866_vm8, %v2851_v24, %v2853_v23  ;;  %3029 = vmatprep.mubr.f32.mxu1 %v10918_v4 }
  0xf8   : > { %10323 = vmatprep.subr.msk.mxu0 %vm458_vm1, %v2868_v25 }
  0xfa   : > { %4982 = vrot.lane.b32.xlu1 %v11062_v9, %s10930_s12  ;;  %v2855_v26 = vpop.permute.xlu1 %2854  ;;  %v2849_v27 = vpop.permute.xlu0 %2848 }
  0xfb   : > { %4980 = vrot.lane.b32.xlu0 %v11033_v3, %s10930_s12  ;;  %v2867_v29 = vsel %vm2866_vm8, %v2849_v27, %v2851_v24  ;;  %v4960_v3 = vld [vmem:[#allocation2 + $0x28] sm:$0xf]  ;;  %v2869_v32 = vsel %vm2866_vm8, %v2853_v23, %v2855_v26 }
  0xfc   : > { %10324 = vmatpush1.msk.msra.mxu0 %vm458_vm1, %v2867_v29 }
  0xfd   : > { %10325 = vmatmul.mubr.msk.f32.vlgmr.msra.gmra.mrb[0].mxu0 %vm454_vm2, %v10322_v28 }
  0xfe   : > { %4986 = vrot.lane.b32.xlu1 %v11221_v58, %s10930_s12  ;;  %v2859_v30 = vpop.permute.xlu1 %2858  ;;  %v2857_v9 = vpop.permute.xlu0 %2856  ;;  %3100 = vmatprep.mubr.f32.mxu0 %v10918_v4 }
  0xff   : > { %4984 = vrot.lane.b32.xlu0 %v11050_v6, %s10930_s12  ;;  %v2870_v31 = vsel %vm2866_vm8, %v2855_v26, %v2857_v9  ;;  %v2871_v34 = vsel %vm2866_vm8, %v2857_v9, %v2859_v30  ;;  %v6022_v9 = vld [vmem:[#allocation2 + $0x28] sm:$0xf] }
 0x100   : > { %10326 = vmatprep.subr.msk.mxu1 %vm458_vm1, %v2870_v31 }
 0x101   : > { %10327 = vmatpush1.msk.msra.mxu1 %vm458_vm1, %v2869_v32 }
 0x102   : > { %5328 = vrot.lane.b32.xlu1 %v11047_v5, %s10931_s15  ;;  %v2863_v58 = vpop.permute.xlu1 %2862  ;;  %v2861_v6 = vpop.permute.xlu0 %2860  ;;  %10328 = vmatmul.mubr.msk.f32.vlgmr.msra.gmra.mrb[0].mxu1 %vm454_vm2, %v10322_v28 }
 0x103   : > { %4988 = vrot.lane.b32.xlu0 %v4960_v3, %s10930_s12  ;;  %v2872_v33 = vsel %vm2866_vm8, %v2859_v30, %v2861_v6  ;;  %3171 = vmatprep.mubr.f32.mxu1 %v10918_v4  ;;  %v2873_v38 = vsel %vm2866_vm8, %v2861_v6, %v2863_v58  ;;  %v10361_v30 = vld [vmem:[%s12269_s2 + $0x50] sm:$0xff] }
 0x104   : > { %10329 = vmatprep.subr.msk.mxu0 %vm458_vm1, %v2872_v33 }
 0x105   : > { %10330 = vmatpush1.msk.msra.mxu0 %vm458_vm1, %v2871_v34 }
 0x106   : > { %5326 = vrot.lane.b32.xlu1 %v11023_v0, %s10931_s15  ;;  %v3205_v5 = vpop.permute.xlu1 %3204  ;;  %10331 = vmatmul.mubr.msk.f32.vlgmr.msra.gmra.mrb[2].mxu0 %vm454_vm2, %v10322_v28 }
 0x107   : > { %5330 = vrot.lane.b32.xlu0 %v11027_v2, %s10931_s15  ;;  %v2865_v35 = vpop.permute.xlu0 %2864  ;;  %3312 = vmatprep.mubr.f32.mxu0 %v10918_v4  ;;  %v11454_v2 = vcombine.high %v11442_v36, %v11442_v36 }
 0x108   : > { %v2874_v37 = vsel %vm2866_vm8, %v2863_v58, %v2865_v35  ;;  %vm7822_vm8 = vcmask 834560  }
 0x109   : > { %10332 = vmatprep.subr.msk.mxu1 %vm458_vm1, %v2874_v37 }
 0x10a   : > { %5334 = vrot.lane.b32.xlu1 %v11442_v36, %s10931_s15  ;;  %10333 = vmatpush1.msk.msra.mxu1 %vm458_vm1, %v2873_v38  ;;  %v3203_v0 = vpop.permute.xlu1 %3202 }
 0x10b   : > { %5332 = vrot.lane.b32.xlu0 %v11057_v7, %s10931_s15  ;;  %v3221_v39 = vsel %vm3220_vm9, %v3203_v0, %v3205_v5  ;;  %v3207_v40 = vpop.permute.xlu0 %3206  ;;  %10334 = vmatmul.mubr.msk.f32.vlgmr.msra.gmra.mrb[2].mxu1 %vm454_vm2, %v10322_v28 }
 0x10c   : > { %v3222_v42 = vsel %vm3220_vm9, %v3205_v5, %v3207_v40  ;;  %3383 = vmatprep.mubr.f32.mxu1 %v10918_v4 }
 0x10d   : > { %10336 = vmatprep.subr.msk.mxu0 %vm458_vm1, %v3222_v42 }
 0x10e   : > { %5338 = vrot.lane.b32.xlu1 %v11459_v41, %s10931_s15  ;;  %10337 = vmatpush1.msk.msra.mxu0 %vm458_vm1, %v3221_v39  ;;  %v3211_v7 = vpop.permute.xlu1 %3210 }
 0x10f   : > { %5336 = vrot.lane.b32.xlu0 %v11454_v2, %s10931_s15  ;;  %v3209_v45 = vpop.permute.xlu0 %3208  ;;  %10338 = vmatmul.mubr.msk.f32.vlgmr.msra.gmra.mrb[0].mxu0 %vm454_vm2, %v10335_v43 }
 0x110   : > { %v3223_v47 = vsel %vm3220_vm9, %v3207_v40, %v3209_v45  ;;  %v3224_v48 = vsel %vm3220_vm9, %v3209_v45, %v3211_v7  ;;  %3454 = vmatprep.mubr.f32.mxu0 %v10918_v4 }
 0x111   : > { %10339 = vmatprep.subr.msk.mxu1 %vm458_vm1, %v3224_v48  ;;  %v6376_v48 = vld [vmem:[#allocation2 + $0x28] sm:$0xf] }
 0x112   : > { %5342 = vrot.lane.b32.xlu1 %v5314_v46, %s10931_s15  ;;  %10340 = vmatpush1.msk.msra.mxu1 %vm458_vm1, %v3223_v47  ;;  %v3215_v50 = vpop.permute.xlu1 %3214  ;;  %v10374_v46 = vld [vmem:[%s12269_s2 + $0x58] sm:$0xff] }
 0x113   : > { %5340 = vrot.lane.b32.xlu0 %v11473_v44, %s10931_s15  ;;  %v3213_v51 = vpop.permute.xlu0 %3212  ;;  %10341 = vmatmul.mubr.msk.f32.vlgmr.msra.gmra.mrb[0].mxu1 %vm454_vm2, %v10335_v43 }
 0x114   : > { %v3225_v54 = vsel %vm3220_vm9, %v3211_v7, %v3213_v51  ;;  %v3226_v55 = vsel %vm3220_vm9, %v3213_v51, %v3215_v50  ;;  %3525 = vmatprep.mubr.f32.mxu1 %v10918_v4  ;;  %v11638_v51 = vld [vmem:[#allocation2 + $0x1c] sm:$0xff] }
 0x115   : > { %10342 = vmatprep.subr.msk.mxu0 %vm458_vm1, %v3226_v55  ;;  %v11648_v55 = vcombine.high %v11638_v51, %v11638_v51 }
 0x116   : > { %5684 = vrot.lane.b32.xlu1 %v11488_v52, %s10932_s19  ;;  %10343 = vmatpush1.msk.msra.mxu0 %vm458_vm1, %v3225_v54 }
 0x117   : > { %5682 = vrot.lane.b32.xlu0 %v11492_v53, %s10932_s19  ;;  %v3219_v57 = vpop.permute.xlu1 %3218  ;;  %v3217_v59 = vpop.permute.xlu0 %3216  ;;  %10344 = vmatmul.mubr.msk.f32.vlgmr.msra.gmra.mrb[2].mxu0 %vm454_vm2, %v10335_v43 }
 0x118   : > { %v3227_v60 = vsel %vm3220_vm9, %v3215_v50, %v3217_v59  ;;  %v3228_v61 = vsel %vm3220_vm9, %v3217_v59, %v3219_v57  ;;  %3666 = vmatprep.mubr.f32.mxu0 %v10918_v4  ;;  %vm8176_vm9 = vcmask 826368  }
 0x119   : > { %10345 = vmatprep.subr.msk.mxu1 %vm458_vm1, %v3228_v61 }
 0x11a   : > { %5686 = vrot.lane.b32.xlu1 %v11501_v56, %s10932_s19  ;;  %10346 = vmatpush1.msk.msra.mxu1 %vm458_vm1, %v3227_v60 }
 0x11b   : > { %5680 = vrot.lane.b32.xlu0 %v11480_v49, %s10932_s19  ;;  %v3561_v62 = vpop.permute.xlu1 %3560  ;;  %10347 = vmatmul.mubr.msk.f32.vlgmr.msra.gmra.mrb[2].mxu1 %vm454_vm2, %v10335_v43  ;;  %v11614_v43 = vld [vmem:[#allocation2 + $0x14] sm:$0xff] }
 0x11c   : > { %v3559_v63 = vpop.permute.xlu0 %3558  ;;  %3737 = vmatprep.mubr.f32.mxu1 %v10918_v4 }
 0x11d   : > { %v3576_v1 = vsel %vm3574_vm10, %v3559_v63, %v3561_v62 }
 0x11e   : > { %5690 = vrot.lane.b32.xlu1 %v11454_v2, %s10932_s19  ;;  %10349 = vmatprep.subr.msk.mxu0 %vm458_vm1, %v3576_v1 }
 0x11f   : > { %5688 = vrot.lane.b32.xlu0 %v11442_v36, %s10932_s19  ;;  %v3563_v8 = vpop.permute.xlu1 %3562 }
 0x120   : > { %v3557_v10 = vpop.permute.xlu0 %3556  ;;  %v3577_v17 = vsel %vm3574_vm10, %v3561_v62, %v3563_v8 }
 0x121   : > { %v3575_v12 = vsel %vm3574_vm10, %v3557_v10, %v3559_v63  ;;  %v11669_v63 = vld [vmem:[#allocation2 + $0x2c] sm:$0xff] }
 0x122   : > { %5694 = vrot.lane.b32.xlu1 %v11473_v44, %s10932_s19  ;;  %10350 = vmatpush1.msk.msra.mxu0 %vm458_vm1, %v3575_v12  ;;  %v10387_v12 = vld [vmem:[%s12269_s2 + $0x60] sm:$0xff] }
 0x123   : > { %5692 = vrot.lane.b32.xlu0 %v11459_v41, %s10932_s19  ;;  %10351 = vmatmul.mubr.msk.f32.vlgmr.msra.gmra.mrb[0].mxu0 %vm454_vm2, %v10348_v11 }
 0x124   : > { %v3567_v13 = vpop.permute.xlu1 %3566  ;;  %3808 = vmatprep.mubr.f32.mxu0 %v10918_v4 }
 0x125   : > { %v3565_v15 = vpop.permute.xlu0 %3564 }
 0x126   : > { %6036 = vrot.lane.b32.xlu1 %v11492_v53, %s10933_s30  ;;  %v3578_v16 = vsel %vm3574_vm10, %v3563_v8, %v3565_v15  ;;  %v3579_v21 = vsel %vm3574_vm10, %v3565_v15, %v3567_v13 }
 0x127   : > { %5696 = vrot.lane.b32.xlu0 %v5668_v14, %s10932_s19  ;;  %10352 = vmatprep.subr.msk.mxu1 %vm458_vm1, %v3578_v16  ;;  %v6730_v14 = vld [vmem:[#allocation2 + $0x34] sm:$0xf]  ;;  %s10795_s19 = smul.u32 48, %s12285_s22 }
 0x128   : > { %10353 = vmatpush1.msk.msra.mxu1 %vm458_vm1, %v3577_v17  ;;  %v3571_v18 = vpop.permute.xlu1 %3570 }
 0x129   : > { %v3569_v19 = vpop.permute.xlu0 %3568  ;;  %10354 = vmatmul.mubr.msk.f32.vlgmr.msra.gmra.mrb[0].mxu1 %vm454_vm2, %v10348_v11  ;;  %s374_s7 = sadd.s32 %s10795_s19, %s12289_s28 }
 0x12a   : > { %6034 = vrot.lane.b32.xlu1 %v11480_v49, %s10933_s30  ;;  %v3580_v20 = vsel %vm3574_vm10, %v3567_v13, %v3569_v19  ;;  %3879 = vmatprep.mubr.f32.mxu1 %v10918_v4  ;;  %v3581_v25 = vsel %vm3574_vm10, %v3569_v19, %v3571_v18  ;;  %v11683_v13 = vcombine.high %v11669_v63, %v11669_v63 }
 0x12b   : > { %6038 = vrot.lane.b32.xlu0 %v11488_v52, %s10933_s30  ;;  %10355 = vmatprep.subr.msk.mxu0 %vm458_vm1, %v3580_v20 }
 0x12c   : > { %10356 = vmatpush1.msk.msra.mxu0 %vm458_vm1, %v3579_v21  ;;  %v3913_v22 = vpop.permute.xlu1 %3912 }
 0x12d   : > { %v3573_v23 = vpop.permute.xlu0 %3572  ;;  %10357 = vmatmul.mubr.msk.f32.vlgmr.msra.gmra.mrb[2].mxu0 %vm454_vm2, %v10348_v11 }
 0x12e   : > { %v3582_v24 = vsel %vm3574_vm10, %v3571_v18, %v3573_v23  ;;  %6042 = vrot.lane.b32.xlu1 %v11442_v36, %s10933_s30  ;;  %4020 = vmatprep.mubr.f32.mxu0 %v10918_v4  ;;  %vm8530_vm10 = vcmask 818176  }
 0x12f   : > { %6040 = vrot.lane.b32.xlu0 %v11501_v56, %s10933_s30  ;;  %10358 = vmatprep.subr.msk.mxu1 %vm458_vm1, %v3582_v24 }
 0x130   : > { %10359 = vmatpush1.msk.msra.mxu1 %vm458_vm1, %v3581_v25  ;;  %v3911_v26 = vpop.permute.xlu1 %3910 }
 0x131   : > { %v3929_v27 = vsel %vm3928_vm11, %v3911_v26, %v3913_v22  ;;  %v3915_v28 = vpop.permute.xlu0 %3914  ;;  %10360 = vmatmul.mubr.msk.f32.vlgmr.msra.gmra.mrb[2].mxu1 %vm454_vm2, %v10348_v11 }
 0x132   : > { %6046 = vrot.lane.b32.xlu1 %v11459_v41, %s10933_s30  ;;  %v3930_v29 = vsel %vm3928_vm11, %v3913_v22, %v3915_v28  ;;  %4091 = vmatprep.mubr.f32.mxu1 %v10918_v4 }
 0x133   : > { %6044 = vrot.lane.b32.xlu0 %v11454_v2, %s10933_s30  ;;  %10362 = vmatprep.subr.msk.mxu0 %vm458_vm1, %v3930_v29 }
 0x134   : > { %10363 = vmatpush1.msk.msra.mxu0 %vm458_vm1, %v3929_v27  ;;  %v3919_v3 = vpop.permute.xlu1 %3918 }
 0x135   : > { %v3917_v31 = vpop.permute.xlu0 %3916  ;;  %10364 = vmatmul.mubr.msk.f32.vlgmr.msra.gmra.mrb[0].mxu0 %vm454_vm2, %v10361_v30 }
 0x136   : > { %v3931_v32 = vsel %vm3928_vm11, %v3915_v28, %v3917_v31  ;;  %6050 = vrot.lane.b32.xlu1 %v6022_v9, %s10933_s30  ;;  %v3932_v58 = vsel %vm3928_vm11, %v3917_v31, %v3919_v3  ;;  %4162 = vmatprep.mubr.f32.mxu0 %v10918_v4 }
 0x137   : > { %6048 = vrot.lane.b32.xlu0 %v11473_v44, %s10933_s30  ;;  %10365 = vmatprep.subr.msk.mxu1 %vm458_vm1, %v3932_v58  ;;  %v7084_v58 = vld [vmem:[#allocation2 + $0x34] sm:$0xf]  ;;  %s366_s30 = scalar_lea.vmem %s12270_s3, %s12289_s28  ;;  %s10796_s28 = smul.u32 6, %s12285_s22 }
 0x138   : > { %10366 = vmatpush1.msk.msra.mxu1 %vm458_vm1, %v3931_v32  ;;  %v3923_v6 = vpop.permute.xlu1 %3922 }
 0x139   : > { %v3921_v33 = vpop.permute.xlu0 %3920  ;;  %10367 = vmatmul.mubr.msk.f32.vlgmr.msra.gmra.mrb[0].mxu1 %vm454_vm2, %v10361_v30 }
 0x13a   : > { %v3933_v34 = vsel %vm3928_vm11, %v3919_v3, %v3921_v33  ;;  %6392 = vrot.lane.b32.xlu1 %v11488_v52, %s10934_s8  ;;  %v3934_v5 = vsel %vm3928_vm11, %v3921_v33, %v3923_v6  ;;  %4233 = vmatprep.mubr.f32.mxu1 %v10918_v4  ;;  %v10400_v3 = vld [vmem:[%s12269_s2 + $0x68] sm:$0xff] }
 0x13b   : > { %6390 = vrot.lane.b32.xlu0 %v11492_v53, %s10934_s8  ;;  %10368 = vmatprep.subr.msk.mxu0 %vm458_vm1, %v3934_v5 }
 0x13c   : > { %10369 = vmatpush1.msk.msra.mxu0 %vm458_vm1, %v3933_v34  ;;  %v3927_v35 = vpop.permute.xlu1 %3926 }
 0x13d   : > { %v3925_v37 = vpop.permute.xlu0 %3924  ;;  %10370 = vmatmul.mubr.msk.f32.vlgmr.msra.gmra.mrb[2].mxu0 %vm454_vm2, %v10361_v30 }
 0x13e   : > { %v3935_v38 = vsel %vm3928_vm11, %v3923_v6, %v3925_v37  ;;  %6394 = vrot.lane.b32.xlu1 %v11501_v56, %s10934_s8  ;;  %v3936_v0 = vsel %vm3928_vm11, %v3925_v37, %v3927_v35  ;;  %4374 = vmatprep.mubr.f32.mxu0 %v10918_v4  ;;  %v11653_v56 = vld [vmem:[#allocation2 + $0x24] sm:$0xff]  ;;  %vm8884_vm11 = vcmask 687104  }
 0x13f   : > { %6388 = vrot.lane.b32.xlu0 %v11480_v49, %s10934_s8  ;;  %10371 = vmatprep.subr.msk.mxu1 %vm458_vm1, %v3936_v0  ;;  %v11664_v62 = vcombine.high %v11653_v56, %v11653_v56 }
 0x140   : > { %10372 = vmatpush1.msk.msra.mxu1 %vm458_vm1, %v3935_v38  ;;  %v4269_v39 = vpop.permute.xlu1 %4268 }
 0x141   : > { %v4267_v40 = vpop.permute.xlu0 %4266  ;;  %10373 = vmatmul.mubr.msk.f32.vlgmr.msra.gmra.mrb[2].mxu1 %vm454_vm2, %v10361_v30 }
 0x142   : > { %6398 = vrot.lane.b32.xlu1 %v11454_v2, %s10934_s8  ;;  %v4284_v42 = vsel %vm4282_vm12, %v4267_v40, %v4269_v39  ;;  %4445 = vmatprep.mubr.f32.mxu1 %v10918_v4  ;;  %v11624_v2 = vcombine.high %v11614_v43, %v11614_v43 }
 0x143   : > { %6396 = vrot.lane.b32.xlu0 %v11442_v36, %s10934_s8  ;;  %10375 = vmatprep.subr.msk.mxu0 %vm458_vm1, %v4284_v42 }
 0x144   : > { %v4271_v7 = vpop.permute.xlu1 %4270 }
 0x145   : > { %v4265_v45 = vpop.permute.xlu0 %4264  ;;  %v4285_v50 = vsel %vm4282_vm12, %v4269_v39, %v4271_v7 }
 0x146   : > { %v4283_v47 = vsel %vm4282_vm12, %v4265_v45, %v4267_v40  ;;  %6402 = vrot.lane.b32.xlu1 %v11473_v44, %s10934_s8 }
 0x147   : > { %6400 = vrot.lane.b32.xlu0 %v11459_v41, %s10934_s8  ;;  %10376 = vmatpush1.msk.msra.mxu0 %vm458_vm1, %v4283_v47 }
 0x148   : > { %v4275_v36 = vpop.permute.xlu1 %4274  ;;  %10377 = vmatmul.mubr.msk.f32.vlgmr.msra.gmra.mrb[0].mxu0 %vm454_vm2, %v10374_v46 }
 0x149   : > { %v4273_v49 = vpop.permute.xlu0 %4272  ;;  %4516 = vmatprep.mubr.f32.mxu0 %v10918_v4 }
 0x14a   : > { %6744 = vrot.lane.b32.xlu1 %v11624_v2, %s10935_s11  ;;  %v4286_v44 = vsel %vm4282_vm12, %v4271_v7, %v4273_v49  ;;  %v4287_v54 = vsel %vm4282_vm12, %v4273_v49, %v4275_v36 }
 0x14b   : > { %6404 = vrot.lane.b32.xlu0 %v6376_v48, %s10934_s8  ;;  %10378 = vmatprep.subr.msk.mxu1 %vm458_vm1, %v4286_v44  ;;  %v7438_v48 = vld [vmem:[#allocation2 + $0x34] sm:$0xf] }
 0x14c   : > { %10379 = vmatpush1.msk.msra.mxu1 %vm458_vm1, %v4285_v50  ;;  %v4279_v41 = vpop.permute.xlu1 %4278 }
 0x14d   : > { %v4277_v52 = vpop.permute.xlu0 %4276  ;;  %10380 = vmatmul.mubr.msk.f32.vlgmr.msra.gmra.mrb[0].mxu1 %vm454_vm2, %v10374_v46 }
 0x14e   : > { %6742 = vrot.lane.b32.xlu1 %v11614_v43, %s10935_s11  ;;  %v4288_v53 = vsel %vm4282_vm12, %v4275_v36, %v4277_v52  ;;  %4587 = vmatprep.mubr.f32.mxu1 %v10918_v4  ;;  %v4289_v61 = vsel %vm4282_vm12, %v4277_v52, %v4279_v41  ;;  %v10413_v36 = vld [vmem:[%s12269_s2 + $0x70] sm:$0xff] }
 0x14f   : > { %6746 = vrot.lane.b32.xlu0 %v11638_v51, %s10935_s11  ;;  %10381 = vmatprep.subr.msk.mxu0 %vm458_vm1, %v4288_v53 }
 0x150   : > { %10382 = vmatpush1.msk.msra.mxu0 %vm458_vm1, %v4287_v54  ;;  %v4621_v57 = vpop.permute.xlu1 %4620 }
 0x151   : > { %v4281_v59 = vpop.permute.xlu0 %4280  ;;  %10383 = vmatmul.mubr.msk.f32.vlgmr.msra.gmra.mrb[2].mxu0 %vm454_vm2, %v10374_v46 }
 0x152   : > { %v4290_v60 = vsel %vm4282_vm12, %v4279_v41, %v4281_v59  ;;  %6750 = vrot.lane.b32.xlu1 %v11653_v56, %s10935_s11  ;;  %4728 = vmatprep.mubr.f32.mxu0 %v10918_v4  ;;  %vm9238_vm12 = vcmask 678912  }
 0x153   : > { %6748 = vrot.lane.b32.xlu0 %v11648_v55, %s10935_s11  ;;  %10384 = vmatprep.subr.msk.mxu1 %vm458_vm1, %v4290_v60 }
 0x154   : > { %10385 = vmatpush1.msk.msra.mxu1 %vm458_vm1, %v4289_v61  ;;  %v4619_v1 = vpop.permute.xlu1 %4618 }
 0x155   : > { %v4637_v8 = vsel %vm4636_vm13, %v4619_v1, %v4621_v57  ;;  %v4623_v10 = vpop.permute.xlu0 %4622  ;;  %10386 = vmatmul.mubr.msk.f32.vlgmr.msra.gmra.mrb[2].mxu1 %vm454_vm2, %v10374_v46 }
 0x156   : > { %6754 = vrot.lane.b32.xlu1 %v11669_v63, %s10935_s11  ;;  %v4638_v11 = vsel %vm4636_vm13, %v4621_v57, %v4623_v10  ;;  %4799 = vmatprep.mubr.f32.mxu1 %v10918_v4 }
 0x157   : > { %6752 = vrot.lane.b32.xlu0 %v11664_v62, %s10935_s11  ;;  %10388 = vmatprep.subr.msk.mxu0 %vm458_vm1, %v4638_v11 }
 0x158   : > { %10389 = vmatpush1.msk.msra.mxu0 %vm458_vm1, %v4637_v8  ;;  %v4627_v15 = vpop.permute.xlu1 %4626 }
 0x159   : > { %v4625_v16 = vpop.permute.xlu0 %4624  ;;  %10390 = vmatmul.mubr.msk.f32.vlgmr.msra.gmra.mrb[0].mxu0 %vm454_vm2, %v10387_v12 }
 0x15a   : > { %v4639_v17 = vsel %vm4636_vm13, %v4623_v10, %v4625_v16  ;;  %6758 = vrot.lane.b32.xlu1 %v6730_v14, %s10935_s11  ;;  %v4640_v18 = vsel %vm4636_vm13, %v4625_v16, %v4627_v15  ;;  %4870 = vmatprep.mubr.f32.mxu0 %v10918_v4 }
 0x15b   : > { %6756 = vrot.lane.b32.xlu0 %v11683_v13, %s10935_s11  ;;  %10391 = vmatprep.subr.msk.mxu1 %vm458_vm1, %v4640_v18  ;;  %v7792_v18 = vld [vmem:[#allocation2 + $0x34] sm:$0xf]  ;;  %s383_s11 = sadd.s32 %s10796_s28, %s12291_s21 }
 0x15c   : > { %10392 = vmatpush1.msk.msra.mxu1 %vm458_vm1, %v4639_v17  ;;  %v4631_v19 = vpop.permute.xlu1 %4630  ;;  %s10230_s12 = sshll.u32 %s383_s11, 3 }
 0x15d   : > { %v4629_v20 = vpop.permute.xlu0 %4628  ;;  %10393 = vmatmul.mubr.msk.f32.vlgmr.msra.gmra.mrb[0].mxu1 %vm454_vm2, %v10387_v12  ;;  %s385_s15 = scalar_lea.vmem %s12272_s5, %s10230_s12  ;;  %s393_s19 = scalar_lea.vmem %s12273_s6, %s10230_s12 }
 0x15e   : > { %v4641_v21 = vsel %vm4636_vm13, %v4627_v15, %v4629_v20  ;;  %7100 = vrot.lane.b32.xlu1 %v11638_v51, %s10936_s14  ;;  %v4642_v22 = vsel %vm4636_vm13, %v4629_v20, %v4631_v19  ;;  %4941 = vmatprep.mubr.f32.mxu1 %v10918_v4  ;;  %v10426_v15 = vld [vmem:[%s12269_s2 + $0x78] sm:$0xff] }
 0x15f   : > { %7098 = vrot.lane.b32.xlu0 %v11624_v2, %s10936_s14  ;;  %10394 = vmatprep.subr.msk.mxu0 %vm458_vm1, %v4642_v22 }
 0x160   : > { %10395 = vmatpush1.msk.msra.mxu0 %vm458_vm1, %v4641_v21  ;;  %v4635_v23 = vpop.permute.xlu1 %4634 }
 0x161   : > { %v4633_v24 = vpop.permute.xlu0 %4632  ;;  %10396 = vmatmul.mubr.msk.f32.vlgmr.msra.gmra.mrb[2].mxu0 %vm454_vm2, %v10387_v12 }
 0x162   : > { %v4643_v25 = vsel %vm4636_vm13, %v4631_v19, %v4633_v24  ;;  %7102 = vrot.lane.b32.xlu1 %v11648_v55, %s10936_s14  ;;  %v4644_v26 = vsel %vm4636_vm13, %v4633_v24, %v4635_v23  ;;  %5082 = vmatprep.mubr.f32.mxu0 %v10918_v4  ;;  %vm9592_vm13 = vcmask 670720  }
 0x163   : > { %7096 = vrot.lane.b32.xlu0 %v11614_v43, %s10936_s14  ;;  %10397 = vmatprep.subr.msk.mxu1 %vm458_vm1, %v4644_v26 }
 0x164   : > { %10398 = vmatpush1.msk.msra.mxu1 %vm458_vm1, %v4643_v25  ;;  %v4977_v27 = vpop.permute.xlu1 %4976 }
 0x165   : > { %v4975_v28 = vpop.permute.xlu0 %4974  ;;  %10399 = vmatmul.mubr.msk.f32.vlgmr.msra.gmra.mrb[2].mxu1 %vm454_vm2, %v10387_v12 }
 0x166   : > { %7106 = vrot.lane.b32.xlu1 %v11664_v62, %s10936_s14  ;;  %v4992_v29 = vsel %vm4990_vm14, %v4975_v28, %v4977_v27  ;;  %5153 = vmatprep.mubr.f32.mxu1 %v10918_v4 }
 0x167   : > { %7104 = vrot.lane.b32.xlu0 %v11653_v56, %s10936_s14  ;;  %10401 = vmatprep.subr.msk.mxu0 %vm458_vm1, %v4992_v29 }
 0x168   : > { %v4979_v30 = vpop.permute.xlu1 %4978 }
 0x169   : > { %v4973_v9 = vpop.permute.xlu0 %4972  ;;  %v4993_v34 = vsel %vm4990_vm14, %v4977_v27, %v4979_v30 }
 0x16a   : > { %v4991_v31 = vsel %vm4990_vm14, %v4973_v9, %v4975_v28  ;;  %7110 = vrot.lane.b32.xlu1 %v11683_v13, %s10936_s14 }
 0x16b   : > { %7108 = vrot.lane.b32.xlu0 %v11669_v63, %s10936_s14  ;;  %10402 = vmatpush1.msk.msra.mxu0 %vm458_vm1, %v4991_v31 }
 0x16c   : > { %v4983_v32 = vpop.permute.xlu1 %4982  ;;  %10403 = vmatmul.mubr.msk.f32.vlgmr.msra.gmra.mrb[0].mxu0 %vm454_vm2, %v10400_v3 }
 0x16d   : > { %v4981_v6 = vpop.permute.xlu0 %4980  ;;  %5224 = vmatprep.mubr.f32.mxu0 %v10918_v4 }
 0x16e   : > { %7452 = vrot.lane.b32.xlu1 %v11624_v2, %s10937_s17  ;;  %v4994_v33 = vsel %vm4990_vm14, %v4979_v30, %v4981_v6  ;;  %v4995_v38 = vsel %vm4990_vm14, %v4981_v6, %v4983_v32 }
 0x16f   : > { %7112 = vrot.lane.b32.xlu0 %v7084_v58, %s10936_s14  ;;  %10404 = vmatprep.subr.msk.mxu1 %vm458_vm1, %v4994_v33  ;;  %v8146_v58 = vld [vmem:[#allocation2 + $0x34] sm:$0xf] }
 0x170   : > { %10405 = vmatpush1.msk.msra.mxu1 %vm458_vm1, %v4993_v34  ;;  %v4987_v5 = vpop.permute.xlu1 %4986 }
 0x171   : > { %v4985_v35 = vpop.permute.xlu0 %4984  ;;  %10406 = vmatmul.mubr.msk.f32.vlgmr.msra.gmra.mrb[0].mxu1 %vm454_vm2, %v10400_v3 }
 0x172   : > { %7450 = vrot.lane.b32.xlu1 %v11614_v43, %s10937_s17  ;;  %v4996_v37 = vsel %vm4990_vm14, %v4983_v32, %v4985_v35  ;;  %5295 = vmatprep.mubr.f32.mxu1 %v10918_v4  ;;  %v4997_v42 = vsel %vm4990_vm14, %v4985_v35, %v4987_v5  ;;  %v10439_v32 = vld [vmem:[%s12269_s2 + $0x80] sm:$0xff] }
 0x173   : > { %7454 = vrot.lane.b32.xlu0 %v11638_v51, %s10937_s17  ;;  %10407 = vmatprep.subr.msk.mxu0 %vm458_vm1, %v4996_v37 }
 0x174   : > { %10408 = vmatpush1.msk.msra.mxu0 %vm458_vm1, %v4995_v38  ;;  %v5329_v0 = vpop.permute.xlu1 %5328 }
 0x175   : > { %v4989_v39 = vpop.permute.xlu0 %4988  ;;  %10409 = vmatmul.mubr.msk.f32.vlgmr.msra.gmra.mrb[2].mxu0 %vm454_vm2, %v10400_v3 }
 0x176   : > { %v4998_v40 = vsel %vm4990_vm14, %v4987_v5, %v4989_v39  ;;  %7458 = vrot.lane.b32.xlu1 %v11653_v56, %s10937_s17  ;;  %5436 = vmatprep.mubr.f32.mxu0 %v10918_v4 }
 0x177   : > { %7456 = vrot.lane.b32.xlu0 %v11648_v55, %s10937_s17  ;;  %10410 = vmatprep.subr.msk.mxu1 %vm458_vm1, %v4998_v40 }
 0x178   : > { %10411 = vmatpush1.msk.msra.mxu1 %vm458_vm1, %v4997_v42  ;;  %v5327_v7 = vpop.permute.xlu1 %5326 }
 0x179   : > { %v5345_v45 = vsel %vm5344_vm15, %v5327_v7, %v5329_v0  ;;  %v5331_v46 = vpop.permute.xlu0 %5330  ;;  %10412 = vmatmul.mubr.msk.f32.vlgmr.msra.gmra.mrb[2].mxu1 %vm454_vm2, %v10400_v3 }
 0x17a   : > { %7462 = vrot.lane.b32.xlu1 %v11669_v63, %s10937_s17  ;;  %v5346_v47 = vsel %vm5344_vm15, %v5329_v0, %v5331_v46  ;;  %5507 = vmatprep.mubr.f32.mxu1 %v10918_v4 }
 0x17b   : > { %7460 = vrot.lane.b32.xlu0 %v11664_v62, %s10937_s17  ;;  %10414 = vmatprep.subr.msk.mxu0 %vm458_vm1, %v5346_v47 }
 0x17c   : > { %10415 = vmatpush1.msk.msra.mxu0 %vm458_vm1, %v5345_v45  ;;  %v5335_v49 = vpop.permute.xlu1 %5334 }
 0x17d   : > { %v5333_v44 = vpop.permute.xlu0 %5332  ;;  %10416 = vmatmul.mubr.msk.f32.vlgmr.msra.gmra.mrb[0].mxu0 %vm454_vm2, %v10413_v36 }
 0x17e   : > { %v5347_v50 = vsel %vm5344_vm15, %v5331_v46, %v5333_v44  ;;  %7466 = vrot.lane.b32.xlu1 %v7438_v48, %s10937_s17  ;;  %v5348_v41 = vsel %vm5344_vm15, %v5333_v44, %v5335_v49  ;;  %5578 = vmatprep.mubr.f32.mxu0 %v10918_v4 }
 0x17f   : > { %7464 = vrot.lane.b32.xlu0 %v11683_v13, %s10937_s17  ;;  %10417 = vmatprep.subr.msk.mxu1 %vm458_vm1, %v5348_v41  ;;  %v8500_v41 = vld [vmem:[#allocation2 + $0x34] sm:$0xf] }
 0x180   : > { %10418 = vmatpush1.msk.msra.mxu1 %vm458_vm1, %v5347_v50  ;;  %v5339_v52 = vpop.permute.xlu1 %5338 }
 0x181   : > { %v5337_v53 = vpop.permute.xlu0 %5336  ;;  %10419 = vmatmul.mubr.msk.f32.vlgmr.msra.gmra.mrb[0].mxu1 %vm454_vm2, %v10413_v36 }
 0x182   : > { %v5349_v54 = vsel %vm5344_vm15, %v5335_v49, %v5337_v53  ;;  %7808 = vrot.lane.b32.xlu1 %v11638_v51, %s10938_s29  ;;  %v5350_v57 = vsel %vm5344_vm15, %v5337_v53, %v5339_v52  ;;  %5649 = vmatprep.mubr.f32.mxu1 %v10918_v4  ;;  %v10452_v49 = vld [vmem:[%s12269_s2 + $0x88] sm:$0xff] }
 0x183   : > { %7806 = vrot.lane.b32.xlu0 %v11624_v2, %s10938_s29  ;;  %10420 = vmatprep.subr.msk.mxu0 %vm458_vm1, %v5350_v57 }
 0x184   : > { %10421 = vmatpush1.msk.msra.mxu0 %vm458_vm1, %v5349_v54  ;;  %v5343_v59 = vpop.permute.xlu1 %5342 }
 0x185   : > { %v5341_v60 = vpop.permute.xlu0 %5340  ;;  %10422 = vmatmul.mubr.msk.f32.vlgmr.msra.gmra.mrb[2].mxu0 %vm454_vm2, %v10413_v36 }
 0x186   : > { %v5351_v61 = vsel %vm5344_vm15, %v5339_v52, %v5341_v60  ;;  %7810 = vrot.lane.b32.xlu1 %v11648_v55, %s10938_s29  ;;  %v5352_v1 = vsel %vm5344_vm15, %v5341_v60, %v5343_v59  ;;  %5790 = vmatprep.mubr.f32.mxu0 %v10918_v4 }
 0x187   : > { %7804 = vrot.lane.b32.xlu0 %v11614_v43, %s10938_s29  ;;  %10423 = vmatprep.subr.msk.mxu1 %vm458_vm1, %v5352_v1 }
 0x188   : > { %10424 = vmatpush1.msk.msra.mxu1 %vm458_vm1, %v5351_v61  ;;  %v5685_v8 = vpop.permute.xlu1 %5684 }
 0x189   : > { %v5683_v10 = vpop.permute.xlu0 %5682  ;;  %10425 = vmatmul.mubr.msk.f32.vlgmr.msra.gmra.mrb[2].mxu1 %vm454_vm2, %v10413_v36 }
 0x18a   : > { %7814 = vrot.lane.b32.xlu1 %v11664_v62, %s10938_s29  ;;  %v5700_v11 = vsel %vm5698_vm0, %v5683_v10, %v5685_v8  ;;  %5861 = vmatprep.mubr.f32.mxu1 %v10918_v4 }
 0x18b   : > { %7812 = vrot.lane.b32.xlu0 %v11653_v56, %s10938_s29  ;;  %10427 = vmatprep.subr.msk.mxu0 %vm458_vm1, %v5700_v11 }
 0x18c   : > { %v5687_v12 = vpop.permute.xlu1 %5686 }
 0x18d   : > { %v5681_v14 = vpop.permute.xlu0 %5680  ;;  %v5701_v21 = vsel %vm5698_vm0, %v5685_v8, %v5687_v12 }
 0x18e   : > { %v5699_v16 = vsel %vm5698_vm0, %v5681_v14, %v5683_v10  ;;  %7818 = vrot.lane.b32.xlu1 %v11683_v13, %s10938_s29 }
 0x18f   : > { %7816 = vrot.lane.b32.xlu0 %v11669_v63, %s10938_s29  ;;  %10428 = vmatpush1.msk.msra.mxu0 %vm458_vm1, %v5699_v16 }
 0x190   : > { %v5691_v17 = vpop.permute.xlu1 %5690  ;;  %10429 = vmatmul.mubr.msk.f32.vlgmr.msra.gmra.mrb[0].mxu0 %vm454_vm2, %v10426_v15 }
 0x191   : > { %v5689_v19 = vpop.permute.xlu0 %5688  ;;  %5932 = vmatprep.mubr.f32.mxu0 %v10918_v4 }
 0x192   : > { %8160 = vrot.lane.b32.xlu1 %v11624_v2, %s10939_s18  ;;  %v5702_v20 = vsel %vm5698_vm0, %v5687_v12, %v5689_v19  ;;  %v5703_v25 = vsel %vm5698_vm0, %v5689_v19, %v5691_v17 }
 0x193   : > { %7820 = vrot.lane.b32.xlu0 %v7792_v18, %s10938_s29  ;;  %10430 = vmatprep.subr.msk.mxu1 %vm458_vm1, %v5702_v20  ;;  %v8854_v18 = vld [vmem:[#allocation2 + $0x34] sm:$0xf] }
 0x194   : > { %10431 = vmatpush1.msk.msra.mxu1 %vm458_vm1, %v5701_v21  ;;  %v5695_v22 = vpop.permute.xlu1 %5694 }
 0x195   : > { %v5693_v23 = vpop.permute.xlu0 %5692  ;;  %10432 = vmatmul.mubr.msk.f32.vlgmr.msra.gmra.mrb[0].mxu1 %vm454_vm2, %v10426_v15 }
 0x196   : > { %8158 = vrot.lane.b32.xlu1 %v11614_v43, %s10939_s18  ;;  %v5704_v24 = vsel %vm5698_vm0, %v5691_v17, %v5693_v23  ;;  %6003 = vmatprep.mubr.f32.mxu1 %v10918_v4  ;;  %v5705_v29 = vsel %vm5698_vm0, %v5693_v23, %v5695_v22  ;;  %v10465_v17 = vld [vmem:[%s12269_s2 + $0x90] sm:$0xff] }
 0x197   : > { %8162 = vrot.lane.b32.xlu0 %v11638_v51, %s10939_s18  ;;  %10433 = vmatprep.subr.msk.mxu0 %vm458_vm1, %v5704_v24 }
 0x198   : > { %10434 = vmatpush1.msk.msra.mxu0 %vm458_vm1, %v5703_v25  ;;  %v6037_v26 = vpop.permute.xlu1 %6036 }
 0x199   : > { %v5697_v27 = vpop.permute.xlu0 %5696  ;;  %10435 = vmatmul.mubr.msk.f32.vlgmr.msra.gmra.mrb[2].mxu0 %vm454_vm2, %v10426_v15 }
 0x19a   : > { %v5706_v28 = vsel %vm5698_vm0, %v5695_v22, %v5697_v27  ;;  %8166 = vrot.lane.b32.xlu1 %v11653_v56, %s10939_s18  ;;  %6144 = vmatprep.mubr.f32.mxu0 %v10918_v4 }
 0x19b   : > { %8164 = vrot.lane.b32.xlu0 %v11648_v55, %s10939_s18  ;;  %10436 = vmatprep.subr.msk.mxu1 %vm458_vm1, %v5706_v28 }
 0x19c   : > { %10437 = vmatpush1.msk.msra.mxu1 %vm458_vm1, %v5705_v29  ;;  %v6035_v30 = vpop.permute.xlu1 %6034 }
 0x19d   : > { %v6053_v9 = vsel %vm6052_vm3, %v6035_v30, %v6037_v26  ;;  %v6039_v3 = vpop.permute.xlu0 %6038  ;;  %10438 = vmatmul.mubr.msk.f32.vlgmr.msra.gmra.mrb[2].mxu1 %vm454_vm2, %v10426_v15 }
 0x19e   : > { %8170 = vrot.lane.b32.xlu1 %v11669_v63, %s10939_s18  ;;  %v6054_v31 = vsel %vm6052_vm3, %v6037_v26, %v6039_v3  ;;  %6215 = vmatprep.mubr.f32.mxu1 %v10918_v4 }
 0x19f   : > { %8168 = vrot.lane.b32.xlu0 %v11664_v62, %s10939_s18  ;;  %10440 = vmatprep.subr.msk.mxu0 %vm458_vm1, %v6054_v31 }
 0x1a0   : > { %10441 = vmatpush1.msk.msra.mxu0 %vm458_vm1, %v6053_v9  ;;  %v6043_v6 = vpop.permute.xlu1 %6042 }
 0x1a1   : > { %v6041_v33 = vpop.permute.xlu0 %6040  ;;  %10442 = vmatmul.mubr.msk.f32.vlgmr.msra.gmra.mrb[0].mxu0 %vm454_vm2, %v10439_v32 }
 0x1a2   : > { %v6055_v34 = vsel %vm6052_vm3, %v6039_v3, %v6041_v33  ;;  %v6056_v5 = vsel %vm6052_vm3, %v6041_v33, %v6043_v6  ;;  %8174 = vrot.lane.b32.xlu1 %v8146_v58, %s10939_s18  ;;  %6286 = vmatprep.mubr.f32.mxu0 %v10918_v4 }
 0x1a3   : > { %8172 = vrot.lane.b32.xlu0 %v11683_v13, %s10939_s18  ;;  %10443 = vmatprep.subr.msk.mxu1 %vm458_vm1, %v6056_v5  ;;  %v9208_v5 = vld [vmem:[#allocation2 + $0x34] sm:$0xf]  ;;  %s10229_s18 = sshll.u32 %s374_s7, 3 }
 0x1a4   : > { %10444 = vmatpush1.msk.msra.mxu1 %vm458_vm1, %v6055_v34  ;;  %v6047_v35 = vpop.permute.xlu1 %6046 }
 0x1a5   : > { %v6045_v37 = vpop.permute.xlu0 %6044  ;;  %10445 = vmatmul.mubr.msk.f32.vlgmr.msra.gmra.mrb[0].mxu1 %vm454_vm2, %v10439_v32 }
 0x1a6   : > { %v6057_v38 = vsel %vm6052_vm3, %v6043_v6, %v6045_v37  ;;  %v6058_v0 = vsel %vm6052_vm3, %v6045_v37, %v6047_v35  ;;  %8516 = vrot.lane.b32.xlu1 %v11638_v51, %s10940_s10  ;;  %6357 = vmatprep.mubr.f32.mxu1 %v10918_v4  ;;  %v10478_v6 = vld [vmem:[%s12269_s2 + $0x98] sm:$0xff] }
 0x1a7   : > { %8514 = vrot.lane.b32.xlu0 %v11624_v2, %s10940_s10  ;;  %10446 = vmatprep.subr.msk.mxu0 %vm458_vm1, %v6058_v0 }
 0x1a8   : > { %10447 = vmatpush1.msk.msra.mxu0 %vm458_vm1, %v6057_v38  ;;  %v6051_v39 = vpop.permute.xlu1 %6050 }
 0x1a9   : > { %v6049_v40 = vpop.permute.xlu0 %6048  ;;  %10448 = vmatmul.mubr.msk.f32.vlgmr.msra.gmra.mrb[2].mxu0 %vm454_vm2, %v10439_v32 }
 0x1aa   : > { %v6059_v42 = vsel %vm6052_vm3, %v6047_v35, %v6049_v40  ;;  %v6060_v7 = vsel %vm6052_vm3, %v6049_v40, %v6051_v39  ;;  %8518 = vrot.lane.b32.xlu1 %v11648_v55, %s10940_s10  ;;  %6498 = vmatprep.mubr.f32.mxu0 %v10918_v4 }
 0x1ab   : > { %8512 = vrot.lane.b32.xlu0 %v11614_v43, %s10940_s10  ;;  %10449 = vmatprep.subr.msk.mxu1 %vm458_vm1, %v6060_v7 }
 0x1ac   : > { %10450 = vmatpush1.msk.msra.mxu1 %vm458_vm1, %v6059_v42  ;;  %v6393_v45 = vpop.permute.xlu1 %6392 }
 0x1ad   : > { %v6391_v46 = vpop.permute.xlu0 %6390  ;;  %10451 = vmatmul.mubr.msk.f32.vlgmr.msra.gmra.mrb[2].mxu1 %vm454_vm2, %v10439_v32 }
 0x1ae   : > { %v6408_v47 = vsel %vm6406_vm4, %v6391_v46, %v6393_v45  ;;  %8522 = vrot.lane.b32.xlu1 %v11664_v62, %s10940_s10  ;;  %6569 = vmatprep.mubr.f32.mxu1 %v10918_v4 }
 0x1af   : > { %8520 = vrot.lane.b32.xlu0 %v11653_v56, %s10940_s10  ;;  %10453 = vmatprep.subr.msk.mxu0 %vm458_vm1, %v6408_v47 }
 0x1b0   : > { %v6395_v36 = vpop.permute.xlu1 %6394 }
 0x1b1   : > { %v6389_v48 = vpop.permute.xlu0 %6388  ;;  %v6409_v54 = vsel %vm6406_vm4, %v6393_v45, %v6395_v36 }
 0x1b2   : > { %v6407_v44 = vsel %vm6406_vm4, %v6389_v48, %v6391_v46  ;;  %8526 = vrot.lane.b32.xlu1 %v11683_v13, %s10940_s10 }
 0x1b3   : > { %8524 = vrot.lane.b32.xlu0 %v11669_v63, %s10940_s10  ;;  %10454 = vmatpush1.msk.msra.mxu0 %vm458_vm1, %v6407_v44 }
 0x1b4   : > { %v6399_v50 = vpop.permute.xlu1 %6398  ;;  %10455 = vmatmul.mubr.msk.f32.vlgmr.msra.gmra.mrb[0].mxu0 %vm454_vm2, %v10452_v49 }
 0x1b5   : > { %v6397_v52 = vpop.permute.xlu0 %6396  ;;  %6640 = vmatprep.mubr.f32.mxu0 %v10918_v4 }
 0x1b6   : > { %v6410_v53 = vsel %vm6406_vm4, %v6395_v36, %v6397_v52  ;;  %8868 = vrot.lane.b32.xlu1 %v11624_v2, %s10941_s13  ;;  %v6411_v61 = vsel %vm6406_vm4, %v6397_v52, %v6399_v50  ;;  %v10491_v36 = vld [vmem:[%s12269_s2 + $0xa0] sm:$0xff] }
 0x1b7   : > { %8528 = vrot.lane.b32.xlu0 %v8500_v41, %s10940_s10  ;;  %10456 = vmatprep.subr.msk.mxu1 %vm458_vm1, %v6410_v53  ;;  %s12233_s10 = scalar_lea.vmem %s12271_s4, %s10229_s18 }
 0x1b8   : > { %10457 = vmatpush1.msk.msra.mxu1 %vm458_vm1, %v6409_v54  ;;  %v6403_v57 = vpop.permute.xlu1 %6402 }
 0x1b9   : > { %v6401_v59 = vpop.permute.xlu0 %6400  ;;  %10458 = vmatmul.mubr.msk.f32.vlgmr.msra.gmra.mrb[0].mxu1 %vm454_vm2, %v10452_v49 }
 0x1ba   : > { %v6412_v60 = vsel %vm6406_vm4, %v6399_v50, %v6401_v59  ;;  %8866 = vrot.lane.b32.xlu1 %v11614_v43, %s10941_s13  ;;  %6711 = vmatprep.mubr.f32.mxu1 %v10918_v4  ;;  %v6413_v11 = vsel %vm6406_vm4, %v6401_v59, %v6403_v57 }
 0x1bb   : > { %8870 = vrot.lane.b32.xlu0 %v11638_v51, %s10941_s13  ;;  %10459 = vmatprep.subr.msk.mxu0 %vm458_vm1, %v6412_v60 }
 0x1bc   : > { %10460 = vmatpush1.msk.msra.mxu0 %vm458_vm1, %v6411_v61  ;;  %v6745_v1 = vpop.permute.xlu1 %6744 }
 0x1bd   : > { %v6405_v8 = vpop.permute.xlu0 %6404  ;;  %10461 = vmatmul.mubr.msk.f32.vlgmr.msra.gmra.mrb[2].mxu0 %vm454_vm2, %v10452_v49 }
 0x1be   : > { %v6414_v10 = vsel %vm6406_vm4, %v6403_v57, %v6405_v8  ;;  %8874 = vrot.lane.b32.xlu1 %v11653_v56, %s10941_s13  ;;  %6852 = vmatprep.mubr.f32.mxu0 %v10918_v4 }
 0x1bf   : > { %8872 = vrot.lane.b32.xlu0 %v11648_v55, %s10941_s13  ;;  %10462 = vmatprep.subr.msk.mxu1 %vm458_vm1, %v6414_v10  ;;  %v10504_v10 = vld [vmem:[%s12269_s2 + $0xa8] sm:$0xff] }
 0x1c0   : > { %10463 = vmatpush1.msk.msra.mxu1 %vm458_vm1, %v6413_v11  ;;  %v6743_v12 = vpop.permute.xlu1 %6742 }
 0x1c1   : > { %v6761_v14 = vsel %vm6760_vm5, %v6743_v12, %v6745_v1  ;;  %v6747_v15 = vpop.permute.xlu0 %6746  ;;  %10464 = vmatmul.mubr.msk.f32.vlgmr.msra.gmra.mrb[2].mxu1 %vm454_vm2, %v10452_v49 }
 0x1c2   : > { %v6762_v16 = vsel %vm6760_vm5, %v6745_v1, %v6747_v15  ;;  %8878 = vrot.lane.b32.xlu1 %v11669_v63, %s10941_s13  ;;  %6923 = vmatprep.mubr.f32.mxu1 %v10918_v4 }
 0x1c3   : > { %8876 = vrot.lane.b32.xlu0 %v11664_v62, %s10941_s13  ;;  %10466 = vmatprep.subr.msk.mxu0 %vm458_vm1, %v6762_v16 }
 0x1c4   : > { %10467 = vmatpush1.msk.msra.mxu0 %vm458_vm1, %v6761_v14  ;;  %v6751_v19 = vpop.permute.xlu1 %6750 }
 0x1c5   : > { %v6749_v20 = vpop.permute.xlu0 %6748  ;;  %10468 = vmatmul.mubr.msk.f32.vlgmr.msra.gmra.mrb[0].mxu0 %vm454_vm2, %v10465_v17 }
 0x1c6   : > { %v6763_v21 = vsel %vm6760_vm5, %v6747_v15, %v6749_v20  ;;  %v6764_v22 = vsel %vm6760_vm5, %v6749_v20, %v6751_v19  ;;  %8882 = vrot.lane.b32.xlu1 %v8854_v18, %s10941_s13  ;;  %6994 = vmatprep.mubr.f32.mxu0 %v10918_v4 }
 0x1c7   : > { %8880 = vrot.lane.b32.xlu0 %v11683_v13, %s10941_s13  ;;  %10469 = vmatprep.subr.msk.mxu1 %vm458_vm1, %v6764_v22 }
 0x1c8   : > { %10470 = vmatpush1.msk.msra.mxu1 %vm458_vm1, %v6763_v21  ;;  %v6755_v23 = vpop.permute.xlu1 %6754 }
 0x1c9   : > { %v6753_v24 = vpop.permute.xlu0 %6752  ;;  %10471 = vmatmul.mubr.msk.f32.vlgmr.msra.gmra.mrb[0].mxu1 %vm454_vm2, %v10465_v17 }
 0x1ca   : > { %v6765_v25 = vsel %vm6760_vm5, %v6751_v19, %v6753_v24  ;;  %v6766_v26 = vsel %vm6760_vm5, %v6753_v24, %v6755_v23  ;;  %9224 = vrot.lane.b32.xlu1 %v11638_v51, %s10942_s16  ;;  %7065 = vmatprep.mubr.f32.mxu1 %v10918_v4 }
 0x1cb   : > { %9222 = vrot.lane.b32.xlu0 %v11624_v2, %s10942_s16  ;;  %10472 = vmatprep.subr.msk.mxu0 %vm458_vm1, %v6766_v26 }
 0x1cc   : > { %10473 = vmatpush1.msk.msra.mxu0 %vm458_vm1, %v6765_v25  ;;  %v6759_v27 = vpop.permute.xlu1 %6758 }
 0x1cd   : > { %v6757_v28 = vpop.permute.xlu0 %6756  ;;  %10474 = vmatmul.mubr.msk.f32.vlgmr.msra.gmra.mrb[2].mxu0 %vm454_vm2, %v10465_v17 }
 0x1ce   : > { %v6767_v29 = vsel %vm6760_vm5, %v6755_v23, %v6757_v28  ;;  %v6768_v30 = vsel %vm6760_vm5, %v6757_v28, %v6759_v27  ;;  %9226 = vrot.lane.b32.xlu1 %v11648_v55, %s10942_s16  ;;  %7206 = vmatprep.mubr.f32.mxu0 %v10918_v4 }
 0x1cf   : > { %9220 = vrot.lane.b32.xlu0 %v11614_v43, %s10942_s16  ;;  %10475 = vmatprep.subr.msk.mxu1 %vm458_vm1, %v6768_v30 }
 0x1d0   : > { %10476 = vmatpush1.msk.msra.mxu1 %vm458_vm1, %v6767_v29  ;;  %v7101_v9 = vpop.permute.xlu1 %7100  ;;  %v10517_v29 = vld [vmem:[%s12269_s2 + $0xb0] sm:$0xff] }
 0x1d1   : > { %v7099_v3 = vpop.permute.xlu0 %7098  ;;  %10477 = vmatmul.mubr.msk.f32.vlgmr.msra.gmra.mrb[2].mxu1 %vm454_vm2, %v10465_v17 }
 0x1d2   : > { %v7116_v31 = vsel %vm7114_vm6, %v7099_v3, %v7101_v9  ;;  %9230 = vrot.lane.b32.xlu1 %v11664_v62, %s10942_s16  ;;  %7277 = vmatprep.mubr.f32.mxu1 %v10918_v4 }
 0x1d3   : > { %9228 = vrot.lane.b32.xlu0 %v11653_v56, %s10942_s16  ;;  %10479 = vmatprep.subr.msk.mxu0 %vm458_vm1, %v7116_v31 }
 0x1d4   : > { %v7103_v32 = vpop.permute.xlu1 %7102 }
 0x1d5   : > { %v7097_v58 = vpop.permute.xlu0 %7096  ;;  %v7117_v38 = vsel %vm7114_vm6, %v7101_v9, %v7103_v32 }
 0x1d6   : > { %v7115_v33 = vsel %vm7114_vm6, %v7097_v58, %v7099_v3  ;;  %9234 = vrot.lane.b32.xlu1 %v11683_v13, %s10942_s16 }
 0x1d7   : > { %9232 = vrot.lane.b32.xlu0 %v11669_v63, %s10942_s16  ;;  %10480 = vmatpush1.msk.msra.mxu0 %vm458_vm1, %v7115_v33 }
 0x1d8   : > { %v7107_v34 = vpop.permute.xlu1 %7106  ;;  %10481 = vmatmul.mubr.msk.f32.vlgmr.msra.gmra.mrb[0].mxu0 %vm454_vm2, %v10478_v6 }
 0x1d9   : > { %v7105_v35 = vpop.permute.xlu0 %7104  ;;  %7348 = vmatprep.mubr.f32.mxu0 %v10918_v4 }
 0x1da   : > { %v7118_v37 = vsel %vm7114_vm6, %v7103_v32, %v7105_v35  ;;  %9576 = vrot.lane.b32.xlu1 %v11624_v2, %s10943_s20  ;;  %v7119_v2 = vsel %vm7114_vm6, %v7105_v35, %v7107_v34 }
 0x1db   : > { %9236 = vrot.lane.b32.xlu0 %v9208_v5, %s10942_s16  ;;  %10482 = vmatprep.subr.msk.mxu1 %vm458_vm1, %v7118_v37 }
 0x1dc   : > { %10483 = vmatpush1.msk.msra.mxu1 %vm458_vm1, %v7117_v38  ;;  %v7111_v0 = vpop.permute.xlu1 %7110 }
 0x1dd   : > { %v7109_v39 = vpop.permute.xlu0 %7108  ;;  %10484 = vmatmul.mubr.msk.f32.vlgmr.msra.gmra.mrb[0].mxu1 %vm454_vm2, %v10478_v6 }
 0x1de   : > { %v7120_v40 = vsel %vm7114_vm6, %v7107_v34, %v7109_v39  ;;  %9574 = vrot.lane.b32.xlu1 %v11614_v43, %s10943_s20  ;;  %7419 = vmatprep.mubr.f32.mxu1 %v10918_v4  ;;  %v7121_v43 = vsel %vm7114_vm6, %v7109_v39, %v7111_v0 }
 0x1df   : > { %9578 = vrot.lane.b32.xlu0 %v11638_v51, %s10943_s20  ;;  %10485 = vmatprep.subr.msk.mxu0 %vm458_vm1, %v7120_v40 }
 0x1e0   : > { %10486 = vmatpush1.msk.msra.mxu0 %vm458_vm1, %v7119_v2  ;;  %v7453_v42 = vpop.permute.xlu1 %7452 }
 0x1e1   : > { %v7113_v7 = vpop.permute.xlu0 %7112  ;;  %10487 = vmatmul.mubr.msk.f32.vlgmr.msra.gmra.mrb[2].mxu0 %vm454_vm2, %v10478_v6 }
 0x1e2   : > { %v7122_v45 = vsel %vm7114_vm6, %v7111_v0, %v7113_v7  ;;  %9582 = vrot.lane.b32.xlu1 %v11653_v56, %s10943_s20  ;;  %7560 = vmatprep.mubr.f32.mxu0 %v10918_v4 }
 0x1e3   : > { %9580 = vrot.lane.b32.xlu0 %v11648_v55, %s10943_s20  ;;  %10488 = vmatprep.subr.msk.mxu1 %vm458_vm1, %v7122_v45  ;;  %v9562_v55 = vld [vmem:[#allocation2 + $0x34] sm:$0xf] }
 0x1e4   : > { %10489 = vmatpush1.msk.msra.mxu1 %vm458_vm1, %v7121_v43  ;;  %v7451_v51 = vpop.permute.xlu1 %7450 }
 0x1e5   : > { %v7469_v46 = vsel %vm7468_vm7, %v7451_v51, %v7453_v42  ;;  %v7455_v47 = vpop.permute.xlu0 %7454  ;;  %10490 = vmatmul.mubr.msk.f32.vlgmr.msra.gmra.mrb[2].mxu1 %vm454_vm2, %v10478_v6 }
 0x1e6   : > { %v7470_v56 = vsel %vm7468_vm7, %v7453_v42, %v7455_v47  ;;  %9586 = vrot.lane.b32.xlu1 %v11669_v63, %s10943_s20  ;;  %7631 = vmatprep.mubr.f32.mxu1 %v10918_v4  ;;  %v10530_v42 = vld [vmem:[%s12269_s2 + $0xb8] sm:$0xff] }
 0x1e7   : > { %9584 = vrot.lane.b32.xlu0 %v11664_v62, %s10943_s20  ;;  %10492 = vmatprep.subr.msk.mxu0 %vm458_vm1, %v7470_v56 }
 0x1e8   : > { %10493 = vmatpush1.msk.msra.mxu0 %vm458_vm1, %v7469_v46  ;;  %v7459_v48 = vpop.permute.xlu1 %7458 }
 0x1e9   : > { %v7457_v49 = vpop.permute.xlu0 %7456  ;;  %10494 = vmatmul.mubr.msk.f32.vlgmr.msra.gmra.mrb[0].mxu0 %vm454_vm2, %v10491_v36 }
 0x1ea   : > { %v7471_v63 = vsel %vm7468_vm7, %v7455_v47, %v7457_v49  ;;  %v7472_v44 = vsel %vm7468_vm7, %v7457_v49, %v7459_v48  ;;  %9590 = vrot.lane.b32.xlu1 %v9562_v55, %s10943_s20  ;;  %7702 = vmatprep.mubr.f32.mxu0 %v10918_v4 }
 0x1eb   : > { %9588 = vrot.lane.b32.xlu0 %v11683_v13, %s10943_s20  ;;  %10495 = vmatprep.subr.msk.mxu1 %vm458_vm1, %v7472_v44 }
 0x1ec   : > { %10496 = vmatpush1.msk.msra.mxu1 %vm458_vm1, %v7471_v63  ;;  %v7463_v62 = vpop.permute.xlu1 %7462 }
 0x1ed   : > { %v7461_v50 = vpop.permute.xlu0 %7460  ;;  %10497 = vmatmul.mubr.msk.f32.vlgmr.msra.gmra.mrb[0].mxu1 %vm454_vm2, %v10491_v36 }
 0x1ee   : > { %v7473_v41 = vsel %vm7468_vm7, %v7459_v48, %v7461_v50  ;;  %v7474_v52 = vsel %vm7468_vm7, %v7461_v50, %v7463_v62  ;;  %7773 = vmatprep.mubr.f32.mxu1 %v10918_v4 }
 0x1ef   : > { %10498 = vmatprep.subr.msk.mxu0 %vm458_vm1, %v7474_v52 }
 0x1f0   : > { %10499 = vmatpush1.msk.msra.mxu0 %vm458_vm1, %v7473_v41  ;;  %v7467_v53 = vpop.permute.xlu1 %7466 }
 0x1f1   : > { %v7465_v13 = vpop.permute.xlu0 %7464  ;;  %10500 = vmatmul.mubr.msk.f32.vlgmr.msra.gmra.mrb[2].mxu0 %vm454_vm2, %v10491_v36 }
 0x1f2   : > { %v7475_v54 = vsel %vm7468_vm7, %v7463_v62, %v7465_v13  ;;  %v7476_v57 = vsel %vm7468_vm7, %v7465_v13, %v7467_v53  ;;  %7914 = vmatprep.mubr.f32.mxu0 %v10918_v4  ;;  %v10543_v53 = vld [vmem:[%s12269_s2 + $0xc0] sm:$0xff] }
 0x1f3   : > { %10501 = vmatprep.subr.msk.mxu1 %vm458_vm1, %v7476_v57 }
 0x1f4   : > { %10502 = vmatpush1.msk.msra.mxu1 %vm458_vm1, %v7475_v54  ;;  %v7809_v59 = vpop.permute.xlu1 %7808 }
 0x1f5   : > { %v7807_v60 = vpop.permute.xlu0 %7806  ;;  %10503 = vmatmul.mubr.msk.f32.vlgmr.msra.gmra.mrb[2].mxu1 %vm454_vm2, %v10491_v36 }
 0x1f6   : > { %v7824_v61 = vsel %vm7822_vm8, %v7807_v60, %v7809_v59  ;;  %7985 = vmatprep.mubr.f32.mxu1 %v10918_v4 }
 0x1f7   : > { %10505 = vmatprep.subr.msk.mxu0 %vm458_vm1, %v7824_v61 }
 0x1f8   : > { %v7811_v1 = vpop.permute.xlu1 %7810 }
 0x1f9   : > { %v7805_v8 = vpop.permute.xlu0 %7804  ;;  %v7825_v16 = vsel %vm7822_vm8, %v7809_v59, %v7811_v1 }
 0x1fa   : > { %v7823_v11 = vsel %vm7822_vm8, %v7805_v8, %v7807_v60 }
 0x1fb   : > { %10506 = vmatpush1.msk.msra.mxu0 %vm458_vm1, %v7823_v11 }
 0x1fc   : > { %v7815_v12 = vpop.permute.xlu1 %7814  ;;  %10507 = vmatmul.mubr.msk.f32.vlgmr.msra.gmra.mrb[0].mxu0 %vm454_vm2, %v10504_v10 }
 0x1fd   : > { %v7813_v14 = vpop.permute.xlu0 %7812  ;;  %8056 = vmatprep.mubr.f32.mxu0 %v10918_v4 }
 0x1fe   : > { %v7826_v15 = vsel %vm7822_vm8, %v7811_v1, %v7813_v14  ;;  %v7827_v20 = vsel %vm7822_vm8, %v7813_v14, %v7815_v12 }
 0x1ff   : > { %10508 = vmatprep.subr.msk.mxu1 %vm458_vm1, %v7826_v15 }
 0x200   : > { %10509 = vmatpush1.msk.msra.mxu1 %vm458_vm1, %v7825_v16  ;;  %v7819_v17 = vpop.permute.xlu1 %7818 }
 0x201   : > { %v7817_v18 = vpop.permute.xlu0 %7816  ;;  %10510 = vmatmul.mubr.msk.f32.vlgmr.msra.gmra.mrb[0].mxu1 %vm454_vm2, %v10504_v10 }
 0x202   : > { %v7828_v19 = vsel %vm7822_vm8, %v7815_v12, %v7817_v18  ;;  %8127 = vmatprep.mubr.f32.mxu1 %v10918_v4  ;;  %v7829_v24 = vsel %vm7822_vm8, %v7817_v18, %v7819_v17 }
 0x203   : > { %10511 = vmatprep.subr.msk.mxu0 %vm458_vm1, %v7828_v19 }
 0x204   : > { %10512 = vmatpush1.msk.msra.mxu0 %vm458_vm1, %v7827_v20  ;;  %v8161_v21 = vpop.permute.xlu1 %8160  ;;  %v10556_v20 = vld [vmem:[%s12269_s2 + $0xc8] sm:$0xff] }
 0x205   : > { %v7821_v22 = vpop.permute.xlu0 %7820  ;;  %10513 = vmatmul.mubr.msk.f32.vlgmr.msra.gmra.mrb[2].mxu0 %vm454_vm2, %v10504_v10 }
 0x206   : > { %v7830_v23 = vsel %vm7822_vm8, %v7819_v17, %v7821_v22  ;;  %8268 = vmatprep.mubr.f32.mxu0 %v10918_v4 }
 0x207   : > { %10514 = vmatprep.subr.msk.mxu1 %vm458_vm1, %v7830_v23 }
 0x208   : > { %10515 = vmatpush1.msk.msra.mxu1 %vm458_vm1, %v7829_v24  ;;  %v8159_v25 = vpop.permute.xlu1 %8158 }
 0x209   : > { %v8177_v26 = vsel %vm8176_vm9, %v8159_v25, %v8161_v21  ;;  %v8163_v27 = vpop.permute.xlu0 %8162  ;;  %10516 = vmatmul.mubr.msk.f32.vlgmr.msra.gmra.mrb[2].mxu1 %vm454_vm2, %v10504_v10 }
 0x20a   : > { %v8178_v28 = vsel %vm8176_vm9, %v8161_v21, %v8163_v27  ;;  %8339 = vmatprep.mubr.f32.mxu1 %v10918_v4 }
 0x20b   : > { %10518 = vmatprep.subr.msk.mxu0 %vm458_vm1, %v8178_v28 }
 0x20c   : > { %10519 = vmatpush1.msk.msra.mxu0 %vm458_vm1, %v8177_v26  ;;  %v8167_v30 = vpop.permute.xlu1 %8166 }
 0x20d   : > { %v8165_v9 = vpop.permute.xlu0 %8164  ;;  %10520 = vmatmul.mubr.msk.f32.vlgmr.msra.gmra.mrb[0].mxu0 %vm454_vm2, %v10517_v29 }
 0x20e   : > { %v8179_v3 = vsel %vm8176_vm9, %v8163_v27, %v8165_v9  ;;  %v8180_v31 = vsel %vm8176_vm9, %v8165_v9, %v8167_v30  ;;  %8410 = vmatprep.mubr.f32.mxu0 %v10918_v4 }
 0x20f   : > { %10521 = vmatprep.subr.msk.mxu1 %vm458_vm1, %v8180_v31 }
 0x210   : > { %10522 = vmatpush1.msk.msra.mxu1 %vm458_vm1, %v8179_v3  ;;  %v8171_v32 = vpop.permute.xlu1 %8170 }
 0x211   : > { %v8169_v58 = vpop.permute.xlu0 %8168  ;;  %10523 = vmatmul.mubr.msk.f32.vlgmr.msra.gmra.mrb[0].mxu1 %vm454_vm2, %v10517_v29 }
 0x212   : > { %v8181_v6 = vsel %vm8176_vm9, %v8167_v30, %v8169_v58  ;;  %v8182_v33 = vsel %vm8176_vm9, %v8169_v58, %v8171_v32  ;;  %8481 = vmatprep.mubr.f32.mxu1 %v10918_v4 }
 0x213   : > { %10524 = vmatprep.subr.msk.mxu0 %vm458_vm1, %v8182_v33 }
 0x214   : > { %10525 = vmatpush1.msk.msra.mxu0 %vm458_vm1, %v8181_v6  ;;  %v8175_v34 = vpop.permute.xlu1 %8174 }
 0x215   : > { %v8173_v5 = vpop.permute.xlu0 %8172  ;;  %10526 = vmatmul.mubr.msk.f32.vlgmr.msra.gmra.mrb[2].mxu0 %vm454_vm2, %v10517_v29 }
 0x216   : > { %v8183_v35 = vsel %vm8176_vm9, %v8171_v32, %v8173_v5  ;;  %v8184_v37 = vsel %vm8176_vm9, %v8173_v5, %v8175_v34  ;;  %8622 = vmatprep.mubr.f32.mxu0 %v10918_v4  ;;  %v10569_v34 = vld [vmem:[%s12269_s2 + $0xd0] sm:$0xff] }
 0x217   : > { %10527 = vmatprep.subr.msk.mxu1 %vm458_vm1, %v8184_v37 }
 0x218   : > { %10528 = vmatpush1.msk.msra.mxu1 %vm458_vm1, %v8183_v35  ;;  %v8517_v38 = vpop.permute.xlu1 %8516 }
 0x219   : > { %v8515_v0 = vpop.permute.xlu0 %8514  ;;  %10529 = vmatmul.mubr.msk.f32.vlgmr.msra.gmra.mrb[2].mxu1 %vm454_vm2, %v10517_v29 }
 0x21a   : > { %v8532_v39 = vsel %vm8530_vm10, %v8515_v0, %v8517_v38  ;;  %8693 = vmatprep.mubr.f32.mxu1 %v10918_v4 }
 0x21b   : > { %10531 = vmatprep.subr.msk.mxu0 %vm458_vm1, %v8532_v39 }
 0x21c   : > { %v8519_v40 = vpop.permute.xlu1 %8518 }
 0x21d   : > { %v8513_v2 = vpop.permute.xlu0 %8512  ;;  %v8533_v46 = vsel %vm8530_vm10, %v8517_v38, %v8519_v40 }
 0x21e   : > { %v8531_v7 = vsel %vm8530_vm10, %v8513_v2, %v8515_v0 }
 0x21f   : > { %10532 = vmatpush1.msk.msra.mxu0 %vm458_vm1, %v8531_v7 }
 0x220   : > { %v8523_v45 = vpop.permute.xlu1 %8522  ;;  %10533 = vmatmul.mubr.msk.f32.vlgmr.msra.gmra.mrb[0].mxu0 %vm454_vm2, %v10530_v42 }
 0x221   : > { %v8521_v43 = vpop.permute.xlu0 %8520  ;;  %8764 = vmatprep.mubr.f32.mxu0 %v10918_v4 }
 0x222   : > { %v8534_v51 = vsel %vm8530_vm10, %v8519_v40, %v8521_v43  ;;  %v8535_v55 = vsel %vm8530_vm10, %v8521_v43, %v8523_v45 }
 0x223   : > { %10534 = vmatprep.subr.msk.mxu1 %vm458_vm1, %v8534_v51 }
 0x224   : > { %10535 = vmatpush1.msk.msra.mxu1 %vm458_vm1, %v8533_v46  ;;  %v8527_v47 = vpop.permute.xlu1 %8526 }
 0x225   : > { %v8525_v56 = vpop.permute.xlu0 %8524  ;;  %10536 = vmatmul.mubr.msk.f32.vlgmr.msra.gmra.mrb[0].mxu1 %vm454_vm2, %v10530_v42 }
 0x226   : > { %v8536_v36 = vsel %vm8530_vm10, %v8523_v45, %v8525_v56  ;;  %8835 = vmatprep.mubr.f32.mxu1 %v10918_v4  ;;  %v8537_v44 = vsel %vm8530_vm10, %v8525_v56, %v8527_v47 }
 0x227   : > { %10537 = vmatprep.subr.msk.mxu0 %vm458_vm1, %v8536_v36 }
 0x228   : > { %10538 = vmatpush1.msk.msra.mxu0 %vm458_vm1, %v8535_v55  ;;  %v8869_v48 = vpop.permute.xlu1 %8868 }
 0x229   : > { %v8529_v49 = vpop.permute.xlu0 %8528  ;;  %10539 = vmatmul.mubr.msk.f32.vlgmr.msra.gmra.mrb[2].mxu0 %vm454_vm2, %v10530_v42 }
 0x22a   : > { %v8538_v63 = vsel %vm8530_vm10, %v8527_v47, %v8529_v49  ;;  %8976 = vmatprep.mubr.f32.mxu0 %v10918_v4  ;;  %v9920_v47 = vld [vmem:[%s366_s30] sm:$0xff] }
 0x22b   : > { %10540 = vmatprep.subr.msk.mxu1 %vm458_vm1, %v8538_v63 }
 0x22c   : > { %10541 = vmatpush1.msk.msra.mxu1 %vm458_vm1, %v8537_v44  ;;  %v8867_v62 = vpop.permute.xlu1 %8866 }
 0x22d   : > { %v8885_v50 = vsel %vm8884_vm11, %v8867_v62, %v8869_v48  ;;  %v8871_v41 = vpop.permute.xlu0 %8870  ;;  %10542 = vmatmul.mubr.msk.f32.vlgmr.msra.gmra.mrb[2].mxu1 %vm454_vm2, %v10530_v42 }
 0x22e   : > { %v8886_v52 = vsel %vm8884_vm11, %v8869_v48, %v8871_v41  ;;  %9047 = vmatprep.mubr.f32.mxu1 %v10918_v4 }
 0x22f   : > { %10544 = vmatprep.subr.msk.mxu0 %vm458_vm1, %v8886_v52 }
 0x230   : > { %10545 = vmatpush1.msk.msra.mxu0 %vm458_vm1, %v8885_v50  ;;  %v8875_v13 = vpop.permute.xlu1 %8874 }
 0x231   : > { %v8873_v54 = vpop.permute.xlu0 %8872  ;;  %10546 = vmatmul.mubr.msk.f32.vlgmr.msra.gmra.mrb[0].mxu0 %vm454_vm2, %v10543_v53 }
 0x232   : > { %v8887_v57 = vsel %vm8884_vm11, %v8871_v41, %v8873_v54  ;;  %v8888_v59 = vsel %vm8884_vm11, %v8873_v54, %v8875_v13  ;;  %9118 = vmatprep.mubr.f32.mxu0 %v10918_v4 }
 0x233   : > { %10547 = vmatprep.subr.msk.mxu1 %vm458_vm1, %v8888_v59 }
 0x234   : > { %10548 = vmatpush1.msk.msra.mxu1 %vm458_vm1, %v8887_v57  ;;  %v8879_v60 = vpop.permute.xlu1 %8878 }
 0x235   : > { %v8877_v61 = vpop.permute.xlu0 %8876  ;;  %10549 = vmatmul.mubr.msk.f32.vlgmr.msra.gmra.mrb[0].mxu1 %vm454_vm2, %v10543_v53 }
 0x236   : > { %v8889_v1 = vsel %vm8884_vm11, %v8875_v13, %v8877_v61  ;;  %v8890_v8 = vsel %vm8884_vm11, %v8877_v61, %v8879_v60  ;;  %9189 = vmatprep.mubr.f32.mxu1 %v10918_v4 }
 0x237   : > { %10550 = vmatprep.subr.msk.mxu0 %vm458_vm1, %v8890_v8 }
 0x238   : > { %10551 = vmatpush1.msk.msra.mxu0 %vm458_vm1, %v8889_v1  ;;  %v8883_v10 = vpop.permute.xlu1 %8882 }
 0x239   : > { %v8881_v11 = vpop.permute.xlu0 %8880  ;;  %10552 = vmatmul.mubr.msk.f32.vlgmr.msra.gmra.mrb[2].mxu0 %vm454_vm2, %v10543_v53 }
 0x23a   : > { %v8891_v12 = vsel %vm8884_vm11, %v8879_v60, %v8881_v11  ;;  %v8892_v14 = vsel %vm8884_vm11, %v8881_v11, %v8883_v10  ;;  %9330 = vmatprep.mubr.f32.mxu0 %v10918_v4 }
 0x23b   : > { %10553 = vmatprep.subr.msk.mxu1 %vm458_vm1, %v8892_v14 }
 0x23c   : > { %10554 = vmatpush1.msk.msra.mxu1 %vm458_vm1, %v8891_v12  ;;  %v9225_v15 = vpop.permute.xlu1 %9224 }
 0x23d   : > { %v9223_v16 = vpop.permute.xlu0 %9222  ;;  %10555 = vmatmul.mubr.msk.f32.vlgmr.msra.gmra.mrb[2].mxu1 %vm454_vm2, %v10543_v53 }
 0x23e   : > { %v9240_v17 = vsel %vm9238_vm12, %v9223_v16, %v9225_v15  ;;  %9401 = vmatprep.mubr.f32.mxu1 %v10918_v4 }
 0x23f   : > { %10557 = vmatprep.subr.msk.mxu0 %vm458_vm1, %v9240_v17 }
 0x240   : > { %v9227_v18 = vpop.permute.xlu1 %9226 }
 0x241   : > { %v9221_v19 = vpop.permute.xlu0 %9220  ;;  %v9241_v25 = vsel %vm9238_vm12, %v9225_v15, %v9227_v18 }
 0x242   : > { %v9239_v21 = vsel %vm9238_vm12, %v9221_v19, %v9223_v16 }
 0x243   : > { %10558 = vmatpush1.msk.msra.mxu0 %vm458_vm1, %v9239_v21 }
 0x244   : > { %v9231_v22 = vpop.permute.xlu1 %9230  ;;  %10559 = vmatmul.mubr.msk.f32.vlgmr.msra.gmra.mrb[0].mxu0 %vm454_vm2, %v10556_v20 }
 0x245   : > { %v9229_v23 = vpop.permute.xlu0 %9228  ;;  %9472 = vmatprep.mubr.f32.mxu0 %v10918_v4 }
 0x246   : > { %v9242_v24 = vsel %vm9238_vm12, %v9227_v18, %v9229_v23  ;;  %v9243_v29 = vsel %vm9238_vm12, %v9229_v23, %v9231_v22 }
 0x247   : > { %10560 = vmatprep.subr.msk.mxu1 %vm458_vm1, %v9242_v24 }
 0x248   : > { %10561 = vmatpush1.msk.msra.mxu1 %vm458_vm1, %v9241_v25  ;;  %v9235_v26 = vpop.permute.xlu1 %9234 }
 0x249   : > { %v9233_v27 = vpop.permute.xlu0 %9232  ;;  %10562 = vmatmul.mubr.msk.f32.vlgmr.msra.gmra.mrb[0].mxu1 %vm454_vm2, %v10556_v20 }
 0x24a   : > { %v9244_v28 = vsel %vm9238_vm12, %v9231_v22, %v9233_v27  ;;  %9543 = vmatprep.mubr.f32.mxu1 %v10918_v4  ;;  %v9245_v31 = vsel %vm9238_vm12, %v9233_v27, %v9235_v26 }
 0x24b   : > { %10563 = vmatprep.subr.msk.mxu0 %vm458_vm1, %v9244_v28 }
 0x24c   : > { %10564 = vmatpush1.msk.msra.mxu0 %vm458_vm1, %v9243_v29  ;;  %v9577_v30 = vpop.permute.xlu1 %9576 }
 0x24d   : > { %v9237_v9 = vpop.permute.xlu0 %9236  ;;  %10565 = vmatmul.mubr.msk.f32.vlgmr.msra.gmra.mrb[2].mxu0 %vm454_vm2, %v10556_v20 }
 0x24e   : > { %v9246_v3 = vsel %vm9238_vm12, %v9235_v26, %v9237_v9  ;;  %9684 = vmatprep.mubr.f32.mxu0 %v10918_v4 }
 0x24f   : > { %10566 = vmatprep.subr.msk.mxu1 %vm458_vm1, %v9246_v3 }
 0x250   : > { %10567 = vmatpush1.msk.msra.mxu1 %vm458_vm1, %v9245_v31  ;;  %v9575_v32 = vpop.permute.xlu1 %9574 }
 0x251   : > { %v9593_v58 = vsel %vm9592_vm13, %v9575_v32, %v9577_v30  ;;  %v9579_v6 = vpop.permute.xlu0 %9578  ;;  %10568 = vmatmul.mubr.msk.f32.vlgmr.msra.gmra.mrb[2].mxu1 %vm454_vm2, %v10556_v20 }
 0x252   : > { %v9594_v33 = vsel %vm9592_vm13, %v9577_v30, %v9579_v6  ;;  %9755 = vmatprep.mubr.f32.mxu1 %v10918_v4 }
 0x253   : > { %10570 = vmatprep.subr.msk.mxu0 %vm458_vm1, %v9594_v33 }
 0x254   : > { %10571 = vmatpush1.msk.msra.mxu0 %vm458_vm1, %v9593_v58  ;;  %v9583_v5 = vpop.permute.xlu1 %9582 }
 0x255   : > { %10572 = vmatmul.mubr.msk.f32.vlgmr.msra.gmra.mrb[0].mxu0 %vm454_vm2, %v10569_v34  ;;  %v9581_v35 = vpop.permute.xlu0 %9580 }
 0x256   : > { %v9595_v37 = vsel %vm9592_vm13, %v9579_v6, %v9581_v35  ;;  %v9596_v38 = vsel %vm9592_vm13, %v9581_v35, %v9583_v5  ;;  %9826 = vmatprep.mubr.f32.mxu0 %v10918_v4 }
 0x257   : > { %10573 = vmatprep.subr.msk.mxu1 %vm458_vm1, %v9596_v38 }
 0x258   : > { %10574 = vmatpush1.msk.msra.mxu1 %vm458_vm1, %v9595_v37  ;;  %v9587_v0 = vpop.permute.xlu1 %9586 }
 0x259   : > { %10575 = vmatmul.mubr.msk.f32.vlgmr.msra.gmra.mrb[0].mxu1 %vm454_vm2, %v10569_v34  ;;  %v9585_v39 = vpop.permute.xlu0 %9584 }
 0x25a   : > { %v9597_v40 = vsel %vm9592_vm13, %v9583_v5, %v9585_v39  ;;  %v9598_v2 = vsel %vm9592_vm13, %v9585_v39, %v9587_v0  ;;  %9897 = vmatprep.mubr.f32.mxu1 %v10918_v4  ;;  %v9922_v4 = vlaneseq }
 0x25b   : > { %10576 = vmatprep.subr.msk.mxu0 %vm458_vm1, %v9598_v2 }
 0x25c   : > { %10577 = vmatpush1.msk.msra.mxu0 %vm458_vm1, %v9597_v40  ;;  %v9591_v42 = vpop.permute.xlu1 %9590  ;;  %v9923_v51 = vshrl.u32 %v9922_v4, 7 }
 0x25d   : > { %10578 = vmatmul.mubr.msk.f32.vlgmr.msra.gmra.mrb[2].mxu0 %vm454_vm2, %v10569_v34  ;;  %v9589_v7 = vpop.permute.xlu0 %9588 }
 0x25e   : > { %v9599_v45 = vsel %vm9592_vm13, %v9587_v0, %v9589_v7  ;;  %v9600_v43 = vsel %vm9592_vm13, %v9589_v7, %v9591_v42  ;;  %v9924_v46 = vsub.s32 0, %v9923_v51  ;;  %v9928_v56 = vsub.s32 1, %v9923_v51 }
 0x25f   : > { %10579 = vmatprep.subr.msk.mxu1 %vm458_vm1, %v9600_v43  ;;  %v9932_v36 = vsub.s32 2, %v9923_v51  ;;  %v9936_v49 = vsub.s32 3, %v9923_v51  ;;  %v9940_v52 = vsub.s32 4, %v9923_v51  ;;  %v9944_v53 = vsub.s32 5, %v9923_v51 }
 0x260   : > { %10580 = vmatpush1.msk.msra.mxu1 %vm458_vm1, %v9599_v45  ;;  %v9925_v55 = vrot.slane %v9920_v47, %v9924_v46  ;;  %v9929_v48 = vrot.slane %v9920_v47, %v9928_v56  ;;  %v9948_v8 = vsub.s32 6, %v9923_v51  ;;  %v9952_v19 = vsub.s32 7, %v9923_v51 }
 0x261   : > { %10581 = vmatmul.mubr.msk.f32.vlgmr.msra.gmra.mrb[2].mxu1 %vm454_vm2, %v10569_v34  ;;  %v9933_v44 = vrot.slane %v9920_v47, %v9932_v36  ;;  %v9937_v57 = vrot.slane %v9920_v47, %v9936_v49  ;;  %v9941_v14 = vrot.slane %v9920_v47, %v9940_v52  ;;  %v9945_v15 = vrot.slane %v9920_v47, %v9944_v53 }
 0x262   : > { %v9949_v24 = vrot.slane %v9920_v47, %v9948_v8  ;;  %v9953_v3 = vrot.slane %v9920_v47, %v9952_v19  ;;  %vm9979_vm1 = vcmask 7168  }
 0x328   : > { %v9686_v63 = vpop.f32.mrb[0].mxu0 }
 0x329   : > { %9912 = vst [vmem:[%s12233_s10] sm:$0xff] %v9686_v63  ;;  %v9962_v62 = vmul.f32 %v9925_v55, %v9686_v63  ;;  %v9981_v50 = vmul.f32 %v9686_v63, %v9686_v63  ;;  %v9688_v41 = vpop.f32.mrb[1].mxu0 }
 0x32a   : > { %9913 = vst [vmem:[%s12233_s10 + $0x8] sm:$0xff] %v9688_v41  ;;  %v9963_v13 = vmul.f32 %v9929_v48, %v9688_v41  ;;  %v9982_v54 = vmul.f32 %v9688_v41, %v9688_v41 }
 0x32b   : > { %v9989_v59 = vmul.f32 %v9981_v50, %v9925_v55 }
 0x32c   : > { %v9970_v60 = vadd.f32 %v9963_v13, %v9962_v62  ;;  %v9990_v61 = vmul.f32 %v9982_v54, %v9929_v48  ;;  %v9757_v1 = vpop.f32.mrb[0].mxu1 }
 0x32d   : > { %9914 = vst [vmem:[%s12233_s10 + $0x10] sm:$0xff] %v9757_v1  ;;  %v9964_v10 = vmul.f32 %v9933_v44, %v9757_v1  ;;  %v9983_v11 = vmul.f32 %v9757_v1, %v9757_v1  ;;  %v9759_v12 = vpop.f32.mrb[1].mxu1 }
 0x32e   : > { %v9997_v16 = vadd.f32 %v9990_v61, %v9989_v59  ;;  %9915 = vst [vmem:[%s12233_s10 + $0x18] sm:$0xff] %v9759_v12  ;;  %v9965_v17 = vmul.f32 %v9937_v57, %v9759_v12  ;;  %v9984_v18 = vmul.f32 %v9759_v12, %v9759_v12 }
 0x32f   : > { %v9971_v20 = vadd.f32 %v9970_v60, %v9964_v10  ;;  %v9991_v21 = vmul.f32 %v9983_v11, %v9933_v44 }
 0x330   : > { %v9992_v22 = vmul.f32 %v9984_v18, %v9937_v57  ;;  %v9828_v23 = vpop.f32.mrb[2].mxu0 }
 0x331   : > { %v9998_v25 = vadd.f32 %v9997_v16, %v9991_v21  ;;  %v9972_v26 = vadd.f32 %v9971_v20, %v9965_v17  ;;  %9916 = vst [vmem:[%s12233_s10 + $0x20] sm:$0xff] %v9828_v23  ;;  %v9966_v27 = vmul.f32 %v9941_v14, %v9828_v23  ;;  %v9985_v28 = vmul.f32 %v9828_v23, %v9828_v23  ;;  %v9830_v29 = vpop.f32.mrb[3].mxu0 }
 0x332   : > { %9917 = vst [vmem:[%s12233_s10 + $0x28] sm:$0xff] %v9830_v29  ;;  %v9967_v30 = vmul.f32 %v9945_v15, %v9830_v29  ;;  %v9986_v9 = vmul.f32 %v9830_v29, %v9830_v29 }
 0x333   : > { %v9999_v31 = vadd.f32 %v9998_v25, %v9992_v22  ;;  %v9973_v32 = vadd.f32 %v9972_v26, %v9966_v27  ;;  %v9993_v58 = vmul.f32 %v9985_v28, %v9941_v14 }
 0x334   : > { %v9994_v6 = vmul.f32 %v9986_v9, %v9945_v15  ;;  %v9899_v33 = vpop.f32.mrb[2].mxu1 }
 0x335   : > { %v10000_v34 = vadd.f32 %v9999_v31, %v9993_v58  ;;  %v9974_v5 = vadd.f32 %v9973_v32, %v9967_v30  ;;  %9918 = vst [vmem:[%s12233_s10 + $0x30] sm:$0xff] %v9899_v33  ;;  %v9968_v35 = vmul.f32 %v9949_v24, %v9899_v33  ;;  %v9987_v37 = vmul.f32 %v9899_v33, %v9899_v33  ;;  %v9901_v38 = vpop.f32.mrb[3].mxu1 }
 0x336   : > { %9919 = vst [vmem:[%s12233_s10 + $0x38] sm:$0xff] %v9901_v38  ;;  %v9969_v0 = vmul.f32 %v9953_v3, %v9901_v38  ;;  %v9988_v39 = vmul.f32 %v9901_v38, %v9901_v38 }
 0x337   : > { %v10001_v40 = vadd.f32 %v10000_v34, %v9994_v6  ;;  %v9975_v2 = vadd.f32 %v9974_v5, %v9968_v35  ;;  %v9995_v42 = vmul.f32 %v9987_v37, %v9949_v24 }
 0x338   : > { %v9996_v7 = vmul.f32 %v9988_v39, %v9953_v3 }
 0x339   : > { %v9976_v45 = vadd.f32 %v9975_v2, %v9969_v0  ;;  %v10002_v43 = vadd.f32 %v10001_v40, %v9995_v42 }
 0x33b   : > { %9977 = vadd.xlane.f32.xlu0 %v9976_v45  ;;  %v10003_v4 = vadd.f32 %v10002_v43, %v9996_v7 }
 0x33d   : > { %10004 = vadd.xlane.f32.xlu1 %v10003_v4 }
 0x3c8   : > { %v9978_v51 = vpop.xlane.xlu0 %9977 }
 0x3c9   : > { %9980 = vst.msk [vmem:[%s385_s15] sm:$0xff] %vm9979_vm1, %v9978_v51 }
 0x3ca   : > { %v10005_v46 = vpop.xlane.xlu1 %10004 }
 0x3cb   : > { %10006 = vst.msk [vmem:[%s393_s19] sm:$0xff] %vm9979_vm1, %v10005_v46 }
 0x3cc PF: > { %s17_s25 = sadd.s32 1, %s10915_s25   ;;  %s12274_s21 = smov %s10907_s23 }
 0x3cd   : > { %p14_p10 = scmp.ge.s32.totalorder %s17_s25, 14   ;;  %s12275_s22 = smov %s10911_s24 }
 0x3ce   : > { %s12276_s23 = smov %s12279_s26  ;;  %s12277_s24 = smov %s12283_s27 }
 0x3cf   :  { %16 = sbr.rel (!%p14_p10) target bundleno = 3 (0x3), region = 122 }

</bundles_post_ra>
